<compile_context>
chip_gen: v6e
topology: v6e:2x2x1
jax: 0.10.0
libtpu: 0.0.40
codegen_flags: <defaults>
</compile_context>

<pallas_src>
import functools

import numpy as np
import jax
import jax.numpy as jnp
from jax.experimental import pallas as pl
from jax.experimental.pallas import tpu as pltpu


_VMEM_LIMIT = 32 * 1024 * 1024


# ----------------------------------------------------------------------------
# Kernel 1: fused im2col + conv-as-matmul + bias + ReLU (one image per step)
#   inputs  : 4 parity phases of the padded activation (bf16), tap-major weights
#   output  : (1, Cout, Ho*Wo) f32, lane-dense flattened spatial
# ----------------------------------------------------------------------------
def _conv3x3_s2_kernel(x00_ref, x01_ref, x10_ref, x11_ref, w_ref, b_ref, o_ref,
                       *, cin, cout, ho, wo):
    # Phase refs x{p}{q}: (1, cin, ho+1, wo+1) bf16 with
    #   x{p}{q}[0, c, a, b] == xpad[c, 2a+p, 2b+q]
    # so tap (di, dj) of the stride-2 conv is the contiguous static slice
    #   phases[di%2][dj%2][0, :, di//2 : di//2+ho, dj//2 : dj//2+wo].
    phases = ((x00_ref, x01_ref), (x10_ref, x11_ref))
    acc = jnp.zeros((cout, ho * wo), jnp.float32)
    for t in range(9):
        di, dj = divmod(t, 3)
        r0, c0 = di // 2, dj // 2
        tap = phases[di % 2][dj % 2][0, :, r0:r0 + ho, c0:c0 + wo]   # (cin, ho, wo)
        acc = acc + jnp.dot(w_ref[t], tap.reshape(cin, ho * wo),
                            preferred_element_type=jnp.float32)
    acc = acc + b_ref[...]                       # (cout, 1) broadcasts over lanes
    o_ref[0] = jnp.maximum(acc, 0.0).astype(o_ref.dtype)


def conv3x3_s2_relu(x, w, b):
    """x: (B, Cin, H, W) f32, w: (Cout, Cin, 3, 3), b: (Cout,)
       -> (B, Cout, (H//2)*(W//2)) f32 (spatially flattened, lane-dense)."""
    B, Cin, H, W = x.shape
    Cout = w.shape[0]
    Ho, Wo = H // 2, W // 2
    Hh, Wh = Ho + 1, Wo + 1                       # padded parity-phase extents

    # pad + parity (space-to-depth) split in XLA: same total bytes as the raw
    # input (no im2col inflation in HBM); also the bf16 downcast of the stream.
    xp = jnp.pad(x, ((0, 0), (0, 0), (1, 1), (1, 1))).astype(jnp.bfloat16)
    xr = xp.reshape(B, Cin, Hh, 2, Wh, 2)
    phases = [xr[:, :, :, p, :, q] for p in (0, 1) for q in (0, 1)]  # 4x(B,Cin,Hh,Wh)

    # tap-major weights: w9[di*3+dj, co, ci] == w[co, ci, di, dj]
    w9 = w.transpose(2, 3, 0, 1).reshape(9, Cout, Cin).astype(jnp.bfloat16)
    b2 = b.reshape(Cout, 1).astype(jnp.float32)

    kernel = functools.partial(_conv3x3_s2_kernel, cin=Cin, cout=Cout, ho=Ho, wo=Wo)
    phase_spec = pl.BlockSpec((1, Cin, Hh, Wh), lambda bi: (bi, 0, 0, 0))
    return pl.pallas_call(
        kernel,
        out_shape=jax.ShapeDtypeStruct((B, Cout, Ho * Wo), jnp.float32),
        grid=(B,),
        in_specs=[phase_spec, phase_spec, phase_spec, phase_spec,
                  pl.BlockSpec((9, Cout, Cin), lambda bi: (0, 0, 0)),
                  pl.BlockSpec((Cout, 1), lambda bi: (0, 0))],
        out_specs=pl.BlockSpec((1, Cout, Ho * Wo), lambda bi: (bi, 0, 0)),
        compiler_params=pltpu.CompilerParams(
            dimension_semantics=("parallel",),
            vmem_limit_bytes=_VMEM_LIMIT),
    )(*phases, w9, b2)


# ----------------------------------------------------------------------------
# Kernel 2: fused channel-L2-normalize + bilinear resize (one image per step)
#   resize == one matmul against kron(Ah, Aw)^T : (Hs*Ws, T*T)
# ----------------------------------------------------------------------------
def _l2norm_kernel(x_ref, o_ref):
    x = x_ref[0]                                              # (C, S) f32
    ss = jnp.sum(x * x, axis=0, keepdims=True)                # (1, S)
    o_ref[0] = (x * jax.lax.rsqrt(jnp.maximum(ss, 1e-24))).astype(o_ref.dtype)


def _l2norm_resize_kernel(x_ref, rt_ref, o_ref):
    x = x_ref[0]                                              # (C, S)
    ss = jnp.sum(x * x, axis=0, keepdims=True)
    xn = x * jax.lax.rsqrt(jnp.maximum(ss, 1e-24))            # F.normalize(dim=1)
    o_ref[0] = jnp.dot(xn, rt_ref[...],
                       preferred_element_type=jnp.float32).astype(o_ref.dtype)


def bilinear_matrix(out_size, in_size):
    """Row-interp matrix matching F.interpolate(mode='bilinear', align_corners=False)."""
    A = np.zeros((out_size, in_size), np.float32)
    if out_size == in_size:
        np.fill_diagonal(A, 1.0)
        return A
    scale = in_size / out_size
    i = np.arange(out_size)
    src = (i + 0.5) * scale - 0.5
    src = np.clip(src, 0.0, None)
    x0 = np.clip(np.floor(src).astype(np.int64), 0, in_size - 1)
    x1 = np.minimum(x0 + 1, in_size - 1)
    lam = (src - x0).astype(np.float32)
    A[i, x0] += 1.0 - lam
    A[i, x1] += lam
    return A


def l2norm_and_resize(f, src_hw, target):
    """f: (B, C, Hs*Ws) -> (B, C, target*target), L2-normalized over C."""
    B, C, S = f.shape
    Hs, Ws = src_hw
    T = target
    common = dict(
        grid=(B,),
        out_shape=jax.ShapeDtypeStruct((B, C, T * T), jnp.float32),
        out_specs=pl.BlockSpec((1, C, T * T), lambda bi: (bi, 0, 0)),
        compiler_params=pltpu.CompilerParams(
            dimension_semantics=("parallel",),
            vmem_limit_bytes=_VMEM_LIMIT),
    )
    x_spec = pl.BlockSpec((1, C, S), lambda bi: (bi, 0, 0))

    if Hs == T and Ws == T:
        # Identity resolution: normalize-only kernel, no interp-matrix DMAs.
        return pl.pallas_call(_l2norm_kernel, in_specs=[x_spec], **common)(f)

    # Separable bilinear as a single matmul: o = xn @ kron(Ah, Aw)^T
    rt = jnp.asarray(np.kron(bilinear_matrix(T, Hs), bilinear_matrix(T, Ws)).T)
    return pl.pallas_call(
        _l2norm_resize_kernel,
        in_specs=[x_spec, pl.BlockSpec((S, T * T), lambda bi: (0, 0))],
        **common)(f, rt)


# ----------------------------------------------------------------------------
# Synthetic 3-stage backbone + TimmBackbone forward (multi-stage path)
# ----------------------------------------------------------------------------
def init_params():
    k = jax.random.PRNGKey(0)
    ks = jax.random.split(k, 6)

    def conv_w(key, cout, cin):
        fan_in = cin * 9
        return (jax.random.normal(key, (cout, cin, 3, 3), jnp.float32)
                / np.sqrt(fan_in)).astype(jnp.float32)

    return {
        "w1": conv_w(ks[0], 8, 3),
        "b1": 0.01 * jax.random.normal(ks[1], (8,), jnp.float32),
        "w2": conv_w(ks[2], 16, 8),
        "b2": 0.01 * jax.random.normal(ks[3], (16,), jnp.float32),
        "w3": conv_w(ks[4], 32, 16),
        "b3": 0.01 * jax.random.normal(ks[5], (32,), jnp.float32),
    }


def timm_backbone_forward(params, images):
    """images: (B, 3, H, W) float32 NCHW (already 'transformed' tensors)."""
    B, _, H, W = images.shape
    c1, c2, c3 = params["w1"].shape[0], params["w2"].shape[0], params["w3"].shape[0]

    f1 = conv3x3_s2_relu(images, params["w1"], params["b1"])          # (B, c1, (H/2)(W/2))
    f2 = conv3x3_s2_relu(f1.reshape(B, c1, H // 2, W // 2),
                         params["w2"], params["b2"])                  # (B, c2, (H/4)(W/4))
    f3 = conv3x3_s2_relu(f2.reshape(B, c2, H // 4, W // 4),
                         params["w3"], params["b3"])                  # (B, c3, (H/8)(W/8))

    target = H // 2                          # resolution of the first selected stage
    fused = [
        l2norm_and_resize(f1, (H // 2, W // 2), target),
        l2norm_and_resize(f2, (H // 4, W // 4), target),
        l2norm_and_resize(f3, (H // 8, W // 8), target),
    ]
    out = jnp.concatenate(fused, axis=1)                              # (B, Ctot, T*T)
    return out.reshape(B, c1 + c2 + c3, target, target)               # already NCHW


if __name__ == "__main__":
    key = jax.random.PRNGKey(0)
    images = jax.random.normal(key, (2, 3, 16, 16), jnp.float32)      # small NCHW batch
    params = init_params()

    fwd = jax.jit(timm_backbone_forward)
    out = jax.block_until_ready(fwd(params, images))

    assert out.shape == (2, 8 + 16 + 32, 8, 8), out.shape
    assert out.dtype == jnp.float32
    assert bool(jnp.all(jnp.isfinite(out)))
    print("KERNEL_OK")
</pallas_src>

<mosaic_0001>
module attributes {stable_mosaic.version = 11 : i64} {
  func.func @_conv3x3_s2_kernel(%arg0: i32, %arg1: memref<1x3x9x9xbf16, #tpu.memory_space<vmem>>, %arg2: memref<1x3x9x9xbf16, #tpu.memory_space<vmem>>, %arg3: memref<1x3x9x9xbf16, #tpu.memory_space<vmem>>, %arg4: memref<1x3x9x9xbf16, #tpu.memory_space<vmem>>, %arg5: memref<9x8x3xbf16, #tpu.memory_space<vmem>>, %arg6: memref<8x1xf32, #tpu.memory_space<vmem>>, %arg7: memref<1x8x64xf32, #tpu.memory_space<vmem>>) attributes {dimension_semantics = [#tpu.dimension_semantics<parallel>], iteration_bounds = array<i64: 2>, scalar_prefetch = 0 : i64, scratch_operands = 0 : i64, tpu.core_type = #tpu.core_type<tc>, window_params = [{transform_indices = @transform_0, window_bounds = array<i64: 1, 3, 9, 9>}, {transform_indices = @transform_1, window_bounds = array<i64: 1, 3, 9, 9>}, {transform_indices = @transform_2, window_bounds = array<i64: 1, 3, 9, 9>}, {transform_indices = @transform_3, window_bounds = array<i64: 1, 3, 9, 9>}, {pipeline_mode = #tpu.pipeline_mode<synchronous>, transform_indices = @transform_4, window_bounds = array<i64: 9, 8, 3>}, {pipeline_mode = #tpu.pipeline_mode<synchronous>, transform_indices = @transform_5, window_bounds = array<i64: 8, 1>}, {transform_indices = @transform_6, window_bounds = array<i64: 1, 8, 64>}]} {
    %cst = arith.constant 0.000000e+00 : f32
    %0 = vector.broadcast %cst : f32 to vector<8x64xf32>
    %c0 = arith.constant 0 : index
    %c0_0 = arith.constant 0 : index
    %c0_1 = arith.constant 0 : index
    %c0_2 = arith.constant 0 : index
    %1 = vector.load %arg1[%c0, %c0_0, %c0_1, %c0_2] : memref<1x3x9x9xbf16, #tpu.memory_space<vmem>>, vector<1x3x8x8xbf16>
    %2 = vector.shape_cast %1 : vector<1x3x8x8xbf16> to vector<3x8x8xbf16>
    %c0_3 = arith.constant 0 : index
    %c0_4 = arith.constant 0 : index
    %c0_5 = arith.constant 0 : index
    %3 = vector.load %arg5[%c0_3, %c0_4, %c0_5] : memref<9x8x3xbf16, #tpu.memory_space<vmem>>, vector<1x8x3xbf16>
    %4 = vector.shape_cast %3 : vector<1x8x3xbf16> to vector<8x3xbf16>
    %5 = vector.shape_cast %2 : vector<3x8x8xbf16> to vector<3x64xbf16>
    %cst_6 = arith.constant dense<0.000000e+00> : vector<8x64xf32>
    %6 = tpu.matmul %4, %5, %cst_6 {dimension_numbers = #tpu.dot_dimension_numbers<[1], [0], [0], [1], [0, 0, 1, 1], [], []>} : vector<8x3xbf16>, vector<3x64xbf16>, vector<8x64xf32> -> vector<8x64xf32>
    %7 = arith.addf %0, %6 : vector<8x64xf32>
    %c0_7 = arith.constant 0 : index
    %c0_8 = arith.constant 0 : index
    %c0_9 = arith.constant 0 : index
    %c0_10 = arith.constant 0 : index
    %8 = vector.load %arg2[%c0_7, %c0_8, %c0_9, %c0_10] : memref<1x3x9x9xbf16, #tpu.memory_space<vmem>>, vector<1x3x8x8xbf16>
    %9 = vector.shape_cast %8 : vector<1x3x8x8xbf16> to vector<3x8x8xbf16>
    %c1 = arith.constant 1 : index
    %c0_11 = arith.constant 0 : index
    %c0_12 = arith.constant 0 : index
    %10 = vector.load %arg5[%c1, %c0_11, %c0_12] : memref<9x8x3xbf16, #tpu.memory_space<vmem>>, vector<1x8x3xbf16>
    %11 = vector.shape_cast %10 : vector<1x8x3xbf16> to vector<8x3xbf16>
    %12 = vector.shape_cast %9 : vector<3x8x8xbf16> to vector<3x64xbf16>
    %cst_13 = arith.constant dense<0.000000e+00> : vector<8x64xf32>
    %13 = tpu.matmul %11, %12, %cst_13 {dimension_numbers = #tpu.dot_dimension_numbers<[1], [0], [0], [1], [0, 0, 1, 1], [], []>} : vector<8x3xbf16>, vector<3x64xbf16>, vector<8x64xf32> -> vector<8x64xf32>
    %14 = arith.addf %7, %13 : vector<8x64xf32>
    %c0_14 = arith.constant 0 : index
    %c0_15 = arith.constant 0 : index
    %c0_16 = arith.constant 0 : index
    %c1_17 = arith.constant 1 : index
    %15 = vector.load %arg1[%c0_14, %c0_15, %c0_16, %c1_17] : memref<1x3x9x9xbf16, #tpu.memory_space<vmem>>, vector<1x3x8x8xbf16>
    %16 = vector.shape_cast %15 : vector<1x3x8x8xbf16> to vector<3x8x8xbf16>
    %c2 = arith.constant 2 : index
    %c0_18 = arith.constant 0 : index
    %c0_19 = arith.constant 0 : index
    %17 = vector.load %arg5[%c2, %c0_18, %c0_19] : memref<9x8x3xbf16, #tpu.memory_space<vmem>>, vector<1x8x3xbf16>
    %18 = vector.shape_cast %17 : vector<1x8x3xbf16> to vector<8x3xbf16>
    %19 = vector.shape_cast %16 : vector<3x8x8xbf16> to vector<3x64xbf16>
    %cst_20 = arith.constant dense<0.000000e+00> : vector<8x64xf32>
    %20 = tpu.matmul %18, %19, %cst_20 {dimension_numbers = #tpu.dot_dimension_numbers<[1], [0], [0], [1], [0, 0, 1, 1], [], []>} : vector<8x3xbf16>, vector<3x64xbf16>, vector<8x64xf32> -> vector<8x64xf32>
    %21 = arith.addf %14, %20 : vector<8x64xf32>
    %c0_21 = arith.constant 0 : index
    %c0_22 = arith.constant 0 : index
    %c0_23 = arith.constant 0 : index
    %c0_24 = arith.constant 0 : index
    %22 = vector.load %arg3[%c0_21, %c0_22, %c0_23, %c0_24] : memref<1x3x9x9xbf16, #tpu.memory_space<vmem>>, vector<1x3x8x8xbf16>
    %23 = vector.shape_cast %22 : vector<1x3x8x8xbf16> to vector<3x8x8xbf16>
    %c3 = arith.constant 3 : index
    %c0_25 = arith.constant 0 : index
    %c0_26 = arith.constant 0 : index
    %24 = vector.load %arg5[%c3, %c0_25, %c0_26] : memref<9x8x3xbf16, #tpu.memory_space<vmem>>, vector<1x8x3xbf16>
    %25 = vector.shape_cast %24 : vector<1x8x3xbf16> to vector<8x3xbf16>
    %26 = vector.shape_cast %23 : vector<3x8x8xbf16> to vector<3x64xbf16>
    %cst_27 = arith.constant dense<0.000000e+00> : vector<8x64xf32>
    %27 = tpu.matmul %25, %26, %cst_27 {dimension_numbers = #tpu.dot_dimension_numbers<[1], [0], [0], [1], [0, 0, 1, 1], [], []>} : vector<8x3xbf16>, vector<3x64xbf16>, vector<8x64xf32> -> vector<8x64xf32>
    %28 = arith.addf %21, %27 : vector<8x64xf32>
    %c0_28 = arith.constant 0 : index
    %c0_29 = arith.constant 0 : index
    %c0_30 = arith.constant 0 : index
    %c0_31 = arith.constant 0 : index
    %29 = vector.load %arg4[%c0_28, %c0_29, %c0_30, %c0_31] : memref<1x3x9x9xbf16, #tpu.memory_space<vmem>>, vector<1x3x8x8xbf16>
    %30 = vector.shape_cast %29 : vector<1x3x8x8xbf16> to vector<3x8x8xbf16>
    %c4 = arith.constant 4 : index
    %c0_32 = arith.constant 0 : index
    %c0_33 = arith.constant 0 : index
    %31 = vector.load %arg5[%c4, %c0_32, %c0_33] : memref<9x8x3xbf16, #tpu.memory_space<vmem>>, vector<1x8x3xbf16>
    %32 = vector.shape_cast %31 : vector<1x8x3xbf16> to vector<8x3xbf16>
    %33 = vector.shape_cast %30 : vector<3x8x8xbf16> to vector<3x64xbf16>
    %cst_34 = arith.constant dense<0.000000e+00> : vector<8x64xf32>
    %34 = tpu.matmul %32, %33, %cst_34 {dimension_numbers = #tpu.dot_dimension_numbers<[1], [0], [0], [1], [0, 0, 1, 1], [], []>} : vector<8x3xbf16>, vector<3x64xbf16>, vector<8x64xf32> -> vector<8x64xf32>
    %35 = arith.addf %28, %34 : vector<8x64xf32>
    %c0_35 = arith.constant 0 : index
    %c0_36 = arith.constant 0 : index
    %c0_37 = arith.constant 0 : index
    %c1_38 = arith.constant 1 : index
    %36 = vector.load %arg3[%c0_35, %c0_36, %c0_37, %c1_38] : memref<1x3x9x9xbf16, #tpu.memory_space<vmem>>, vector<1x3x8x8xbf16>
    %37 = vector.shape_cast %36 : vector<1x3x8x8xbf16> to vector<3x8x8xbf16>
    %c5 = arith.constant 5 : index
    %c0_39 = arith.constant 0 : index
    %c0_40 = arith.constant 0 : index
    %38 = vector.load %arg5[%c5, %c0_39, %c0_40] : memref<9x8x3xbf16, #tpu.memory_space<vmem>>, vector<1x8x3xbf16>
    %39 = vector.shape_cast %38 : vector<1x8x3xbf16> to vector<8x3xbf16>
    %40 = vector.shape_cast %37 : vector<3x8x8xbf16> to vector<3x64xbf16>
    %cst_41 = arith.constant dense<0.000000e+00> : vector<8x64xf32>
    %41 = tpu.matmul %39, %40, %cst_41 {dimension_numbers = #tpu.dot_dimension_numbers<[1], [0], [0], [1], [0, 0, 1, 1], [], []>} : vector<8x3xbf16>, vector<3x64xbf16>, vector<8x64xf32> -> vector<8x64xf32>
    %42 = arith.addf %35, %41 : vector<8x64xf32>
    %c0_42 = arith.constant 0 : index
    %c0_43 = arith.constant 0 : index
    %c1_44 = arith.constant 1 : index
    %c0_45 = arith.constant 0 : index
    %43 = vector.load %arg1[%c0_42, %c0_43, %c1_44, %c0_45] : memref<1x3x9x9xbf16, #tpu.memory_space<vmem>>, vector<1x3x8x8xbf16>
    %44 = vector.shape_cast %43 : vector<1x3x8x8xbf16> to vector<3x8x8xbf16>
    %c6 = arith.constant 6 : index
    %c0_46 = arith.constant 0 : index
    %c0_47 = arith.constant 0 : index
    %45 = vector.load %arg5[%c6, %c0_46, %c0_47] : memref<9x8x3xbf16, #tpu.memory_space<vmem>>, vector<1x8x3xbf16>
    %46 = vector.shape_cast %45 : vector<1x8x3xbf16> to vector<8x3xbf16>
    %47 = vector.shape_cast %44 : vector<3x8x8xbf16> to vector<3x64xbf16>
    %cst_48 = arith.constant dense<0.000000e+00> : vector<8x64xf32>
    %48 = tpu.matmul %46, %47, %cst_48 {dimension_numbers = #tpu.dot_dimension_numbers<[1], [0], [0], [1], [0, 0, 1, 1], [], []>} : vector<8x3xbf16>, vector<3x64xbf16>, vector<8x64xf32> -> vector<8x64xf32>
    %49 = arith.addf %42, %48 : vector<8x64xf32>
    %c0_49 = arith.constant 0 : index
    %c0_50 = arith.constant 0 : index
    %c1_51 = arith.constant 1 : index
    %c0_52 = arith.constant 0 : index
    %50 = vector.load %arg2[%c0_49, %c0_50, %c1_51, %c0_52] : memref<1x3x9x9xbf16, #tpu.memory_space<vmem>>, vector<1x3x8x8xbf16>
    %51 = vector.shape_cast %50 : vector<1x3x8x8xbf16> to vector<3x8x8xbf16>
    %c7 = arith.constant 7 : index
    %c0_53 = arith.constant 0 : index
    %c0_54 = arith.constant 0 : index
    %52 = vector.load %arg5[%c7, %c0_53, %c0_54] : memref<9x8x3xbf16, #tpu.memory_space<vmem>>, vector<1x8x3xbf16>
    %53 = vector.shape_cast %52 : vector<1x8x3xbf16> to vector<8x3xbf16>
    %54 = vector.shape_cast %51 : vector<3x8x8xbf16> to vector<3x64xbf16>
    %cst_55 = arith.constant dense<0.000000e+00> : vector<8x64xf32>
    %55 = tpu.matmul %53, %54, %cst_55 {dimension_numbers = #tpu.dot_dimension_numbers<[1], [0], [0], [1], [0, 0, 1, 1], [], []>} : vector<8x3xbf16>, vector<3x64xbf16>, vector<8x64xf32> -> vector<8x64xf32>
    %56 = arith.addf %49, %55 : vector<8x64xf32>
    %c0_56 = arith.constant 0 : index
    %c0_57 = arith.constant 0 : index
    %c1_58 = arith.constant 1 : index
    %c1_59 = arith.constant 1 : index
    %57 = vector.load %arg1[%c0_56, %c0_57, %c1_58, %c1_59] : memref<1x3x9x9xbf16, #tpu.memory_space<vmem>>, vector<1x3x8x8xbf16>
    %58 = vector.shape_cast %57 : vector<1x3x8x8xbf16> to vector<3x8x8xbf16>
    %c8 = arith.constant 8 : index
    %c0_60 = arith.constant 0 : index
    %c0_61 = arith.constant 0 : index
    %59 = vector.load %arg5[%c8, %c0_60, %c0_61] : memref<9x8x3xbf16, #tpu.memory_space<vmem>>, vector<1x8x3xbf16>
    %60 = vector.shape_cast %59 : vector<1x8x3xbf16> to vector<8x3xbf16>
    %61 = vector.shape_cast %58 : vector<3x8x8xbf16> to vector<3x64xbf16>
    %cst_62 = arith.constant dense<0.000000e+00> : vector<8x64xf32>
    %62 = tpu.matmul %60, %61, %cst_62 {dimension_numbers = #tpu.dot_dimension_numbers<[1], [0], [0], [1], [0, 0, 1, 1], [], []>} : vector<8x3xbf16>, vector<3x64xbf16>, vector<8x64xf32> -> vector<8x64xf32>
    %63 = arith.addf %56, %62 : vector<8x64xf32>
    %c0_63 = arith.constant 0 : index
    %c0_64 = arith.constant 0 : index
    %64 = vector.load %arg6[%c0_63, %c0_64] : memref<8x1xf32, #tpu.memory_space<vmem>>, vector<8x1xf32>
    %65 = vector.broadcast %64 : vector<8x1xf32> to vector<8x64xf32>
    %66 = arith.addf %63, %65 : vector<8x64xf32>
    %cst_65 = arith.constant 0.000000e+00 : f32
    %67 = vector.broadcast %cst_65 : f32 to vector<8x64xf32>
    %68 = arith.maximumf %66, %67 : vector<8x64xf32>
    %c0_66 = arith.constant 0 : index
    %c0_67 = arith.constant 0 : index
    %c0_68 = arith.constant 0 : index
    %69 = vector.load %arg7[%c0_66, %c0_67, %c0_68] : memref<1x8x64xf32, #tpu.memory_space<vmem>>, vector<1x8x64xf32>
    %70 = vector.shape_cast %69 : vector<1x8x64xf32> to vector<8x64xf32>
    %71 = vector.shape_cast %68 : vector<8x64xf32> to vector<1x8x64xf32>
    tpu.vector_store %arg7[%c0_66, %c0_67, %c0_68], %71 {strides = array<i32>} : memref<1x8x64xf32, #tpu.memory_space<vmem>>, vector<1x8x64xf32>,
    return
  }
  func.func @transform_0(%arg0: i32) -> (i32, i32, i32, i32) {
    %c0_i32 = arith.constant 0 : i32
    %c0_i32_0 = arith.constant 0 : i32
    %c0_i32_1 = arith.constant 0 : i32
    %c0_i32_2 = arith.constant 0 : i32
    return %arg0, %c0_i32, %c0_i32_0, %c0_i32_1 : i32, i32, i32, i32
  }
  func.func @transform_1(%arg0: i32) -> (i32, i32, i32, i32) {
    %c0_i32 = arith.constant 0 : i32
    %c0_i32_0 = arith.constant 0 : i32
    %c0_i32_1 = arith.constant 0 : i32
    %c0_i32_2 = arith.constant 0 : i32
    return %arg0, %c0_i32, %c0_i32_0, %c0_i32_1 : i32, i32, i32, i32
  }
  func.func @transform_2(%arg0: i32) -> (i32, i32, i32, i32) {
    %c0_i32 = arith.constant 0 : i32
    %c0_i32_0 = arith.constant 0 : i32
    %c0_i32_1 = arith.constant 0 : i32
    %c0_i32_2 = arith.constant 0 : i32
    return %arg0, %c0_i32, %c0_i32_0, %c0_i32_1 : i32, i32, i32, i32
  }
  func.func @transform_3(%arg0: i32) -> (i32, i32, i32, i32) {
    %c0_i32 = arith.constant 0 : i32
    %c0_i32_0 = arith.constant 0 : i32
    %c0_i32_1 = arith.constant 0 : i32
    %c0_i32_2 = arith.constant 0 : i32
    return %arg0, %c0_i32, %c0_i32_0, %c0_i32_1 : i32, i32, i32, i32
  }
  func.func @transform_4(%arg0: i32) -> (i32, i32, i32) {
    %c0_i32 = arith.constant 0 : i32
    %c0_i32_0 = arith.constant 0 : i32
    %c0_i32_1 = arith.constant 0 : i32
    %c0_i32_2 = arith.constant 0 : i32
    return %c0_i32, %c0_i32_0, %c0_i32_1 : i32, i32, i32
  }
  func.func @transform_5(%arg0: i32) -> (i32, i32) {
    %c0_i32 = arith.constant 0 : i32
    %c0_i32_0 = arith.constant 0 : i32
    %c0_i32_1 = arith.constant 0 : i32
    return %c0_i32, %c0_i32_0 : i32, i32
  }
  func.func @transform_6(%arg0: i32) -> (i32, i32, i32) {
    %c0_i32 = arith.constant 0 : i32
    %c0_i32_0 = arith.constant 0 : i32
    %c0_i32_1 = arith.constant 0 : i32
    return %arg0, %c0_i32, %c0_i32_0 : i32, i32, i32
  }
}

module attributes {stable_mosaic.version = 11 : i64} {
  func.func @_conv3x3_s2_kernel(%arg0: i32, %arg1: memref<1x16x3x3xbf16, #tpu.memory_space<vmem>>, %arg2: memref<1x16x3x3xbf16, #tpu.memory_space<vmem>>, %arg3: memref<1x16x3x3xbf16, #tpu.memory_space<vmem>>, %arg4: memref<1x16x3x3xbf16, #tpu.memory_space<vmem>>, %arg5: memref<9x32x16xbf16, #tpu.memory_space<vmem>>, %arg6: memref<32x1xf32, #tpu.memory_space<vmem>>, %arg7: memref<1x32x4xf32, #tpu.memory_space<vmem>>) attributes {dimension_semantics = [#tpu.dimension_semantics<parallel>], iteration_bounds = array<i64: 2>, scalar_prefetch = 0 : i64, scratch_operands = 0 : i64, tpu.core_type = #tpu.core_type<tc>, window_params = [{transform_indices = @transform_0, window_bounds = array<i64: 1, 16, 3, 3>}, {transform_indices = @transform_1, window_bounds = array<i64: 1, 16, 3, 3>}, {transform_indices = @transform_2, window_bounds = array<i64: 1, 16, 3, 3>}, {transform_indices = @transform_3, window_bounds = array<i64: 1, 16, 3, 3>}, {pipeline_mode = #tpu.pipeline_mode<synchronous>, transform_indices = @transform_4, window_bounds = array<i64: 9, 32, 16>}, {pipeline_mode = #tpu.pipeline_mode<synchronous>, transform_indices = @transform_5, window_bounds = array<i64: 32, 1>}, {transform_indices = @transform_6, window_bounds = array<i64: 1, 32, 4>}]} {
    %cst = arith.constant 0.000000e+00 : f32
    %0 = vector.broadcast %cst : f32 to vector<32x4xf32>
    %c0 = arith.constant 0 : index
    %c0_0 = arith.constant 0 : index
    %c0_1 = arith.constant 0 : index
    %c0_2 = arith.constant 0 : index
    %1 = vector.load %arg1[%c0, %c0_0, %c0_1, %c0_2] : memref<1x16x3x3xbf16, #tpu.memory_space<vmem>>, vector<1x16x2x2xbf16>
    %2 = vector.shape_cast %1 : vector<1x16x2x2xbf16> to vector<16x2x2xbf16>
    %c0_3 = arith.constant 0 : index
    %c0_4 = arith.constant 0 : index
    %c0_5 = arith.constant 0 : index
    %3 = vector.load %arg5[%c0_3, %c0_4, %c0_5] : memref<9x32x16xbf16, #tpu.memory_space<vmem>>, vector<1x32x16xbf16>
    %4 = vector.shape_cast %3 : vector<1x32x16xbf16> to vector<32x16xbf16>
    %5 = vector.shape_cast %2 : vector<16x2x2xbf16> to vector<16x4xbf16>
    %cst_6 = arith.constant dense<0.000000e+00> : vector<32x4xf32>
    %6 = tpu.matmul %4, %5, %cst_6 {dimension_numbers = #tpu.dot_dimension_numbers<[1], [0], [0], [1], [0, 0, 1, 1], [], []>} : vector<32x16xbf16>, vector<16x4xbf16>, vector<32x4xf32> -> vector<32x4xf32>
    %7 = arith.addf %0, %6 : vector<32x4xf32>
    %c0_7 = arith.constant 0 : index
    %c0_8 = arith.constant 0 : index
    %c0_9 = arith.constant 0 : index
    %c0_10 = arith.constant 0 : index
    %8 = vector.load %arg2[%c0_7, %c0_8, %c0_9, %c0_10] : memref<1x16x3x3xbf16, #tpu.memory_space<vmem>>, vector<1x16x2x2xbf16>
    %9 = vector.shape_cast %8 : vector<1x16x2x2xbf16> to vector<16x2x2xbf16>
    %c1 = arith.constant 1 : index
    %c0_11 = arith.constant 0 : index
    %c0_12 = arith.constant 0 : index
    %10 = vector.load %arg5[%c1, %c0_11, %c0_12] : memref<9x32x16xbf16, #tpu.memory_space<vmem>>, vector<1x32x16xbf16>
    %11 = vector.shape_cast %10 : vector<1x32x16xbf16> to vector<32x16xbf16>
    %12 = vector.shape_cast %9 : vector<16x2x2xbf16> to vector<16x4xbf16>
    %cst_13 = arith.constant dense<0.000000e+00> : vector<32x4xf32>
    %13 = tpu.matmul %11, %12, %cst_13 {dimension_numbers = #tpu.dot_dimension_numbers<[1], [0], [0], [1], [0, 0, 1, 1], [], []>} : vector<32x16xbf16>, vector<16x4xbf16>, vector<32x4xf32> -> vector<32x4xf32>
    %14 = arith.addf %7, %13 : vector<32x4xf32>
    %c0_14 = arith.constant 0 : index
    %c0_15 = arith.constant 0 : index
    %c0_16 = arith.constant 0 : index
    %c1_17 = arith.constant 1 : index
    %15 = vector.load %arg1[%c0_14, %c0_15, %c0_16, %c1_17] : memref<1x16x3x3xbf16, #tpu.memory_space<vmem>>, vector<1x16x2x2xbf16>
    %16 = vector.shape_cast %15 : vector<1x16x2x2xbf16> to vector<16x2x2xbf16>
    %c2 = arith.constant 2 : index
    %c0_18 = arith.constant 0 : index
    %c0_19 = arith.constant 0 : index
    %17 = vector.load %arg5[%c2, %c0_18, %c0_19] : memref<9x32x16xbf16, #tpu.memory_space<vmem>>, vector<1x32x16xbf16>
    %18 = vector.shape_cast %17 : vector<1x32x16xbf16> to vector<32x16xbf16>
    %19 = vector.shape_cast %16 : vector<16x2x2xbf16> to vector<16x4xbf16>
    %cst_20 = arith.constant dense<0.000000e+00> : vector<32x4xf32>
    %20 = tpu.matmul %18, %19, %cst_20 {dimension_numbers = #tpu.dot_dimension_numbers<[1], [0], [0], [1], [0, 0, 1, 1], [], []>} : vector<32x16xbf16>, vector<16x4xbf16>, vector<32x4xf32> -> vector<32x4xf32>
    %21 = arith.addf %14, %20 : vector<32x4xf32>
    %c0_21 = arith.constant 0 : index
    %c0_22 = arith.constant 0 : index
    %c0_23 = arith.constant 0 : index
    %c0_24 = arith.constant 0 : index
    %22 = vector.load %arg3[%c0_21, %c0_22, %c0_23, %c0_24] : memref<1x16x3x3xbf16, #tpu.memory_space<vmem>>, vector<1x16x2x2xbf16>
    %23 = vector.shape_cast %22 : vector<1x16x2x2xbf16> to vector<16x2x2xbf16>
    %c3 = arith.constant 3 : index
    %c0_25 = arith.constant 0 : index
    %c0_26 = arith.constant 0 : index
    %24 = vector.load %arg5[%c3, %c0_25, %c0_26] : memref<9x32x16xbf16, #tpu.memory_space<vmem>>, vector<1x32x16xbf16>
    %25 = vector.shape_cast %24 : vector<1x32x16xbf16> to vector<32x16xbf16>
    %26 = vector.shape_cast %23 : vector<16x2x2xbf16> to vector<16x4xbf16>
    %cst_27 = arith.constant dense<0.000000e+00> : vector<32x4xf32>
    %27 = tpu.matmul %25, %26, %cst_27 {dimension_numbers = #tpu.dot_dimension_numbers<[1], [0], [0], [1], [0, 0, 1, 1], [], []>} : vector<32x16xbf16>, vector<16x4xbf16>, vector<32x4xf32> -> vector<32x4xf32>
    %28 = arith.addf %21, %27 : vector<32x4xf32>
    %c0_28 = arith.constant 0 : index
    %c0_29 = arith.constant 0 : index
    %c0_30 = arith.constant 0 : index
    %c0_31 = arith.constant 0 : index
    %29 = vector.load %arg4[%c0_28, %c0_29, %c0_30, %c0_31] : memref<1x16x3x3xbf16, #tpu.memory_space<vmem>>, vector<1x16x2x2xbf16>
    %30 = vector.shape_cast %29 : vector<1x16x2x2xbf16> to vector<16x2x2xbf16>
    %c4 = arith.constant 4 : index
    %c0_32 = arith.constant 0 : index
    %c0_33 = arith.constant 0 : index
    %31 = vector.load %arg5[%c4, %c0_32, %c0_33] : memref<9x32x16xbf16, #tpu.memory_space<vmem>>, vector<1x32x16xbf16>
    %32 = vector.shape_cast %31 : vector<1x32x16xbf16> to vector<32x16xbf16>
    %33 = vector.shape_cast %30 : vector<16x2x2xbf16> to vector<16x4xbf16>
    %cst_34 = arith.constant dense<0.000000e+00> : vector<32x4xf32>
    %34 = tpu.matmul %32, %33, %cst_34 {dimension_numbers = #tpu.dot_dimension_numbers<[1], [0], [0], [1], [0, 0, 1, 1], [], []>} : vector<32x16xbf16>, vector<16x4xbf16>, vector<32x4xf32> -> vector<32x4xf32>
    %35 = arith.addf %28, %34 : vector<32x4xf32>
    %c0_35 = arith.constant 0 : index
    %c0_36 = arith.constant 0 : index
    %c0_37 = arith.constant 0 : index
    %c1_38 = arith.constant 1 : index
    %36 = vector.load %arg3[%c0_35, %c0_36, %c0_37, %c1_38] : memref<1x16x3x3xbf16, #tpu.memory_space<vmem>>, vector<1x16x2x2xbf16>
    %37 = vector.shape_cast %36 : vector<1x16x2x2xbf16> to vector<16x2x2xbf16>
    %c5 = arith.constant 5 : index
    %c0_39 = arith.constant 0 : index
    %c0_40 = arith.constant 0 : index
    %38 = vector.load %arg5[%c5, %c0_39, %c0_40] : memref<9x32x16xbf16, #tpu.memory_space<vmem>>, vector<1x32x16xbf16>
    %39 = vector.shape_cast %38 : vector<1x32x16xbf16> to vector<32x16xbf16>
    %40 = vector.shape_cast %37 : vector<16x2x2xbf16> to vector<16x4xbf16>
    %cst_41 = arith.constant dense<0.000000e+00> : vector<32x4xf32>
    %41 = tpu.matmul %39, %40, %cst_41 {dimension_numbers = #tpu.dot_dimension_numbers<[1], [0], [0], [1], [0, 0, 1, 1], [], []>} : vector<32x16xbf16>, vector<16x4xbf16>, vector<32x4xf32> -> vector<32x4xf32>
    %42 = arith.addf %35, %41 : vector<32x4xf32>
    %c0_42 = arith.constant 0 : index
    %c0_43 = arith.constant 0 : index
    %c1_44 = arith.constant 1 : index
    %c0_45 = arith.constant 0 : index
    %43 = vector.load %arg1[%c0_42, %c0_43, %c1_44, %c0_45] : memref<1x16x3x3xbf16, #tpu.memory_space<vmem>>, vector<1x16x2x2xbf16>
    %44 = vector.shape_cast %43 : vector<1x16x2x2xbf16> to vector<16x2x2xbf16>
    %c6 = arith.constant 6 : index
    %c0_46 = arith.constant 0 : index
    %c0_47 = arith.constant 0 : index
    %45 = vector.load %arg5[%c6, %c0_46, %c0_47] : memref<9x32x16xbf16, #tpu.memory_space<vmem>>, vector<1x32x16xbf16>
    %46 = vector.shape_cast %45 : vector<1x32x16xbf16> to vector<32x16xbf16>
    %47 = vector.shape_cast %44 : vector<16x2x2xbf16> to vector<16x4xbf16>
    %cst_48 = arith.constant dense<0.000000e+00> : vector<32x4xf32>
    %48 = tpu.matmul %46, %47, %cst_48 {dimension_numbers = #tpu.dot_dimension_numbers<[1], [0], [0], [1], [0, 0, 1, 1], [], []>} : vector<32x16xbf16>, vector<16x4xbf16>, vector<32x4xf32> -> vector<32x4xf32>
    %49 = arith.addf %42, %48 : vector<32x4xf32>
    %c0_49 = arith.constant 0 : index
    %c0_50 = arith.constant 0 : index
    %c1_51 = arith.constant 1 : index
    %c0_52 = arith.constant 0 : index
    %50 = vector.load %arg2[%c0_49, %c0_50, %c1_51, %c0_52] : memref<1x16x3x3xbf16, #tpu.memory_space<vmem>>, vector<1x16x2x2xbf16>
    %51 = vector.shape_cast %50 : vector<1x16x2x2xbf16> to vector<16x2x2xbf16>
    %c7 = arith.constant 7 : index
    %c0_53 = arith.constant 0 : index
    %c0_54 = arith.constant 0 : index
    %52 = vector.load %arg5[%c7, %c0_53, %c0_54] : memref<9x32x16xbf16, #tpu.memory_space<vmem>>, vector<1x32x16xbf16>
    %53 = vector.shape_cast %52 : vector<1x32x16xbf16> to vector<32x16xbf16>
    %54 = vector.shape_cast %51 : vector<16x2x2xbf16> to vector<16x4xbf16>
    %cst_55 = arith.constant dense<0.000000e+00> : vector<32x4xf32>
    %55 = tpu.matmul %53, %54, %cst_55 {dimension_numbers = #tpu.dot_dimension_numbers<[1], [0], [0], [1], [0, 0, 1, 1], [], []>} : vector<32x16xbf16>, vector<16x4xbf16>, vector<32x4xf32> -> vector<32x4xf32>
    %56 = arith.addf %49, %55 : vector<32x4xf32>
    %c0_56 = arith.constant 0 : index
    %c0_57 = arith.constant 0 : index
    %c1_58 = arith.constant 1 : index
    %c1_59 = arith.constant 1 : index
    %57 = vector.load %arg1[%c0_56, %c0_57, %c1_58, %c1_59] : memref<1x16x3x3xbf16, #tpu.memory_space<vmem>>, vector<1x16x2x2xbf16>
    %58 = vector.shape_cast %57 : vector<1x16x2x2xbf16> to vector<16x2x2xbf16>
    %c8 = arith.constant 8 : index
    %c0_60 = arith.constant 0 : index
    %c0_61 = arith.constant 0 : index
    %59 = vector.load %arg5[%c8, %c0_60, %c0_61] : memref<9x32x16xbf16, #tpu.memory_space<vmem>>, vector<1x32x16xbf16>
    %60 = vector.shape_cast %59 : vector<1x32x16xbf16> to vector<32x16xbf16>
    %61 = vector.shape_cast %58 : vector<16x2x2xbf16> to vector<16x4xbf16>
    %cst_62 = arith.constant dense<0.000000e+00> : vector<32x4xf32>
    %62 = tpu.matmul %60, %61, %cst_62 {dimension_numbers = #tpu.dot_dimension_numbers<[1], [0], [0], [1], [0, 0, 1, 1], [], []>} : vector<32x16xbf16>, vector<16x4xbf16>, vector<32x4xf32> -> vector<32x4xf32>
    %63 = arith.addf %56, %62 : vector<32x4xf32>
    %c0_63 = arith.constant 0 : index
    %c0_64 = arith.constant 0 : index
    %64 = vector.load %arg6[%c0_63, %c0_64] : memref<32x1xf32, #tpu.memory_space<vmem>>, vector<32x1xf32>
    %65 = vector.broadcast %64 : vector<32x1xf32> to vector<32x4xf32>
    %66 = arith.addf %63, %65 : vector<32x4xf32>
    %cst_65 = arith.constant 0.000000e+00 : f32
    %67 = vector.broadcast %cst_65 : f32 to vector<32x4xf32>
    %68 = arith.maximumf %66, %67 : vector<32x4xf32>
    %c0_66 = arith.constant 0 : index
    %c0_67 = arith.constant 0 : index
    %c0_68 = arith.constant 0 : index
    %69 = vector.load %arg7[%c0_66, %c0_67, %c0_68] : memref<1x32x4xf32, #tpu.memory_space<vmem>>, vector<1x32x4xf32>
    %70 = vector.shape_cast %69 : vector<1x32x4xf32> to vector<32x4xf32>
    %71 = vector.shape_cast %68 : vector<32x4xf32> to vector<1x32x4xf32>
    tpu.vector_store %arg7[%c0_66, %c0_67, %c0_68], %71 {strides = array<i32>} : memref<1x32x4xf32, #tpu.memory_space<vmem>>, vector<1x32x4xf32>,
    return
  }
  func.func @transform_0(%arg0: i32) -> (i32, i32, i32, i32) {
    %c0_i32 = arith.constant 0 : i32
    %c0_i32_0 = arith.constant 0 : i32
    %c0_i32_1 = arith.constant 0 : i32
    %c0_i32_2 = arith.constant 0 : i32
    return %arg0, %c0_i32, %c0_i32_0, %c0_i32_1 : i32, i32, i32, i32
  }
  func.func @transform_1(%arg0: i32) -> (i32, i32, i32, i32) {
    %c0_i32 = arith.constant 0 : i32
    %c0_i32_0 = arith.constant 0 : i32
    %c0_i32_1 = arith.constant 0 : i32
    %c0_i32_2 = arith.constant 0 : i32
    return %arg0, %c0_i32, %c0_i32_0, %c0_i32_1 : i32, i32, i32, i32
  }
  func.func @transform_2(%arg0: i32) -> (i32, i32, i32, i32) {
    %c0_i32 = arith.constant 0 : i32
    %c0_i32_0 = arith.constant 0 : i32
    %c0_i32_1 = arith.constant 0 : i32
    %c0_i32_2 = arith.constant 0 : i32
    return %arg0, %c0_i32, %c0_i32_0, %c0_i32_1 : i32, i32, i32, i32
  }
  func.func @transform_3(%arg0: i32) -> (i32, i32, i32, i32) {
    %c0_i32 = arith.constant 0 : i32
    %c0_i32_0 = arith.constant 0 : i32
    %c0_i32_1 = arith.constant 0 : i32
    %c0_i32_2 = arith.constant 0 : i32
    return %arg0, %c0_i32, %c0_i32_0, %c0_i32_1 : i32, i32, i32, i32
  }
  func.func @transform_4(%arg0: i32) -> (i32, i32, i32) {
    %c0_i32 = arith.constant 0 : i32
    %c0_i32_0 = arith.constant 0 : i32
    %c0_i32_1 = arith.constant 0 : i32
    %c0_i32_2 = arith.constant 0 : i32
    return %c0_i32, %c0_i32_0, %c0_i32_1 : i32, i32, i32
  }
  func.func @transform_5(%arg0: i32) -> (i32, i32) {
    %c0_i32 = arith.constant 0 : i32
    %c0_i32_0 = arith.constant 0 : i32
    %c0_i32_1 = arith.constant 0 : i32
    return %c0_i32, %c0_i32_0 : i32, i32
  }
  func.func @transform_6(%arg0: i32) -> (i32, i32, i32) {
    %c0_i32 = arith.constant 0 : i32
    %c0_i32_0 = arith.constant 0 : i32
    %c0_i32_1 = arith.constant 0 : i32
    return %arg0, %c0_i32, %c0_i32_0 : i32, i32, i32
  }
}

module attributes {stable_mosaic.version = 11 : i64} {
  func.func @_conv3x3_s2_kernel(%arg0: i32, %arg1: memref<1x8x5x5xbf16, #tpu.memory_space<vmem>>, %arg2: memref<1x8x5x5xbf16, #tpu.memory_space<vmem>>, %arg3: memref<1x8x5x5xbf16, #tpu.memory_space<vmem>>, %arg4: memref<1x8x5x5xbf16, #tpu.memory_space<vmem>>, %arg5: memref<9x16x8xbf16, #tpu.memory_space<vmem>>, %arg6: memref<16x1xf32, #tpu.memory_space<vmem>>, %arg7: memref<1x16x16xf32, #tpu.memory_space<vmem>>) attributes {dimension_semantics = [#tpu.dimension_semantics<parallel>], iteration_bounds = array<i64: 2>, scalar_prefetch = 0 : i64, scratch_operands = 0 : i64, tpu.core_type = #tpu.core_type<tc>, window_params = [{transform_indices = @transform_0, window_bounds = array<i64: 1, 8, 5, 5>}, {transform_indices = @transform_1, window_bounds = array<i64: 1, 8, 5, 5>}, {transform_indices = @transform_2, window_bounds = array<i64: 1, 8, 5, 5>}, {transform_indices = @transform_3, window_bounds = array<i64: 1, 8, 5, 5>}, {pipeline_mode = #tpu.pipeline_mode<synchronous>, transform_indices = @transform_4, window_bounds = array<i64: 9, 16, 8>}, {pipeline_mode = #tpu.pipeline_mode<synchronous>, transform_indices = @transform_5, window_bounds = array<i64: 16, 1>}, {transform_indices = @transform_6, window_bounds = array<i64: 1, 16, 16>}]} {
    %cst = arith.constant 0.000000e+00 : f32
    %0 = vector.broadcast %cst : f32 to vector<16x16xf32>
    %c0 = arith.constant 0 : index
    %c0_0 = arith.constant 0 : index
    %c0_1 = arith.constant 0 : index
    %c0_2 = arith.constant 0 : index
    %1 = vector.load %arg1[%c0, %c0_0, %c0_1, %c0_2] : memref<1x8x5x5xbf16, #tpu.memory_space<vmem>>, vector<1x8x4x4xbf16>
    %2 = vector.shape_cast %1 : vector<1x8x4x4xbf16> to vector<8x4x4xbf16>
    %c0_3 = arith.constant 0 : index
    %c0_4 = arith.constant 0 : index
    %c0_5 = arith.constant 0 : index
    %3 = vector.load %arg5[%c0_3, %c0_4, %c0_5] : memref<9x16x8xbf16, #tpu.memory_space<vmem>>, vector<1x16x8xbf16>
    %4 = vector.shape_cast %3 : vector<1x16x8xbf16> to vector<16x8xbf16>
    %5 = vector.shape_cast %2 : vector<8x4x4xbf16> to vector<8x16xbf16>
    %cst_6 = arith.constant dense<0.000000e+00> : vector<16x16xf32>
    %6 = tpu.matmul %4, %5, %cst_6 {dimension_numbers = #tpu.dot_dimension_numbers<[1], [0], [0], [1], [0, 0, 1, 1], [], []>} : vector<16x8xbf16>, vector<8x16xbf16>, vector<16x16xf32> -> vector<16x16xf32>
    %7 = arith.addf %0, %6 : vector<16x16xf32>
    %c0_7 = arith.constant 0 : index
    %c0_8 = arith.constant 0 : index
    %c0_9 = arith.constant 0 : index
    %c0_10 = arith.constant 0 : index
    %8 = vector.load %arg2[%c0_7, %c0_8, %c0_9, %c0_10] : memref<1x8x5x5xbf16, #tpu.memory_space<vmem>>, vector<1x8x4x4xbf16>
    %9 = vector.shape_cast %8 : vector<1x8x4x4xbf16> to vector<8x4x4xbf16>
    %c1 = arith.constant 1 : index
    %c0_11 = arith.constant 0 : index
    %c0_12 = arith.constant 0 : index
    %10 = vector.load %arg5[%c1, %c0_11, %c0_12] : memref<9x16x8xbf16, #tpu.memory_space<vmem>>, vector<1x16x8xbf16>
    %11 = vector.shape_cast %10 : vector<1x16x8xbf16> to vector<16x8xbf16>
    %12 = vector.shape_cast %9 : vector<8x4x4xbf16> to vector<8x16xbf16>
    %cst_13 = arith.constant dense<0.000000e+00> : vector<16x16xf32>
    %13 = tpu.matmul %11, %12, %cst_13 {dimension_numbers = #tpu.dot_dimension_numbers<[1], [0], [0], [1], [0, 0, 1, 1], [], []>} : vector<16x8xbf16>, vector<8x16xbf16>, vector<16x16xf32> -> vector<16x16xf32>
    %14 = arith.addf %7, %13 : vector<16x16xf32>
    %c0_14 = arith.constant 0 : index
    %c0_15 = arith.constant 0 : index
    %c0_16 = arith.constant 0 : index
    %c1_17 = arith.constant 1 : index
    %15 = vector.load %arg1[%c0_14, %c0_15, %c0_16, %c1_17] : memref<1x8x5x5xbf16, #tpu.memory_space<vmem>>, vector<1x8x4x4xbf16>
    %16 = vector.shape_cast %15 : vector<1x8x4x4xbf16> to vector<8x4x4xbf16>
    %c2 = arith.constant 2 : index
    %c0_18 = arith.constant 0 : index
    %c0_19 = arith.constant 0 : index
    %17 = vector.load %arg5[%c2, %c0_18, %c0_19] : memref<9x16x8xbf16, #tpu.memory_space<vmem>>, vector<1x16x8xbf16>
    %18 = vector.shape_cast %17 : vector<1x16x8xbf16> to vector<16x8xbf16>
    %19 = vector.shape_cast %16 : vector<8x4x4xbf16> to vector<8x16xbf16>
    %cst_20 = arith.constant dense<0.000000e+00> : vector<16x16xf32>
    %20 = tpu.matmul %18, %19, %cst_20 {dimension_numbers = #tpu.dot_dimension_numbers<[1], [0], [0], [1], [0, 0, 1, 1], [], []>} : vector<16x8xbf16>, vector<8x16xbf16>, vector<16x16xf32> -> vector<16x16xf32>
    %21 = arith.addf %14, %20 : vector<16x16xf32>
    %c0_21 = arith.constant 0 : index
    %c0_22 = arith.constant 0 : index
    %c0_23 = arith.constant 0 : index
    %c0_24 = arith.constant 0 : index
    %22 = vector.load %arg3[%c0_21, %c0_22, %c0_23, %c0_24] : memref<1x8x5x5xbf16, #tpu.memory_space<vmem>>, vector<1x8x4x4xbf16>
    %23 = vector.shape_cast %22 : vector<1x8x4x4xbf16> to vector<8x4x4xbf16>
    %c3 = arith.constant 3 : index
    %c0_25 = arith.constant 0 : index
    %c0_26 = arith.constant 0 : index
    %24 = vector.load %arg5[%c3, %c0_25, %c0_26] : memref<9x16x8xbf16, #tpu.memory_space<vmem>>, vector<1x16x8xbf16>
    %25 = vector.shape_cast %24 : vector<1x16x8xbf16> to vector<16x8xbf16>
    %26 = vector.shape_cast %23 : vector<8x4x4xbf16> to vector<8x16xbf16>
    %cst_27 = arith.constant dense<0.000000e+00> : vector<16x16xf32>
    %27 = tpu.matmul %25, %26, %cst_27 {dimension_numbers = #tpu.dot_dimension_numbers<[1], [0], [0], [1], [0, 0, 1, 1], [], []>} : vector<16x8xbf16>, vector<8x16xbf16>, vector<16x16xf32> -> vector<16x16xf32>
    %28 = arith.addf %21, %27 : vector<16x16xf32>
    %c0_28 = arith.constant 0 : index
    %c0_29 = arith.constant 0 : index
    %c0_30 = arith.constant 0 : index
    %c0_31 = arith.constant 0 : index
    %29 = vector.load %arg4[%c0_28, %c0_29, %c0_30, %c0_31] : memref<1x8x5x5xbf16, #tpu.memory_space<vmem>>, vector<1x8x4x4xbf16>
    %30 = vector.shape_cast %29 : vector<1x8x4x4xbf16> to vector<8x4x4xbf16>
    %c4 = arith.constant 4 : index
    %c0_32 = arith.constant 0 : index
    %c0_33 = arith.constant 0 : index
    %31 = vector.load %arg5[%c4, %c0_32, %c0_33] : memref<9x16x8xbf16, #tpu.memory_space<vmem>>, vector<1x16x8xbf16>
    %32 = vector.shape_cast %31 : vector<1x16x8xbf16> to vector<16x8xbf16>
    %33 = vector.shape_cast %30 : vector<8x4x4xbf16> to vector<8x16xbf16>
    %cst_34 = arith.constant dense<0.000000e+00> : vector<16x16xf32>
    %34 = tpu.matmul %32, %33, %cst_34 {dimension_numbers = #tpu.dot_dimension_numbers<[1], [0], [0], [1], [0, 0, 1, 1], [], []>} : vector<16x8xbf16>, vector<8x16xbf16>, vector<16x16xf32> -> vector<16x16xf32>
    %35 = arith.addf %28, %34 : vector<16x16xf32>
    %c0_35 = arith.constant 0 : index
    %c0_36 = arith.constant 0 : index
    %c0_37 = arith.constant 0 : index
    %c1_38 = arith.constant 1 : index
    %36 = vector.load %arg3[%c0_35, %c0_36, %c0_37, %c1_38] : memref<1x8x5x5xbf16, #tpu.memory_space<vmem>>, vector<1x8x4x4xbf16>
    %37 = vector.shape_cast %36 : vector<1x8x4x4xbf16> to vector<8x4x4xbf16>
    %c5 = arith.constant 5 : index
    %c0_39 = arith.constant 0 : index
    %c0_40 = arith.constant 0 : index
    %38 = vector.load %arg5[%c5, %c0_39, %c0_40] : memref<9x16x8xbf16, #tpu.memory_space<vmem>>, vector<1x16x8xbf16>
    %39 = vector.shape_cast %38 : vector<1x16x8xbf16> to vector<16x8xbf16>
    %40 = vector.shape_cast %37 : vector<8x4x4xbf16> to vector<8x16xbf16>
    %cst_41 = arith.constant dense<0.000000e+00> : vector<16x16xf32>
    %41 = tpu.matmul %39, %40, %cst_41 {dimension_numbers = #tpu.dot_dimension_numbers<[1], [0], [0], [1], [0, 0, 1, 1], [], []>} : vector<16x8xbf16>, vector<8x16xbf16>, vector<16x16xf32> -> vector<16x16xf32>
    %42 = arith.addf %35, %41 : vector<16x16xf32>
    %c0_42 = arith.constant 0 : index
    %c0_43 = arith.constant 0 : index
    %c1_44 = arith.constant 1 : index
    %c0_45 = arith.constant 0 : index
    %43 = vector.load %arg1[%c0_42, %c0_43, %c1_44, %c0_45] : memref<1x8x5x5xbf16, #tpu.memory_space<vmem>>, vector<1x8x4x4xbf16>
    %44 = vector.shape_cast %43 : vector<1x8x4x4xbf16> to vector<8x4x4xbf16>
    %c6 = arith.constant 6 : index
    %c0_46 = arith.constant 0 : index
    %c0_47 = arith.constant 0 : index
    %45 = vector.load %arg5[%c6, %c0_46, %c0_47] : memref<9x16x8xbf16, #tpu.memory_space<vmem>>, vector<1x16x8xbf16>
    %46 = vector.shape_cast %45 : vector<1x16x8xbf16> to vector<16x8xbf16>
    %47 = vector.shape_cast %44 : vector<8x4x4xbf16> to vector<8x16xbf16>
    %cst_48 = arith.constant dense<0.000000e+00> : vector<16x16xf32>
    %48 = tpu.matmul %46, %47, %cst_48 {dimension_numbers = #tpu.dot_dimension_numbers<[1], [0], [0], [1], [0, 0, 1, 1], [], []>} : vector<16x8xbf16>, vector<8x16xbf16>, vector<16x16xf32> -> vector<16x16xf32>
    %49 = arith.addf %42, %48 : vector<16x16xf32>
    %c0_49 = arith.constant 0 : index
    %c0_50 = arith.constant 0 : index
    %c1_51 = arith.constant 1 : index
    %c0_52 = arith.constant 0 : index
    %50 = vector.load %arg2[%c0_49, %c0_50, %c1_51, %c0_52] : memref<1x8x5x5xbf16, #tpu.memory_space<vmem>>, vector<1x8x4x4xbf16>
    %51 = vector.shape_cast %50 : vector<1x8x4x4xbf16> to vector<8x4x4xbf16>
    %c7 = arith.constant 7 : index
    %c0_53 = arith.constant 0 : index
    %c0_54 = arith.constant 0 : index
    %52 = vector.load %arg5[%c7, %c0_53, %c0_54] : memref<9x16x8xbf16, #tpu.memory_space<vmem>>, vector<1x16x8xbf16>
    %53 = vector.shape_cast %52 : vector<1x16x8xbf16> to vector<16x8xbf16>
    %54 = vector.shape_cast %51 : vector<8x4x4xbf16> to vector<8x16xbf16>
    %cst_55 = arith.constant dense<0.000000e+00> : vector<16x16xf32>
    %55 = tpu.matmul %53, %54, %cst_55 {dimension_numbers = #tpu.dot_dimension_numbers<[1], [0], [0], [1], [0, 0, 1, 1], [], []>} : vector<16x8xbf16>, vector<8x16xbf16>, vector<16x16xf32> -> vector<16x16xf32>
    %56 = arith.addf %49, %55 : vector<16x16xf32>
    %c0_56 = arith.constant 0 : index
    %c0_57 = arith.constant 0 : index
    %c1_58 = arith.constant 1 : index
    %c1_59 = arith.constant 1 : index
    %57 = vector.load %arg1[%c0_56, %c0_57, %c1_58, %c1_59] : memref<1x8x5x5xbf16, #tpu.memory_space<vmem>>, vector<1x8x4x4xbf16>
    %58 = vector.shape_cast %57 : vector<1x8x4x4xbf16> to vector<8x4x4xbf16>
    %c8 = arith.constant 8 : index
    %c0_60 = arith.constant 0 : index
    %c0_61 = arith.constant 0 : index
    %59 = vector.load %arg5[%c8, %c0_60, %c0_61] : memref<9x16x8xbf16, #tpu.memory_space<vmem>>, vector<1x16x8xbf16>
    %60 = vector.shape_cast %59 : vector<1x16x8xbf16> to vector<16x8xbf16>
    %61 = vector.shape_cast %58 : vector<8x4x4xbf16> to vector<8x16xbf16>
    %cst_62 = arith.constant dense<0.000000e+00> : vector<16x16xf32>
    %62 = tpu.matmul %60, %61, %cst_62 {dimension_numbers = #tpu.dot_dimension_numbers<[1], [0], [0], [1], [0, 0, 1, 1], [], []>} : vector<16x8xbf16>, vector<8x16xbf16>, vector<16x16xf32> -> vector<16x16xf32>
    %63 = arith.addf %56, %62 : vector<16x16xf32>
    %c0_63 = arith.constant 0 : index
    %c0_64 = arith.constant 0 : index
    %64 = vector.load %arg6[%c0_63, %c0_64] : memref<16x1xf32, #tpu.memory_space<vmem>>, vector<16x1xf32>
    %65 = vector.broadcast %64 : vector<16x1xf32> to vector<16x16xf32>
    %66 = arith.addf %63, %65 : vector<16x16xf32>
    %cst_65 = arith.constant 0.000000e+00 : f32
    %67 = vector.broadcast %cst_65 : f32 to vector<16x16xf32>
    %68 = arith.maximumf %66, %67 : vector<16x16xf32>
    %c0_66 = arith.constant 0 : index
    %c0_67 = arith.constant 0 : index
    %c0_68 = arith.constant 0 : index
    %69 = vector.load %arg7[%c0_66, %c0_67, %c0_68] : memref<1x16x16xf32, #tpu.memory_space<vmem>>, vector<1x16x16xf32>
    %70 = vector.shape_cast %69 : vector<1x16x16xf32> to vector<16x16xf32>
    %71 = vector.shape_cast %68 : vector<16x16xf32> to vector<1x16x16xf32>
    tpu.vector_store %arg7[%c0_66, %c0_67, %c0_68], %71 {strides = array<i32>} : memref<1x16x16xf32, #tpu.memory_space<vmem>>, vector<1x16x16xf32>,
    return
  }
  func.func @transform_0(%arg0: i32) -> (i32, i32, i32, i32) {
    %c0_i32 = arith.constant 0 : i32
    %c0_i32_0 = arith.constant 0 : i32
    %c0_i32_1 = arith.constant 0 : i32
    %c0_i32_2 = arith.constant 0 : i32
    return %arg0, %c0_i32, %c0_i32_0, %c0_i32_1 : i32, i32, i32, i32
  }
  func.func @transform_1(%arg0: i32) -> (i32, i32, i32, i32) {
    %c0_i32 = arith.constant 0 : i32
    %c0_i32_0 = arith.constant 0 : i32
    %c0_i32_1 = arith.constant 0 : i32
    %c0_i32_2 = arith.constant 0 : i32
    return %arg0, %c0_i32, %c0_i32_0, %c0_i32_1 : i32, i32, i32, i32
  }
  func.func @transform_2(%arg0: i32) -> (i32, i32, i32, i32) {
    %c0_i32 = arith.constant 0 : i32
    %c0_i32_0 = arith.constant 0 : i32
    %c0_i32_1 = arith.constant 0 : i32
    %c0_i32_2 = arith.constant 0 : i32
    return %arg0, %c0_i32, %c0_i32_0, %c0_i32_1 : i32, i32, i32, i32
  }
  func.func @transform_3(%arg0: i32) -> (i32, i32, i32, i32) {
    %c0_i32 = arith.constant 0 : i32
    %c0_i32_0 = arith.constant 0 : i32
    %c0_i32_1 = arith.constant 0 : i32
    %c0_i32_2 = arith.constant 0 : i32
    return %arg0, %c0_i32, %c0_i32_0, %c0_i32_1 : i32, i32, i32, i32
  }
  func.func @transform_4(%arg0: i32) -> (i32, i32, i32) {
    %c0_i32 = arith.constant 0 : i32
    %c0_i32_0 = arith.constant 0 : i32
    %c0_i32_1 = arith.constant 0 : i32
    %c0_i32_2 = arith.constant 0 : i32
    return %c0_i32, %c0_i32_0, %c0_i32_1 : i32, i32, i32
  }
  func.func @transform_5(%arg0: i32) -> (i32, i32) {
    %c0_i32 = arith.constant 0 : i32
    %c0_i32_0 = arith.constant 0 : i32
    %c0_i32_1 = arith.constant 0 : i32
    return %c0_i32, %c0_i32_0 : i32, i32
  }
  func.func @transform_6(%arg0: i32) -> (i32, i32, i32) {
    %c0_i32 = arith.constant 0 : i32
    %c0_i32_0 = arith.constant 0 : i32
    %c0_i32_1 = arith.constant 0 : i32
    return %arg0, %c0_i32, %c0_i32_0 : i32, i32, i32
  }
}

module attributes {stable_mosaic.version = 11 : i64} {
  func.func @_l2norm_resize_kernel(%arg0: i32, %arg1: memref<1x32x4xf32, #tpu.memory_space<vmem>>, %arg2: memref<4x64xf32, #tpu.memory_space<vmem>>, %arg3: memref<1x32x64xf32, #tpu.memory_space<vmem>>) attributes {dimension_semantics = [#tpu.dimension_semantics<parallel>], iteration_bounds = array<i64: 2>, scalar_prefetch = 0 : i64, scratch_operands = 0 : i64, tpu.core_type = #tpu.core_type<tc>, window_params = [{transform_indices = @transform_0, window_bounds = array<i64: 1, 32, 4>}, {pipeline_mode = #tpu.pipeline_mode<synchronous>, transform_indices = @transform_1, window_bounds = array<i64: 4, 64>}, {transform_indices = @transform_2, window_bounds = array<i64: 1, 32, 64>}]} {
    %c0 = arith.constant 0 : index
    %c0_0 = arith.constant 0 : index
    %c0_1 = arith.constant 0 : index
    %0 = vector.load %arg1[%c0, %c0_0, %c0_1] : memref<1x32x4xf32, #tpu.memory_space<vmem>>, vector<1x32x4xf32>
    %1 = vector.shape_cast %0 : vector<1x32x4xf32> to vector<32x4xf32>
    %2 = arith.mulf %1, %1 : vector<32x4xf32>
    %cst = arith.constant dense<0.000000e+00> : vector<4xf32>
    %3 = vector.multi_reduction <add>, %2, %cst [0] : vector<32x4xf32> to vector<4xf32>
    %4 = vector.shape_cast %3 : vector<4xf32> to vector<1x4xf32>
    %cst_2 = arith.constant 1.000000e-24 : f32
    %5 = vector.broadcast %cst_2 : f32 to vector<1x4xf32>
    %6 = arith.maximumf %4, %5 : vector<1x4xf32>
    %7 = math.rsqrt %6 : vector<1x4xf32>
    %8 = vector.broadcast %7 : vector<1x4xf32> to vector<32x4xf32>
    %9 = arith.mulf %1, %8 : vector<32x4xf32>
    %c0_3 = arith.constant 0 : index
    %c0_4 = arith.constant 0 : index
    %10 = vector.load %arg2[%c0_3, %c0_4] : memref<4x64xf32, #tpu.memory_space<vmem>>, vector<4x64xf32>
    %cst_5 = arith.constant dense<0.000000e+00> : vector<32x64xf32>
    %11 = tpu.matmul %9, %10, %cst_5 {dimension_numbers = #tpu.dot_dimension_numbers<[1], [0], [0], [1], [0, 0, 1, 1], [], []>} : vector<32x4xf32>, vector<4x64xf32>, vector<32x64xf32> -> vector<32x64xf32>
    %c0_6 = arith.constant 0 : index
    %c0_7 = arith.constant 0 : index
    %c0_8 = arith.constant 0 : index
    %12 = vector.load %arg3[%c0_6, %c0_7, %c0_8] : memref<1x32x64xf32, #tpu.memory_space<vmem>>, vector<1x32x64xf32>
    %13 = vector.shape_cast %12 : vector<1x32x64xf32> to vector<32x64xf32>
    %14 = vector.shape_cast %11 : vector<32x64xf32> to vector<1x32x64xf32>
    tpu.vector_store %arg3[%c0_6, %c0_7, %c0_8], %14 {strides = array<i32>} : memref<1x32x64xf32, #tpu.memory_space<vmem>>, vector<1x32x64xf32>,
    return
  }
  func.func @transform_0(%arg0: i32) -> (i32, i32, i32) {
    %c0_i32 = arith.constant 0 : i32
    %c0_i32_0 = arith.constant 0 : i32
    %c0_i32_1 = arith.constant 0 : i32
    return %arg0, %c0_i32, %c0_i32_0 : i32, i32, i32
  }
  func.func @transform_1(%arg0: i32) -> (i32, i32) {
    %c0_i32 = arith.constant 0 : i32
    %c0_i32_0 = arith.constant 0 : i32
    %c0_i32_1 = arith.constant 0 : i32
    return %c0_i32, %c0_i32_0 : i32, i32
  }
  func.func @transform_2(%arg0: i32) -> (i32, i32, i32) {
    %c0_i32 = arith.constant 0 : i32
    %c0_i32_0 = arith.constant 0 : i32
    %c0_i32_1 = arith.constant 0 : i32
    return %arg0, %c0_i32, %c0_i32_0 : i32, i32, i32
  }
}

module attributes {stable_mosaic.version = 11 : i64} {
  func.func @_l2norm_resize_kernel(%arg0: i32, %arg1: memref<1x16x16xf32, #tpu.memory_space<vmem>>, %arg2: memref<16x64xf32, #tpu.memory_space<vmem>>, %arg3: memref<1x16x64xf32, #tpu.memory_space<vmem>>) attributes {dimension_semantics = [#tpu.dimension_semantics<parallel>], iteration_bounds = array<i64: 2>, scalar_prefetch = 0 : i64, scratch_operands = 0 : i64, tpu.core_type = #tpu.core_type<tc>, window_params = [{transform_indices = @transform_0, window_bounds = array<i64: 1, 16, 16>}, {pipeline_mode = #tpu.pipeline_mode<synchronous>, transform_indices = @transform_1, window_bounds = array<i64: 16, 64>}, {transform_indices = @transform_2, window_bounds = array<i64: 1, 16, 64>}]} {
    %c0 = arith.constant 0 : index
    %c0_0 = arith.constant 0 : index
    %c0_1 = arith.constant 0 : index
    %0 = vector.load %arg1[%c0, %c0_0, %c0_1] : memref<1x16x16xf32, #tpu.memory_space<vmem>>, vector<1x16x16xf32>
    %1 = vector.shape_cast %0 : vector<1x16x16xf32> to vector<16x16xf32>
    %2 = arith.mulf %1, %1 : vector<16x16xf32>
    %cst = arith.constant dense<0.000000e+00> : vector<16xf32>
    %3 = vector.multi_reduction <add>, %2, %cst [0] : vector<16x16xf32> to vector<16xf32>
    %4 = vector.shape_cast %3 : vector<16xf32> to vector<1x16xf32>
    %cst_2 = arith.constant 1.000000e-24 : f32
    %5 = vector.broadcast %cst_2 : f32 to vector<1x16xf32>
    %6 = arith.maximumf %4, %5 : vector<1x16xf32>
    %7 = math.rsqrt %6 : vector<1x16xf32>
    %8 = vector.broadcast %7 : vector<1x16xf32> to vector<16x16xf32>
    %9 = arith.mulf %1, %8 : vector<16x16xf32>
    %c0_3 = arith.constant 0 : index
    %c0_4 = arith.constant 0 : index
    %10 = vector.load %arg2[%c0_3, %c0_4] : memref<16x64xf32, #tpu.memory_space<vmem>>, vector<16x64xf32>
    %cst_5 = arith.constant dense<0.000000e+00> : vector<16x64xf32>
    %11 = tpu.matmul %9, %10, %cst_5 {dimension_numbers = #tpu.dot_dimension_numbers<[1], [0], [0], [1], [0, 0, 1, 1], [], []>} : vector<16x16xf32>, vector<16x64xf32>, vector<16x64xf32> -> vector<16x64xf32>
    %c0_6 = arith.constant 0 : index
    %c0_7 = arith.constant 0 : index
    %c0_8 = arith.constant 0 : index
    %12 = vector.load %arg3[%c0_6, %c0_7, %c0_8] : memref<1x16x64xf32, #tpu.memory_space<vmem>>, vector<1x16x64xf32>
    %13 = vector.shape_cast %12 : vector<1x16x64xf32> to vector<16x64xf32>
    %14 = vector.shape_cast %11 : vector<16x64xf32> to vector<1x16x64xf32>
    tpu.vector_store %arg3[%c0_6, %c0_7, %c0_8], %14 {strides = array<i32>} : memref<1x16x64xf32, #tpu.memory_space<vmem>>, vector<1x16x64xf32>,
    return
  }
  func.func @transform_0(%arg0: i32) -> (i32, i32, i32) {
    %c0_i32 = arith.constant 0 : i32
    %c0_i32_0 = arith.constant 0 : i32
    %c0_i32_1 = arith.constant 0 : i32
    return %arg0, %c0_i32, %c0_i32_0 : i32, i32, i32
  }
  func.func @transform_1(%arg0: i32) -> (i32, i32) {
    %c0_i32 = arith.constant 0 : i32
    %c0_i32_0 = arith.constant 0 : i32
    %c0_i32_1 = arith.constant 0 : i32
    return %c0_i32, %c0_i32_0 : i32, i32
  }
  func.func @transform_2(%arg0: i32) -> (i32, i32, i32) {
    %c0_i32 = arith.constant 0 : i32
    %c0_i32_0 = arith.constant 0 : i32
    %c0_i32_1 = arith.constant 0 : i32
    return %arg0, %c0_i32, %c0_i32_0 : i32, i32, i32
  }
}

module attributes {stable_mosaic.version = 11 : i64} {
  func.func @_l2norm_kernel(%arg0: i32, %arg1: memref<1x8x64xf32, #tpu.memory_space<vmem>>, %arg2: memref<1x8x64xf32, #tpu.memory_space<vmem>>) attributes {dimension_semantics = [#tpu.dimension_semantics<parallel>], iteration_bounds = array<i64: 2>, scalar_prefetch = 0 : i64, scratch_operands = 0 : i64, tpu.core_type = #tpu.core_type<tc>, window_params = [{transform_indices = @transform_0, window_bounds = array<i64: 1, 8, 64>}, {transform_indices = @transform_1, window_bounds = array<i64: 1, 8, 64>}]} {
    %c0 = arith.constant 0 : index
    %c0_0 = arith.constant 0 : index
    %c0_1 = arith.constant 0 : index
    %0 = vector.load %arg1[%c0, %c0_0, %c0_1] : memref<1x8x64xf32, #tpu.memory_space<vmem>>, vector<1x8x64xf32>
    %1 = vector.shape_cast %0 : vector<1x8x64xf32> to vector<8x64xf32>
    %2 = arith.mulf %1, %1 : vector<8x64xf32>
    %cst = arith.constant dense<0.000000e+00> : vector<64xf32>
    %3 = vector.multi_reduction <add>, %2, %cst [0] : vector<8x64xf32> to vector<64xf32>
    %4 = vector.shape_cast %3 : vector<64xf32> to vector<1x64xf32>
    %cst_2 = arith.constant 1.000000e-24 : f32
    %5 = vector.broadcast %cst_2 : f32 to vector<1x64xf32>
    %6 = arith.maximumf %4, %5 : vector<1x64xf32>
    %7 = math.rsqrt %6 : vector<1x64xf32>
    %8 = vector.broadcast %7 : vector<1x64xf32> to vector<8x64xf32>
    %9 = arith.mulf %1, %8 : vector<8x64xf32>
    %c0_3 = arith.constant 0 : index
    %c0_4 = arith.constant 0 : index
    %c0_5 = arith.constant 0 : index
    %10 = vector.load %arg2[%c0_3, %c0_4, %c0_5] : memref<1x8x64xf32, #tpu.memory_space<vmem>>, vector<1x8x64xf32>
    %11 = vector.shape_cast %10 : vector<1x8x64xf32> to vector<8x64xf32>
    %12 = vector.shape_cast %9 : vector<8x64xf32> to vector<1x8x64xf32>
    tpu.vector_store %arg2[%c0_3, %c0_4, %c0_5], %12 {strides = array<i32>} : memref<1x8x64xf32, #tpu.memory_space<vmem>>, vector<1x8x64xf32>,
    return
  }
  func.func @transform_0(%arg0: i32) -> (i32, i32, i32) {
    %c0_i32 = arith.constant 0 : i32
    %c0_i32_0 = arith.constant 0 : i32
    %c0_i32_1 = arith.constant 0 : i32
    return %arg0, %c0_i32, %c0_i32_0 : i32, i32, i32
  }
  func.func @transform_1(%arg0: i32) -> (i32, i32, i32) {
    %c0_i32 = arith.constant 0 : i32
    %c0_i32_0 = arith.constant 0 : i32
    %c0_i32_1 = arith.constant 0 : i32
    return %arg0, %c0_i32, %c0_i32_0 : i32, i32, i32
  }
}

</mosaic_0001>

<bundles_post_ra>
// kernel: timm_backbone_forward.11
= control target key start
LH: loop header
LB: loop body
LE: loop exit
PB: predicated region body
PF: predicated region fallthrough
CT: control target
= control target key end

     0   :  { %s400_s9 = smov 0   ;;  %s435_s0 = inlined_call_operand.vmem [shape: f32[2,32,4], index: 0, kind: input, shape index: {}]   ;;  %s436_s1 = inlined_call_operand.vmem [shape: f32[4,64], index: 1, kind: input, shape index: {}]   ;;  %s437_s2 = inlined_call_operand.vmem [shape: f32[2,32,64], index: 2, kind: output, shape index: {}]  }
   0x1 LB: > { %s334_s10 = sadd.s32 4294967295, %s383_s9   ;;  %p338_p0 = scmp.ge.s32.totalorder %s383_s9, 1  ;;  %s383_s9 = sphi %s400_s9, %s12_s9  }
   0x2   : > { %p112_p1 = scmp.lt.s32.totalorder %s383_s9, 3 }
   0x4   : > { %p113_p2 = pnand %p338_p0, %p112_p1 }
   0x5   : > { %p134_p3 = scmp.lt.s32.totalorder (!%p113_p2), %s334_s10, 1 }
   0x6   : > { %116 = sbr.rel (%p113_p2) target bundleno = 251 (0xfb), region = 28 }
   0xb   : > { %v172_v0 = vld [vmem:[%s436_s1] sm:$0xf]  ;;  %vm185_vm0 = vcmask 1043456   ;;  %s439_s10 = smov (!%p134_p3, %s334_s10), 1  ;;  %vm152_vm1 = vcmask 31744   ;;  %vm274_vm2 = vcmask 523264  }
   0xc   : > { %357 = vmatprep.subr.msk.mxu0 %vm185_vm0, %v172_v0  ;;  %365 = vmatprep.subr.msk.mxu1 %vm185_vm0, %v172_v0  ;;  %s350_s13 = sshll.u32 %s439_s10, 5 }
   0xd   : > { %358 = vmatpush3.msk.msra.mxu0 %vm185_vm0, %v172_v0  ;;  %366 = vmatpush3.msk.msra.mxu1 %vm185_vm0, %v172_v0  ;;  %s138_s16 = scalar_lea.vmem %s435_s0, %s350_s13  ;;  %s143_s19 = scalar_lea.vmem %s437_s2, %s350_s13 }
   0xe   : > { %v144_v1 = vld [vmem:[%s138_s16] sm:$0xff]  ;;  %v145_v2 = vld [vmem:[%s138_s16 + $0x8] sm:$0xff]  ;;  %v146_v3 = vld [vmem:[%s138_s16 + $0x10] sm:$0xff] }
   0xf   : > { %v147_v4 = vld [vmem:[%s138_s16 + $0x18] sm:$0xff]  ;;  %v148_v5 = vmul.f32 %v144_v1, %v144_v1  ;;  %v149_v6 = vmul.f32 %v145_v2, %v145_v2  ;;  %v150_v7 = vmul.f32 %v146_v3, %v146_v3 }
  0x10   : > { %v151_v8 = vmul.f32 %v147_v4, %v147_v4 }
  0x11   : > { %v153_v9 = vsel %vm152_vm1, %v148_v5, 0.0  ;;  %v154_v10 = vsel %vm152_vm1, %v149_v6, 0.0  ;;  %v156_v11 = vsel %vm152_vm1, %v150_v7, 0.0 }
  0x12   : > { %v155_v12 = vadd.f32 %v154_v10, %v153_v9  ;;  %v158_v13 = vsel %vm152_vm1, %v151_v8, 0.0 }
  0x14   : > { %v157_v14 = vadd.f32 %v156_v11, %v155_v12 }
  0x16   : > { %v159_v15 = vadd.f32 %v158_v13, %v157_v14 }
  0x18   : > { %v160_v16 = vrot.slane %v159_v15, 4 }
  0x1a   : > { %v161_v17 = vadd.f32 %v160_v16, %v159_v15 }
  0x1c   : > { %v162_v18 = vrot.slane %v161_v17, 2 }
  0x1e   : > { %v163_v19 = vadd.f32 %v162_v18, %v161_v17 }
  0x20   : > { %v164_v20 = vrot.slane %v163_v19, 1 }
  0x22   : > { %v165_v21 = vadd.f32 %v164_v20, %v163_v19 }
  0x24   : > { %v166_v22 = vmax.f32 %v165_v21, 1e-24 }
  0x26   : > { %375 = vrsqrt.f32 %v166_v22 }
  0x33   : > { %v376_v23 = vpop.eup %375 }
  0x34   : > { %v168_v24 = vmul.f32 %v376_v23, %v144_v1  ;;  %v170_v25 = vmul.f32 %v376_v23, %v146_v3  ;;  %v169_v26 = vmul.f32 %v376_v23, %v145_v2  ;;  %v171_v27 = vmul.f32 %v376_v23, %v147_v4 }
  0x36   : > { %359 = vmatprep.mubr.msk.f32.mxu0 %vm152_vm1, %v168_v24  ;;  %362 = vmatprep.mubr.msk.f32.mxu1 %vm152_vm1, %v170_v25 }
  0x37   : > { %360 = vmatmul.mubr.msk.f32.vlgmr.msra.gmra.mxu0 %vm152_vm1, %v169_v26  ;;  %363 = vmatmul.mubr.msk.f32.vlgmr.msra.gmra.mxu1 %vm152_vm1, %v171_v27 }
  0xf7   : > { %v361_v28 = vpop.f32.mrf.mxu0  ;;  %v364_v29 = vpop.f32.mrf.mxu1 }
  0xf8   : > { %276 = vst.msk [vmem:[%s143_s19 + $0x8] sm:$0xff] %vm274_vm2, %v361_v28  ;;  %278 = vst.msk [vmem:[%s143_s19 + $0x18] sm:$0xff] %vm274_vm2, %v364_v29 }
  0xf9   : > { %v255_v30 = vpop.f32.mrf.mxu0  ;;  %v265_v31 = vpop.f32.mrf.mxu1 }
  0xfa   : > { %275 = vst.msk [vmem:[%s143_s19] sm:$0xff] %vm274_vm2, %v255_v30  ;;  %277 = vst.msk [vmem:[%s143_s19 + $0x10] sm:$0xff] %vm274_vm2, %v265_v31 }
  0xfb PF: > { %s12_s9 = sadd.s32 1, %s383_s9  }
  0xfc   : > { %p9_p4 = scmp.ge.s32.totalorder %s12_s9, 4  }
  0xfe   :  { %11 = sbr.rel (!%p9_p4) target bundleno = 1 (0x1), region = 58 }

// kernel: timm_backbone_forward.6
= control target key start
LH: loop header
LB: loop body
LE: loop exit
PB: predicated region body
PF: predicated region fallthrough
CT: control target
= control target key end

     0   :  { %s2475_s21 = smov 0   ;;  %s3037_s0 = inlined_call_operand.vmem [shape: bf16[2,3,9,9], index: 0, kind: input, shape index: {}]   ;;  %s3038_s1 = inlined_call_operand.vmem [shape: bf16[2,3,9,9], index: 1, kind: input, shape index: {}]   ;;  %s3039_s2 = inlined_call_operand.vmem [shape: bf16[2,3,9,9], index: 2, kind: input, shape index: {}]   ;;  %s3040_s3 = inlined_call_operand.vmem [shape: bf16[2,3,9,9], index: 3, kind: input, shape index: {}]   ;;  %s3041_s4 = inlined_call_operand.vmem [shape: bf16[9,8,3], index: 4, kind: input, shape index: {}]   ;;  %s3042_s5 = inlined_call_operand.vmem [shape: f32[8,1], index: 5, kind: input, shape index: {}]   ;;  %s3043_s6 = inlined_call_operand.vmem [shape: f32[2,8,64], index: 6, kind: output, shape index: {}]  }
   0x1 LB: > { %s2194_s22 = sadd.s32 4294967295, %s2424_s21   ;;  %p2198_p0 = scmp.ge.s32.totalorder %s2424_s21, 1  ;;  %s2424_s21 = sphi %s2475_s21, %s16_s21  }
   0x2   : > { %p242_p1 = scmp.lt.s32.totalorder %s2424_s21, 3 }
   0x4   : > { %p243_p2 = pnand %p2198_p0, %p242_p1 }
   0x5   : > { %p286_p3 = scmp.lt.s32.totalorder (!%p243_p2), %s2194_s22, 1  ;;  %s2429_s30 = smov (!%p243_p2), 127  }
   0x6   : > { %246 = sbr.rel (%p243_p2) target bundleno = 514 (0x202), region = 44  ;;  %s2430_s13 = smov (!%p243_p2), 16  }
   0x7   : > { %s2431_s14 = smov (!%p243_p2), 8   ;;  %s2432_s15 = smov (!%p243_p2), 32  }
   0x8   : > { %s2433_s16 = smov (!%p243_p2), 24   ;;  %s2434_s17 = smov (!%p243_p2), 48  }
   0x9   : > { %s2435_s18 = smov (!%p243_p2), 40   ;;  %s2436_s19 = smov (!%p243_p2), 56  }
   0xb   : > { %s3047_s22 = smov (!%p286_p3, %s2194_s22), 1  ;;  %v2426_v0 = vmov 0   ;;  %v2427_v1 = vmov 1983009808   ;;  %v331_v3 = vlaneseq  ;;  %v2428_v4 = vmov 1934713408  }
   0xc   : > { %2417 = vset.pattern.permute.xlu0 %v2426_v0  ;;  %v329_v2 = vunpack.c.l.s4 %v2427_v1  ;;  %s2487_s23 = smul.u32 24, %s3047_s22  ;;  %v346_v5 = vunpack.c.l.s4 %v2428_v4  ;;  %vm1422_vm0 = vsmask.f32 3328  ;;  %vm1423_vm1 = vsmask.f32 7440 }
   0xd   : > { %v332_v9 = vshrl.u32 %v331_v3, 7  ;;  %vm2533_vm2 = vmor %vm1422_vm0, %vm1423_vm1  ;;  %vm2438_vm3 = vmmov 0   ;;  %vm430_vm4 = vcmask 64512   ;;  %vm434_vm5 = vcmask 130048  }
   0xe   : > { %s2493_s26 = scalar_lea.vmem %s3037_s0, %s2487_s23  ;;  %s2499_s29 = scalar_lea.vmem %s3039_s2, %s2487_s23  ;;  %v330_v8 = vunpack.c.0.s8 %v329_v2  ;;  %v347_v14 = vunpack.c.0.s8 %v346_v5  ;;  %vm589_vm6 = vcmask 1040384   ;;  %vm437_vm7 = vcmask 195584  }
   0xf   : > { %v682_v6 = vld [vmem:[%s2493_s26 + $0x10] sm:$0xf]  ;;  %v680_v7 = vld [vmem:[%s2493_s26] sm:$0xf]  ;;  %s2510_s9 = scalar_lea.vmem %s3038_s1, %s2487_s23  ;;  %v681_v11 = vld [vmem:[%s2493_s26 + $0x8] sm:$0xf]  ;;  %s305_s12 = scalar_lea.vmem %s3040_s3, %s2487_s23 }
  0x10   : > { %692 = vrot.lane.b32.xlu1 %v682_v6, %s2429_s30  ;;  %688 = vrot.lane.b32.xlu0 %v680_v7, %s2429_s30  ;;  %v1226_v10 = vld [vmem:[%s2499_s29] sm:$0xf]  ;;  %v1866_v13 = vld [vmem:[%s2493_s26 + $0x4] sm:$0x1]  ;;  %v2519_v24 = vsub.s32 %v330_v8, %v332_v9  ;;  %v2525_v32 = vsub.s32 %v347_v14, %v332_v9  ;;  %vm440_vm8 = vcmask 261120   ;;  %vm590_vm9 = vcmask 1041408  }
  0x11   : > { %v1865_v12 = vld [vmem:[%s2493_s26] sm:$0xf]  ;;  %v1883_v17 = vshll.u32 %v1866_v13, 16  ;;  %v1869_v18 = vld [vmem:[%s2493_s26 + $0x10] sm:$0xf]  ;;  %vm443_vm10 = vcmask 326656  }
  0x12   : > { %v1874_v15 = vshrl.u32 %v1865_v12, 16  ;;  %v1877_v16 = vshll.u32 %v1865_v12, 16  ;;  %v1228_v19 = vld [vmem:[%s2499_s29 + $0x10] sm:$0xf]  ;;  %v1227_v20 = vld [vmem:[%s2499_s29 + $0x8] sm:$0xf] }
  0x13   : > { %v1870_v21 = vld [vmem:[%s2493_s26 + $0x14] sm:$0x1]  ;;  %v1902_v22 = vshrl.u32 %v1869_v18, 16  ;;  %v1905_v23 = vshll.u32 %v1869_v18, 16  ;;  %v452_v25 = vld [vmem:[%s2510_s9] sm:$0xf] }
  0x14   : > { %1234 = vrot.lane.b32.xlu1 %v1226_v10, %s2429_s30  ;;  %690 = vrot.lane.b32.xlu0 %v681_v11, %s2429_s30  ;;  %v1876_v26 = vrot.slane %v1874_v15, 4  ;;  %v1879_v27 = vrot.slane %v1877_v16, 5  ;;  %v1911_v28 = vshll.u32 %v1870_v21, 16  ;;  %v453_v29 = vld [vmem:[%s2510_s9 + $0x8] sm:$0xf]  ;;  %v1885_v37 = vrot.slane %v1883_v17, 5 }
  0x15   : > { %v1904_v30 = vrot.slane %v1902_v22, 4  ;;  %v1907_v31 = vrot.slane %v1905_v23, 5  ;;  %v454_v33 = vld [vmem:[%s2510_s9 + $0x10] sm:$0xf]  ;;  %v459_v34 = vpack.i.b16 %v453_v29, %v452_v25  ;;  %v1867_v35 = vld [vmem:[%s2493_s26 + $0x8] sm:$0xf] }
  0x16   : > { %v1880_v36 = vor.u32 %v1879_v27, %v1876_v26  ;;  %v464_v38 = vpack.i.b16 %v2426_v0, %v454_v33  ;;  %v1868_v39 = vld [vmem:[%s2493_s26 + $0xc] sm:$0x1]  ;;  %v1888_v40 = vshrl.u32 %v1867_v35, 16  ;;  %v1891_v44 = vshll.u32 %v1867_v35, 16  ;;  %v311_v50 = vld [vmem:[%s2493_s26] sm:$0xf] }
  0x17   : > { %v1908_v42 = vor.u32 %v1907_v31, %v1904_v30  ;;  %v474_v43 = vrot.slane %v459_v34, %v2519_v24  ;;  %v1897_v45 = vshll.u32 %v1868_v39, 16  ;;  %v460_v49 = vshrl.u32 %v452_v25, 16  ;;  %v312_v55 = vld [vmem:[%s2493_s26 + $0x8] sm:$0xf]  ;;  %v313_v59 = vld [vmem:[%s2493_s26 + $0x10] sm:$0xf] }
  0x18   : > { %1238 = vrot.lane.b32.xlu1 %v1228_v19, %s2429_s30  ;;  %1236 = vrot.lane.b32.xlu0 %v1227_v20, %s2429_s30  ;;  %v1881_v46 = vrot.slane %v1880_v36, 4  ;;  %v482_v47 = vrot.slane %v464_v38, %v2519_v24  ;;  %v1890_v48 = vrot.slane %v1888_v40, 4  ;;  %v1913_v52 = vrot.slane %v1911_v28, 5  ;;  %v868_v25 = vld [vmem:[%s2499_s29] sm:$0xf] }
  0x19   : > { %v1909_v51 = vrot.slane %v1908_v42, 4  ;;  %v1893_v53 = vrot.slane %v1891_v44, 5  ;;  %v461_v54 = vshrl.u32 %v453_v29, 16  ;;  %v465_v58 = vshrl.u32 %v454_v33, 16  ;;  %v869_v26 = vld [vmem:[%s2499_s29 + $0x8] sm:$0xf] }
  0x1a   : > { %v1886_v56 = vsel %vm2533_vm2, %v1881_v46, %v1885_v37  ;;  %v483_v57 = vcombine.low %v474_v43, %v482_v47  ;;  %v484_v60 = vcombine.high %v474_v43, %v482_v47  ;;  %v1899_v62 = vrot.slane %v1897_v45, 5  ;;  %v2579_v27 = vld [vmem:[%s2499_s29 + $0x10] sm:$0xf]  ;;  %v1047_v31 = vld [vmem:[%s305_s12] sm:$0xf] }
  0x1b   : > { %v1894_v61 = vor.u32 %v1893_v53, %v1890_v48  ;;  %v462_v63 = vpack.i.b16 %v461_v54, %v460_v49  ;;  %v466_v2 = vpack.i.b16 %v2426_v0, %v465_v58  ;;  %v318_v3 = vshrl.u32 %v311_v50, 16  ;;  %v1048_v33 = vld [vmem:[%s305_s12 + $0x8] sm:$0xf]  ;;  %v1049_v37 = vld [vmem:[%s305_s12 + $0x10] sm:$0xf] }
  0x1c   : > { %1915 = vrot.lane.b32.xlu0 %v1886_v56, %s2429_s30  ;;  %v2548_v1 = vrot.slane %v483_v57, %v2525_v32  ;;  %v319_v4 = vshrl.u32 %v312_v55, 16  ;;  %v1914_v5 = vsel %vm2533_vm2, %v1909_v51, %v1913_v52  ;;  %v324_v7 = vshrl.u32 %v313_v59, 16  ;;  %v1414_v53 = vld [vmem:[%s2493_s26] sm:$0xf] }
  0x1d   : > { %v1895_v6 = vrot.slane %v1894_v61, 4  ;;  %v508_v8 = vrot.slane %v462_v63, %v2519_v24  ;;  %v516_v9 = vrot.slane %v466_v2, %v2519_v24  ;;  %v498_v11 = vrot.slane %v484_v60, %v2525_v32 }
  0x1e   : > { %v2290_v10 = vcombine.high %v2548_v1, %v2548_v1  ;;  %v320_v13 = vpack.i.b16 %v319_v4, %v318_v3  ;;  %v326_v14 = vpack.i.b16 %v2426_v0, %v324_v7  ;;  %v317_v18 = vpack.i.b16 %v312_v55, %v311_v50 }
  0x1f   : > { %v1900_v12 = vsel %vm2533_vm2, %v1895_v6, %v1899_v62  ;;  %v517_v15 = vcombine.low %v508_v8, %v516_v9  ;;  %v518_v17 = vcombine.high %v508_v8, %v516_v9  ;;  %v323_v19 = vpack.i.b16 %v2426_v0, %v313_v59  ;;  %v1415_v9 = vld [vmem:[%s2493_s26 + $0x4] sm:$0x1] }
  0x20   : > { %1919 = vrot.lane.b32.xlu0 %v1914_v5, %s2429_s30  ;;  %1917 = vrot.lane.b32.xlu1 %v1900_v12, %s2429_s30  ;;  %v2215_v20 = vcombine.low %v498_v11, %v498_v11  ;;  %v2571_v21 = vrot.slane %v320_v13, %v2519_v24  ;;  %v2574_v22 = vrot.slane %v326_v14, %v2519_v24  ;;  %v1055_v43 = vshrl.u32 %v1047_v31, 16 }
  0x21   : > { %v525_v16 = vrot.slane %v517_v15, %v2525_v32  ;;  %v875_v28 = vpack.i.b16 %v869_v26, %v868_v25  ;;  %v880_v30 = vpack.i.b16 %v2426_v0, %v2579_v27  ;;  %v532_v34 = vrot.slane %v518_v17, %v2525_v32 }
  0x22   : > { %v334_v35 = vrot.slane %v317_v18, %v2519_v24  ;;  %v342_v36 = vrot.slane %v323_v19, %v2519_v24  ;;  %v2292_v38 = vcombine.high %v498_v11, %v498_v11  ;;  %v377_v39 = vcombine.low %v2571_v21, %v2574_v22  ;;  %v1417_v18 = vld [vmem:[%s2493_s26 + $0xc] sm:$0x1]  ;;  %v1418_v19 = vld [vmem:[%s2493_s26 + $0x10] sm:$0xf] }
  0x23   : > { %v2212_v23 = vcombine.low %v525_v16, %v525_v16  ;;  %v2291_v29 = vcombine.high %v525_v16, %v525_v16  ;;  %v2591_v40 = vrot.slane %v875_v28, %v2519_v24  ;;  %v2594_v42 = vrot.slane %v880_v30, %v2519_v24 }
  0x24   : > { %543 = vrot.lane.b32.xlu0 %v2290_v10, %s2430_s13  ;;  %v1056_v44 = vshrl.u32 %v1048_v33, 16  ;;  %v2216_v45 = vcombine.low %v532_v34, %v532_v34  ;;  %v343_v46 = vcombine.low %v334_v35, %v342_v36  ;;  %v876_v47 = vshrl.u32 %v868_v25, 16  ;;  %v1416_v10 = vld [vmem:[%s2493_s26 + $0x8] sm:$0xf] }
  0x25   : > { %538 = vrot.lane.b32.xlu1 %v2212_v23, %s2431_s14  ;;  %v1060_v48 = vshrl.u32 %v1049_v37, 16  ;;  %v2293_v49 = vcombine.high %v532_v34, %v532_v34  ;;  %v344_v50 = vcombine.high %v334_v35, %v342_v36  ;;  %v877_v51 = vshrl.u32 %v869_v26, 16  ;;  %v1419_v26 = vld [vmem:[%s2493_s26 + $0x14] sm:$0x1] }
  0x26   : > { %v1057_v52 = vpack.i.b16 %v1056_v44, %v1055_v43  ;;  %v385_v54 = vrot.slane %v377_v39, %v2525_v32  ;;  %v1054_v56 = vpack.i.b16 %v1048_v33, %v1047_v31  ;;  %v1059_v57 = vpack.i.b16 %v2426_v0, %v1049_v37 }
  0x27   : > { %v1061_v55 = vpack.i.b16 %v2426_v0, %v1060_v48  ;;  %v899_v58 = vcombine.low %v2591_v40, %v2594_v42  ;;  %v2609_v61 = vrot.slane %v343_v46, %v2525_v32  ;;  %v1426_v63 = vshrl.u32 %v1414_v53, 16 }
  0x28   : > { %553 = vrot.lane.b32.xlu0 %v2215_v20, %s2432_s15  ;;  %v2605_v59 = vrot.slane %v1057_v52, %v2519_v24  ;;  %v2204_v60 = vcombine.low %v385_v54, %v385_v54  ;;  %v2615_v2 = vrot.slane %v344_v50, %v2525_v32  ;;  %v378_v3 = vcombine.high %v2571_v21, %v2574_v22  ;;  %v1641_v50 = vld [vmem:[%s2510_s9] sm:$0xf] }
  0x29   : > { %548 = vrot.lane.b32.xlu1 %v2291_v29, %s2433_s16  ;;  %v2612_v62 = vrot.slane %v1061_v55, %v2519_v24  ;;  %v881_v4 = vshrl.u32 %v2579_v27, 16  ;;  %v2287_v5 = vcombine.high %v385_v54, %v385_v54  ;;  %v878_v6 = vpack.i.b16 %v877_v51, %v876_v47  ;;  %v1643_v55 = vld [vmem:[%s2510_s9 + $0x8] sm:$0xf] }
  0x2a   : > { %v2622_v7 = vrot.slane %v1054_v56, %v2519_v24  ;;  %v2625_v8 = vrot.slane %v1059_v57, %v2519_v24  ;;  %v2630_v11 = vrot.slane %v899_v58, %v2525_v32  ;;  %v2286_v13 = vcombine.high %v2609_v61, %v2609_v61  ;;  %v1645_v56 = vld [vmem:[%s2510_s9 + $0x10] sm:$0xf] }
  0x2b   : > { %v1112_v12 = vcombine.low %v2605_v59, %v2612_v62  ;;  %v1428_v14 = vrot.slane %v1426_v63, 4  ;;  %v1429_v15 = vshll.u32 %v1414_v53, 16  ;;  %v2638_v16 = vrot.slane %v378_v3, %v2525_v32 }
  0x2c   : > { %563 = vrot.lane.b32.xlu0 %v2292_v38, %s2434_s17  ;;  %v882_v17 = vpack.i.b16 %v2426_v0, %v881_v4  ;;  %v1435_v20 = vshll.u32 %v1415_v9, 16  ;;  %v1440_v21 = vshrl.u32 %v1416_v10, 16  ;;  %v2207_v22 = vcombine.low %v2615_v2, %v2615_v2 }
  0x2d   : > { %558 = vrot.lane.b32.xlu1 %v2216_v45, %s2435_s18  ;;  %v2647_v23 = vrot.slane %v878_v6, %v2519_v24  ;;  %v1078_v25 = vcombine.low %v2622_v7, %v2625_v8  ;;  %v1431_v27 = vrot.slane %v1429_v15, 5  ;;  %v2298_v28 = vcombine.high %v2630_v11, %v2630_v11 }
  0x2e   : > { %v2655_v29 = vrot.slane %v1112_v12, %v2525_v32  ;;  %v1442_v30 = vrot.slane %v1440_v21, 4  ;;  %v1443_v31 = vshll.u32 %v1416_v10, 16  ;;  %v1449_v34 = vshll.u32 %v1417_v18, 16 }
  0x2f   : > { %v1432_v33 = vor.u32 %v1431_v27, %v1428_v14  ;;  %v1454_v35 = vshrl.u32 %v1418_v19, 16  ;;  %v1457_v36 = vshll.u32 %v1418_v19, 16  ;;  %v2659_v37 = vrot.slane %v882_v17, %v2519_v24 }
  0x30   : > { %568 = vrot.lane.b32.xlu0 %v2293_v49, %s2436_s19  ;;  %v1437_v38 = vrot.slane %v1435_v20, 5  ;;  %v1445_v39 = vrot.slane %v1443_v31, 5  ;;  %v1463_v43 = vshll.u32 %v1419_v26, 16  ;;  %v2208_v44 = vcombine.low %v2638_v16, %v2638_v16  ;;  %v1642_v26 = vld [vmem:[%s2510_s9 + $0x4] sm:$0x1] }
  0x31   : > { %398 = vrot.lane.b32.xlu1 %v2204_v60, %s2431_s14  ;;  %v1433_v45 = vrot.slane %v1432_v33, 4  ;;  %v1456_v46 = vrot.slane %v1454_v35, 4  ;;  %v1459_v47 = vrot.slane %v1457_v36, 5  ;;  %v1451_v49 = vrot.slane %v1449_v34, 5  ;;  %v1644_v34 = vld [vmem:[%s2510_s9 + $0xc] sm:$0x1] }
  0x32   : > { %v1446_v48 = vor.u32 %v1445_v39, %v1442_v30  ;;  %v2240_v51 = vcombine.low %v2655_v29, %v2655_v29  ;;  %v2669_v52 = vrot.slane %v1078_v25, %v2525_v32  ;;  %v1465_v54 = vrot.slane %v1463_v43, 5  ;;  %v1646_v35 = vld [vmem:[%s2510_s9 + $0x14] sm:$0x1] }
  0x33   : > { %v1460_v53 = vor.u32 %v1459_v47, %v1456_v46  ;;  %v933_v57 = vcombine.low %v2647_v23, %v2659_v37  ;;  %v1079_v58 = vcombine.high %v2622_v7, %v2625_v8  ;;  %v2679_v60 = vsel %vm2533_vm2, %v1433_v45, %v1437_v38 }
  0x34   : > { %408 = vrot.lane.b32.xlu0 %v2287_v5, %s2433_s16  ;;  %v1447_v63 = vrot.slane %v1446_v48, 4  ;;  %v2288_v3 = vcombine.high %v2615_v2, %v2615_v2  ;;  %v1650_v5 = vshrl.u32 %v1641_v50, 16  ;;  %v1653_v6 = vshll.u32 %v1641_v50, 16 }
  0x35   : > { %403 = vrot.lane.b32.xlu1 %v2286_v13, %s2430_s13  ;;  %v1461_v4 = vrot.slane %v1460_v53, 4  ;;  %v1664_v10 = vshrl.u32 %v1643_v55, 16  ;;  %v1667_v12 = vshll.u32 %v1643_v55, 16  ;;  %v1678_v7 = vshrl.u32 %v1645_v56, 16 }
  0x36   : > { %v1452_v9 = vsel %vm2533_vm2, %v1447_v63, %v1451_v49  ;;  %v2302_v8 = vcombine.high %v2669_v52, %v2669_v52  ;;  %v1470_v2 = vshrl.u32 %v2679_v60, 16  ;;  %v2289_v15 = vcombine.high %v2638_v16, %v2638_v16 }
  0x37   : > { %v1466_v13 = vsel %vm2533_vm2, %v1461_v4, %v1465_v54  ;;  %v1471_v14 = vshrl.u32 %v1452_v9, 16  ;;  %v941_v17 = vrot.slane %v933_v57, %v2525_v32  ;;  %v2696_v18 = vrot.slane %v1079_v58, %v2525_v32 }
  0x38   : > { %413 = vrot.lane.b32.xlu0 %v2207_v22, %s2432_s15  ;;  %v1475_v19 = vshrl.u32 %v1466_v13, 16  ;;  %v1113_v20 = vcombine.high %v2605_v59, %v2612_v62  ;;  %v1652_v21 = vrot.slane %v1650_v5, 4  ;;  %v1655_v22 = vrot.slane %v1653_v6, 5 }
  0x39   : > { %959 = vrot.lane.b32.xlu1 %v2298_v28, %s2430_s13  ;;  %v1681_v25 = vshll.u32 %v1645_v56, 16  ;;  %v1666_v27 = vrot.slane %v1664_v10, 4  ;;  %v1669_v28 = vrot.slane %v1667_v12, 5  ;;  %v1680_v16 = vrot.slane %v1678_v7, 4 }
  0x3a   : > { %v2303_v30 = vcombine.high %v2655_v29, %v2655_v29  ;;  %v1472_v31 = vpack.i.b16 %v1471_v14, %v1470_v2  ;;  %v1476_v33 = vpack.i.b16 %v2426_v0, %v1475_v19  ;;  %v2231_v38 = vcombine.low %v941_v17, %v941_v17 }
  0x3b   : > { %v1683_v36 = vrot.slane %v1681_v25, 5  ;;  %v900_v59 = vcombine.high %v2591_v40, %v2594_v42  ;;  %v2243_v62 = vcombine.low %v2696_v18, %v2696_v18  ;;  %v1127_v39 = vrot.slane %v1113_v20, %v2525_v32 }
  0x3c   : > { %418 = vrot.lane.b32.xlu0 %v2208_v44, %s2435_s18  ;;  %v1656_v43 = vor.u32 %v1655_v22, %v1652_v21  ;;  %v1659_v44 = vshll.u32 %v1642_v26, 16  ;;  %v1670_v29 = vor.u32 %v1669_v28, %v1666_v27  ;;  %v1673_v45 = vshll.u32 %v1644_v34, 16 }
  0x3d   : > { %1133 = vrot.lane.b32.xlu1 %v2240_v51, %s2431_s14  ;;  %v1684_v46 = vor.u32 %v1683_v36, %v1680_v16  ;;  %v1687_v47 = vshll.u32 %v1646_v35, 16  ;;  %v2716_v48 = vrot.slane %v1472_v31, %v2519_v24  ;;  %v2719_v40 = vrot.slane %v1476_v33, %v2519_v24 }
  0x3e   : > { %v1469_v42 = vpack.i.b16 %v1452_v9, %v2679_v60  ;;  %v1474_v49 = vpack.i.b16 %v2426_v0, %v1466_v13  ;;  %v934_v50 = vcombine.high %v2647_v23, %v2659_v37  ;;  %v2299_v51 = vcombine.high %v941_v17, %v941_v17 }
  0x3f   : > { %v914_v53 = vrot.slane %v900_v59, %v2525_v32  ;;  %v1657_v54 = vrot.slane %v1656_v43, 4  ;;  %v1661_v55 = vrot.slane %v1659_v44, 5  ;;  %v1671_v56 = vrot.slane %v1670_v29, 4 }
  0x40   : > { %423 = vrot.lane.b32.xlu0 %v2288_v3, %s2434_s17  ;;  %v1675_v57 = vrot.slane %v1673_v45, 5  ;;  %v1685_v58 = vrot.slane %v1684_v46, 4  ;;  %v1689_v63 = vrot.slane %v1687_v47, 5  ;;  %v2244_v3 = vcombine.low %v1127_v39, %v1127_v39 }
  0x41   : > { %1138 = vrot.lane.b32.xlu1 %v2302_v8, %s2430_s13  ;;  %v1527_v60 = vcombine.low %v2716_v48, %v2719_v40  ;;  %v1484_v4 = vrot.slane %v1469_v42, %v2519_v24  ;;  %v1492_v23 = vrot.slane %v1474_v49, %v2519_v24  ;;  %v2234_v37 = vcombine.low %v914_v53, %v914_v53 }
  0x42   : > { %v948_v5 = vrot.slane %v934_v50, %v2525_v32  ;;  %v2437_v6 = vmov 0.0   ;;  %v1662_v9 = vsel %vm2533_vm2, %v1657_v54, %v1661_v55  ;;  %v1676_v10 = vsel %vm2533_vm2, %v1671_v56, %v1675_v57 }
  0x43   : > { %2340 = vmatprep.subr.bf16.mxu0 %v2437_v6  ;;  %v1690_v12 = vsel %vm2533_vm2, %v1685_v58, %v1689_v63  ;;  %2346 = vmatprep.subr.bf16.mxu1 %v2437_v6  ;;  %v2305_v7 = vcombine.high %v1127_v39, %v1127_v39  ;;  %v1535_v8 = vrot.slane %v1527_v60, %v2525_v32  ;;  %v1694_v14 = vshrl.u32 %v1662_v9, 16 }
  0x44   : > { %428 = vrot.lane.b32.xlu0 %v2289_v15, %s2436_s19  ;;  %v1493_v13 = vcombine.low %v1484_v4, %v1492_v23  ;;  %v2235_v2 = vcombine.low %v948_v5, %v948_v5  ;;  %v1695_v15 = vshrl.u32 %v1676_v10, 16  ;;  %v1699_v17 = vshrl.u32 %v1690_v12, 16  ;;  %2348 = vmatprep.mubr.msk.bf16.mxu1 %vm2438_vm3, %v2437_v6 }
  0x45   : > { %1143 = vrot.lane.b32.xlu1 %v2303_v30, %s2433_s16  ;;  %v2258_v19 = vcombine.low %v1535_v8, %v1535_v8  ;;  %2342 = vmatprep.mubr.msk.bf16.mxu0 %vm2438_vm3, %v2437_v6  ;;  %v2300_v20 = vcombine.high %v914_v53, %v914_v53  ;;  %v1494_v26 = vcombine.high %v1484_v4, %v1492_v23  ;;  %vm446_vm11 = vcmask 392192  }
  0x46   : > { %v2747_v41 = vrot.slane %v1493_v13, %v2525_v32  ;;  %v1696_v21 = vpack.i.b16 %v1695_v15, %v1694_v14  ;;  %v1700_v22 = vpack.i.b16 %v2426_v0, %v1699_v17  ;;  %v2301_v27 = vcombine.high %v948_v5, %v948_v5 }
  0x47   : > { %v2311_v30 = vcombine.high %v1535_v8, %v1535_v8  ;;  %v1508_v31 = vrot.slane %v1494_v26, %v2525_v32  ;;  %v1528_v33 = vcombine.high %v2716_v48, %v2719_v40  ;;  %v2304_v34 = vcombine.high %v2696_v18, %v2696_v18 }
  0x48   : > { %954 = vrot.lane.b32.xlu0 %v2231_v38, %s2431_s14  ;;  %v2310_v25 = vcombine.high %v2747_v41, %v2747_v41  ;;  %v1742_v28 = vrot.slane %v1696_v21, %v2519_v24  ;;  %v1750_v16 = vrot.slane %v1700_v22, %v2519_v24  ;;  %v1693_v36 = vpack.i.b16 %v1676_v10, %v1662_v9 }
  0x49   : > { %1148 = vrot.lane.b32.xlu1 %v2243_v62, %s2432_s15  ;;  %v1698_v38 = vpack.i.b16 %v2426_v0, %v1690_v12  ;;  %v2261_v59 = vcombine.low %v1508_v31, %v1508_v31  ;;  %v1542_v62 = vrot.slane %v1528_v33, %v2525_v32  ;;  %v2312_v39 = vcombine.high %v1508_v31, %v1508_v31 }
  0x4a   : > { %v1751_v35 = vcombine.low %v1742_v28, %v1750_v16  ;;  %v1708_v44 = vrot.slane %v1693_v36, %v2519_v24  ;;  %v1752_v50 = vcombine.high %v1742_v28, %v1750_v16  ;;  %vm449_vm12 = vcmask 457728  }
  0x4b   : > { %v1716_v29 = vrot.slane %v1698_v38, %v2519_v24  ;;  %v2262_v18 = vcombine.low %v1542_v62, %v1542_v62  ;;  %v2313_v48 = vcombine.high %v1542_v62, %v1542_v62  ;;  %vm585_vm13 = vcmask 23552  }
  0x4c   : > { %964 = vrot.lane.b32.xlu0 %v2299_v51, %s2433_s16  ;;  %v1759_v43 = vrot.slane %v1751_v35, %v2525_v32  ;;  %v2792_v54 = vrot.slane %v1752_v50, %v2525_v32  ;;  %vm2103_vm14 = vcmask 523264  }
  0x4d   : > { %1153 = vrot.lane.b32.xlu1 %v2244_v3, %s2435_s18  ;;  %v1717_v45 = vcombine.low %v1708_v44, %v1716_v29  ;;  %v1718_v47 = vcombine.high %v1708_v44, %v1716_v29 }
  0x4e   : > { %v2267_v46 = vcombine.low %v1759_v43, %v1759_v43  ;;  %v2315_v42 = vcombine.high %v1759_v43, %v1759_v43  ;;  %v2271_v55 = vcombine.low %v2792_v54, %v2792_v54 }
  0x4f   : > { %v2779_v40 = vrot.slane %v1717_v45, %v2525_v32  ;;  %v2783_v49 = vrot.slane %v1718_v47, %v2525_v32 }
  0x50   : > { %969 = vrot.lane.b32.xlu0 %v2234_v37, %s2432_s15 }
  0x51   : > { %1163 = vrot.lane.b32.xlu1 %v2305_v7, %s2436_s19  ;;  %v2314_v51 = vcombine.high %v2779_v40, %v2779_v40  ;;  %v2270_v53 = vcombine.low %v2783_v49, %v2783_v49 }
  0x54   : > { %974 = vrot.lane.b32.xlu0 %v2235_v2, %s2435_s18 }
  0x55   : > { %1548 = vrot.lane.b32.xlu1 %v2258_v19, %s2431_s14 }
  0x58   : > { %979 = vrot.lane.b32.xlu0 %v2300_v20, %s2434_s17 }
  0x59   : > { %1553 = vrot.lane.b32.xlu1 %v2310_v25, %s2430_s13 }
  0x5c   : > { %984 = vrot.lane.b32.xlu0 %v2301_v27, %s2436_s19 }
  0x5d   : > { %1558 = vrot.lane.b32.xlu1 %v2311_v30, %s2433_s16 }
  0x60   : > { %1158 = vrot.lane.b32.xlu0 %v2304_v34, %s2434_s17 }
  0x61   : > { %1563 = vrot.lane.b32.xlu1 %v2261_v59, %s2432_s15 }
  0x64   : > { %1573 = vrot.lane.b32.xlu0 %v2312_v39, %s2434_s17 }
  0x65   : > { %1568 = vrot.lane.b32.xlu1 %v2262_v18, %s2435_s18 }
  0x68   : > { %1772 = vrot.lane.b32.xlu0 %v2267_v46, %s2431_s14 }
  0x69   : > { %1578 = vrot.lane.b32.xlu1 %v2313_v48, %s2436_s19 }
  0x6c   : > { %1782 = vrot.lane.b32.xlu0 %v2315_v42, %s2433_s16 }
  0x6d   : > { %1777 = vrot.lane.b32.xlu1 %v2314_v51, %s2430_s13 }
  0x70   : > { %1787 = vrot.lane.b32.xlu0 %v2270_v53, %s2432_s15 }
  0x74   : > { %1792 = vrot.lane.b32.xlu0 %v2271_v55, %s2435_s18 }
  0x82   : > { %v693_v56 = vpop.permute.xlu1 %692  ;;  %v689_v57 = vpop.permute.xlu0 %688 }
  0x83   : > { %v701_v58 = vpack.i.b16 %v2426_v0, %v693_v56  ;;  %v702_v23 = vshrl.u32 %v693_v56, 16  ;;  %v697_v7 = vshrl.u32 %v689_v57, 16 }
  0x85   : > { %v719_v60 = vrot.slane %v701_v58, %v2519_v24  ;;  %v703_v19 = vpack.i.b16 %v2426_v0, %v702_v23 }
  0x86   : > { %v1235_v63 = vpop.permute.xlu1 %1234  ;;  %v691_v3 = vpop.permute.xlu0 %690 }
  0x87   : > { %v696_v4 = vpack.i.b16 %v691_v3, %v689_v57  ;;  %v698_v37 = vshrl.u32 %v691_v3, 16  ;;  %v1243_v9 = vshrl.u32 %v1235_v63, 16  ;;  %v753_v35 = vrot.slane %v703_v19, %v2519_v24 }
  0x89   : > { %v711_v5 = vrot.slane %v696_v4, %v2519_v24  ;;  %v699_v20 = vpack.i.b16 %v698_v37, %v697_v7  ;;  %v2439_v4 = vmov 65535  }
  0x8a   : > { %v1239_v10 = vpop.permute.xlu1 %1238  ;;  %v1237_v12 = vpop.permute.xlu0 %1236  ;;  %v591_v23 = vsel %vm589_vm6, 4294967295, %v2439_v4 }
  0x8b   : > { %v720_v8 = vcombine.low %v711_v5, %v719_v60  ;;  %v721_v13 = vcombine.high %v711_v5, %v719_v60  ;;  %v1247_v2 = vpack.i.b16 %v2426_v0, %v1239_v10  ;;  %v1248_v14 = vshrl.u32 %v1239_v10, 16 }
  0x8c   : > { %v1242_v15 = vpack.i.b16 %v1237_v12, %v1235_v63  ;;  %v1244_v17 = vshrl.u32 %v1237_v12, 16  ;;  %v745_v36 = vrot.slane %v699_v20, %v2519_v24 }
  0x8d   : > { %v1265_v21 = vrot.slane %v1247_v2, %v2519_v24  ;;  %v735_v22 = vrot.slane %v721_v13, %v2525_v32  ;;  %v1249_v25 = vpack.i.b16 %v2426_v0, %v1248_v14  ;;  %v2811_v16 = vrot.slane %v720_v8, %v2525_v32 }
  0x8e   : > { %v1245_v26 = vpack.i.b16 %v1244_v17, %v1243_v9  ;;  %v1257_v27 = vrot.slane %v1242_v15, %v2519_v24  ;;  %v2808_v28 = vpop.permute.xlu0 %1915  ;;  %v754_v18 = vcombine.low %v745_v36, %v753_v35  ;;  %v755_v58 = vcombine.high %v745_v36, %v753_v35 }
  0x8f   : > { %v2296_v30 = vcombine.high %v735_v22, %v735_v22  ;;  %v1299_v31 = vrot.slane %v1249_v25, %v2519_v24  ;;  %v2294_v59 = vcombine.high %v2811_v16, %v2811_v16  ;;  %v2225_v45 = vcombine.low %v735_v22, %v735_v22 }
  0x90   : > { %v1267_v33 = vcombine.high %v1257_v27, %v1265_v21  ;;  %v1291_v34 = vrot.slane %v1245_v26, %v2519_v24  ;;  %v1266_v38 = vcombine.low %v1257_v27, %v1265_v21  ;;  %v762_v53 = vrot.slane %v754_v18, %v2525_v32 }
  0x91   : > { %800 = vrot.lane.b32.xlu0 %v2296_v30, %s2434_s17  ;;  %780 = vrot.lane.b32.xlu1 %v2294_v59, %s2430_s13  ;;  %v1924_v7 = vshrl.u32 %v2808_v28, 16  ;;  %v2848_v13 = vsel %vm590_vm9, %v591_v23, 0  ;;  %v769_v17 = vrot.slane %v755_v58, %v2525_v32 }
  0x92   : > { %v2820_v62 = vpop.permute.xlu0 %1919  ;;  %v1281_v39 = vrot.slane %v1267_v33, %v2525_v32  ;;  %v1300_v43 = vcombine.low %v1291_v34, %v1299_v31  ;;  %v1918_v29 = vpop.permute.xlu1 %1917  ;;  %v2825_v46 = vrot.slane %v1266_v38, %v2525_v32  ;;  %v1301_v63 = vcombine.high %v1291_v34, %v1299_v31 }
  0x93   : > { %v2222_v37 = vcombine.low %v762_v53, %v762_v53  ;;  %v1923_v5 = vpack.i.b16 %v1918_v29, %v2808_v28  ;;  %v2295_v8 = vcombine.high %v762_v53, %v762_v53  ;;  %v1929_v2 = vshrl.u32 %v2820_v62, 16 }
  0x94   : > { %v2252_v44 = vcombine.low %v1281_v39, %v1281_v39  ;;  %v2308_v48 = vcombine.high %v1281_v39, %v1281_v39  ;;  %v1308_v42 = vrot.slane %v1300_v43, %v2525_v32  ;;  %v2306_v51 = vcombine.high %v2825_v46, %v2825_v46  ;;  %v2211_v39 = vld [vmem:[%s3041_s4 + $0x4] sm:$0xf] }
  0x95   : > { %790 = vrot.lane.b32.xlu1 %v2225_v45, %s2432_s15  ;;  %v1315_v15 = vrot.slane %v1301_v63, %v2525_v32  ;;  %v1925_v21 = vshrl.u32 %v1918_v29, 16  ;;  %v1938_v22 = vrot.slane %v1923_v5, %v2519_v24  ;;  %v1930_v30 = vpack.i.b16 %v2426_v0, %v1929_v2 }
  0x96   : > { %1336 = vrot.lane.b32.xlu0 %v2252_v44, %s2432_s15  ;;  %v544_v47 = vpop.permute.xlu0 %543  ;;  %v2249_v3 = vcombine.low %v1308_v42, %v1308_v42  ;;  %v2307_v14 = vcombine.high %v1308_v42, %v1308_v42  ;;  %v2226_v38 = vcombine.low %v769_v17, %v769_v17  ;;  %v2297_v45 = vcombine.high %v769_v17, %v769_v17 }
  0x97   : > { %v539_v50 = vpop.permute.xlu1 %538  ;;  %v2253_v31 = vcombine.low %v1315_v15, %v1315_v15  ;;  %v1926_v35 = vpack.i.b16 %v1925_v21, %v1924_v7  ;;  %v2309_v44 = vcombine.high %v1315_v15, %v1315_v15  ;;  %v2316_v42 = vcombine.high %v2783_v49, %v2783_v49  ;;  %v2095_v21 = vld [vmem:[%s3042_s5] sm:$0xff] }
  0x98   : > { %v572_v55 = vsel %vm430_vm4, %v2548_v1, %v539_v50  ;;  %v1928_v1 = vpack.i.b16 %v2426_v0, %v2820_v62  ;;  %v1980_v0 = vrot.slane %v1930_v30, %v2519_v24  ;;  %v2317_v49 = vcombine.high %v2792_v54, %v2792_v54 }
  0x99   : > { %v574_v57 = vsel %vm434_vm5, %v572_v55, %v544_v47  ;;  %1326 = vrot.lane.b32.xlu1 %v2306_v51, %s2430_s13  ;;  %v1972_v18 = vrot.slane %v1926_v35, %v2519_v24 }
  0x9a   : > { %1346 = vrot.lane.b32.xlu0 %v2308_v48, %s2434_s17  ;;  %v554_v56 = vpop.permute.xlu0 %553  ;;  %v1946_v20 = vrot.slane %v1928_v1, %v2519_v24 }
  0x9b   : > { %v549_v60 = vpop.permute.xlu1 %548  ;;  %v1981_v51 = vcombine.low %v1972_v18, %v1980_v0  ;;  %v1982_v5 = vcombine.high %v1972_v18, %v1980_v0  ;;  %v2230_v0 = vld [vmem:[%s3041_s4 + $0xc] sm:$0xf] }
  0x9c   : > { %v576_v9 = vsel %vm437_vm7, %v574_v57, %v549_v60  ;;  %v1947_v36 = vcombine.low %v1938_v22, %v1946_v20  ;;  %v1948_v43 = vcombine.high %v1938_v22, %v1946_v20 }
  0x9d   : > { %v578_v12 = vsel %vm440_vm8, %v576_v9, %v554_v56  ;;  %775 = vrot.lane.b32.xlu1 %v2222_v37, %s2431_s14 }
  0x9e   : > { %1321 = vrot.lane.b32.xlu0 %v2249_v3, %s2431_s14  ;;  %v564_v10 = vpop.permute.xlu0 %563  ;;  %v1962_v55 = vrot.slane %v1948_v43, %v2525_v32  ;;  %v1989_v3 = vrot.slane %v1981_v51, %v2525_v32 }
  0x9f   : > { %v559_v19 = vpop.permute.xlu1 %558 }
  0xa0   : > { %v580_v25 = vsel %vm443_vm10, %v578_v12, %v559_v19  ;;  %v2279_v63 = vcombine.low %v1962_v55, %v1962_v55  ;;  %v2320_v1 = vcombine.high %v1962_v55, %v1962_v55  ;;  %v2276_v9 = vcombine.low %v1989_v3, %v1989_v3  ;;  %v314_v19 = vld [vmem:[%s3041_s4] sm:$0xf] }
  0xa1   : > { %v582_v27 = vsel %vm446_vm11, %v580_v25, %v564_v10  ;;  %785 = vrot.lane.b32.xlu1 %v2295_v8, %s2433_s16  ;;  %v2319_v2 = vcombine.high %v1989_v3, %v1989_v3 }
  0xa2   : > { %1331 = vrot.lane.b32.xlu0 %v2307_v14, %s2433_s16  ;;  %v569_v26 = vpop.permute.xlu0 %568  ;;  %v1996_v14 = vrot.slane %v1982_v5, %v2525_v32 }
  0xa3   : > { %v584_v28 = vsel %vm449_vm12, %v582_v27, %v569_v26  ;;  %v399_v33 = vpop.permute.xlu1 %398 }
  0xa4   : > { %v593_v34 = vand.u32 %v2848_v13, %v584_v28  ;;  %v433_v62 = vsel %vm430_vm4, %v2609_v61, %v399_v33  ;;  %v2873_v61 = vrot.slane %v1947_v36, %v2525_v32  ;;  %v2280_v22 = vcombine.low %v1996_v14, %v1996_v14 }
  0xa5   : > { %795 = vrot.lane.b32.xlu1 %v2226_v38, %s2435_s18  ;;  %v2321_v28 = vcombine.high %v1996_v14, %v1996_v14 }
  0xa6   : > { %1341 = vrot.lane.b32.xlu0 %v2253_v31, %s2435_s18  ;;  %v409_v59 = vpop.permute.xlu0 %408  ;;  %2341 = vmatpush3.bf16.msra.mxu0 %v593_v34  ;;  %v2318_v53 = vcombine.high %v2873_v61, %v2873_v61 }
  0xa7   : > { %2352 = vmatprep.subr.bf16.mxu0 %v2437_v6  ;;  %v404_v29 = vpop.permute.xlu1 %403 }
  0xa8   : > { %v436_v47 = vsel %vm434_vm5, %v433_v62, %v404_v29 }
  0xa9   : > { %2343 = vmatmul.mubr.msk.bf16.vlgmr.msra.gmra.mxu0 %vm585_vm13, %v2211_v39  ;;  %805 = vrot.lane.b32.xlu1 %v2297_v45, %s2436_s19  ;;  %v439_v24 = vsel %vm437_vm7, %v436_v47, %v409_v59 }
  0xaa   : > { %1351 = vrot.lane.b32.xlu0 %v2309_v44, %s2436_s19  ;;  %v414_v48 = vpop.permute.xlu0 %413  ;;  %2354 = vmatprep.mubr.msk.bf16.mxu0 %vm2438_vm3, %v2437_v6 }
  0xab   : > { %v960_v50 = vpop.permute.xlu1 %959  ;;  %v442_v57 = vsel %vm440_vm8, %v439_v24, %v414_v48 }
  0xad   : > { %2007 = vrot.lane.b32.xlu1 %v2318_v53, %s2430_s13 }
  0xae   : > { %1797 = vrot.lane.b32.xlu0 %v2316_v42, %s2434_s17  ;;  %v419_v56 = vpop.permute.xlu0 %418 }
  0xaf   : > { %v1134_v58 = vpop.permute.xlu1 %1133  ;;  %v445_v60 = vsel %vm443_vm10, %v442_v57, %v419_v56 }
  0xb0   : > { %v1167_v23 = vsel %vm430_vm4, %v2669_v52, %v1134_v58 }
  0xb1   : > { %2017 = vrot.lane.b32.xlu1 %v2279_v63, %s2432_s15 }
  0xb2   : > { %1802 = vrot.lane.b32.xlu0 %v2317_v49, %s2436_s19  ;;  %v424_v4 = vpop.permute.xlu0 %423 }
  0xb3   : > { %v1139_v54 = vpop.permute.xlu1 %1138  ;;  %v448_v37 = vsel %vm446_vm11, %v445_v60, %v424_v4 }
  0xb4   : > { %v1169_v10 = vsel %vm434_vm5, %v1167_v23, %v1139_v54 }
  0xb5   : > { %2002 = vrot.lane.b32.xlu1 %v2276_v9, %s2431_s14 }
  0xb6   : > { %2027 = vrot.lane.b32.xlu0 %v2320_v1, %s2434_s17  ;;  %v429_v12 = vpop.permute.xlu0 %428 }
  0xb7   : > { %v451_v7 = vsel %vm449_vm12, %v448_v37, %v429_v12  ;;  %v1144_v8 = vpop.permute.xlu1 %1143 }
  0xb8   : > { %v638_v52 = vand.u32 %v2848_v13, %v451_v7  ;;  %v1171_v15 = vsel %vm437_vm7, %v1169_v10, %v1144_v8 }
  0xb9   : > { %2012 = vrot.lane.b32.xlu1 %v2319_v2, %s2433_s16 }
  0xba   : > { %v955_v17 = vpop.permute.xlu0 %954  ;;  %2347 = vmatpush3.bf16.msra.mxu1 %v638_v52  ;;  %2098 = vperm.xlu0 %2417, %v2095_v21  }
  0xbb   : > { %2358 = vmatprep.subr.bf16.mxu1 %v2437_v6  ;;  %v1149_v20 = vpop.permute.xlu1 %1148  ;;  %v988_v32 = vsel %vm430_vm4, %v2630_v11, %v955_v17 }
  0xbc   : > { %v2917_v25 = vsel %vm440_vm8, %v1171_v15, %v1149_v20  ;;  %v990_v27 = vsel %vm434_vm5, %v988_v32, %v960_v50 }
  0xbd   : > { %2349 = vmatmul.mubr.msk.bf16.vlgmr.msra.gmra.mxu1 %vm585_vm13, %v314_v19  ;;  %2022 = vrot.lane.b32.xlu1 %v2280_v22, %s2435_s18  ;;  %s2203_s18 = sshll.u32 %s3047_s22, 3 }
  0xbe   : > { %v965_v26 = vpop.permute.xlu0 %964  ;;  %2360 = vmatprep.mubr.msk.bf16.mxu1 %vm2438_vm3, %v2437_v6  ;;  %s309_s23 = scalar_lea.vmem %s3043_s6, %s2203_s18 }
  0xbf   : > { %v992_v31 = vsel %vm437_vm7, %v990_v27, %v965_v26  ;;  %v1154_v39 = vpop.permute.xlu1 %1153 }
  0xc0   : > { %v1175_v19 = vsel %vm443_vm10, %v2917_v25, %v1154_v39 }
  0xc1   : > { %2032 = vrot.lane.b32.xlu1 %v2321_v28, %s2436_s19 }
  0xc2   : > { %v970_v30 = vpop.permute.xlu0 %969 }
  0xc3   : > { %v994_v11 = vsel %vm440_vm8, %v992_v31, %v970_v30  ;;  %v1164_v43 = vpop.permute.xlu1 %1163 }
  0xc6   : > { %v975_v33 = vpop.permute.xlu0 %974 }
  0xc7   : > { %v996_v34 = vsel %vm443_vm10, %v994_v11, %v975_v33  ;;  %v1549_v44 = vpop.permute.xlu1 %1548 }
  0xc8   : > { %v1582_v7 = vsel %vm430_vm4, %v2747_v41, %v1549_v44 }
  0xca   : > { %v980_v35 = vpop.permute.xlu0 %979 }
  0xcb   : > { %v998_v36 = vsel %vm446_vm11, %v996_v34, %v980_v35  ;;  %v1554_v18 = vpop.permute.xlu1 %1553 }
  0xce   : > { %v985_v38 = vpop.permute.xlu0 %984 }
  0xcf   : > { %v1000_v59 = vsel %vm449_vm12, %v998_v36, %v985_v38  ;;  %v1559_v47 = vpop.permute.xlu1 %1558  ;;  %v2248_v38 = vld [vmem:[%s3041_s4 + $0x14] sm:$0xf] }
  0xd0   : > { %v1004_v62 = vand.u32 %v1000_v59, %v2848_v13 }
  0xd2   : > { %2359 = vmatpush3.bf16.msra.mxu1 %v1004_v62  ;;  %v1159_v29 = vpop.permute.xlu0 %1158  ;;  %v2221_v62 = vld [vmem:[%s3041_s4 + $0x8] sm:$0xf] }
  0xd3   : > { %2370 = vmatprep.subr.bf16.mxu1 %v2437_v6  ;;  %v1564_v42 = vpop.permute.xlu1 %1563  ;;  %v1177_v22 = vsel %vm446_vm11, %v1175_v19, %v1159_v29 }
  0xd4   : > { %v1179_v34 = vsel %vm449_vm12, %v1177_v22, %v1164_v43 }
  0xd5   : > { %2361 = vmatmul.mubr.msk.bf16.vlgmr.msra.gmra.mxu1 %vm585_vm13, %v2230_v0  ;;  %v1183_v0 = vand.u32 %v1179_v34, %v2848_v13 }
  0xd6   : > { %2372 = vmatprep.mubr.msk.bf16.mxu1 %vm2438_vm3, %v2437_v6  ;;  %v2938_v45 = vpop.permute.xlu0 %1573 }
  0xd7   : > { %v1569_v50 = vpop.permute.xlu1 %1568 }
  0xda   : > { %v1773_v48 = vpop.permute.xlu0 %1772 }
  0xdb   : > { %v2940_v53 = vpop.permute.xlu1 %1578 }
  0xde   : > { %v1783_v24 = vpop.permute.xlu0 %1782 }
  0xdf   : > { %v1778_v56 = vpop.permute.xlu1 %1777 }
  0xe2   : > { %v1788_v51 = vpop.permute.xlu0 %1787 }
  0xe6   : > { %v1793_v55 = vpop.permute.xlu0 %1792 }
 0x103   : > { %v801_v49 = vpop.permute.xlu0 %800  ;;  %v781_v57 = vpop.permute.xlu1 %780 }
 0x107   : > { %v791_v63 = vpop.permute.xlu1 %790 }
 0x108   : > { %v1337_v58 = vpop.permute.xlu0 %1336 }
 0x10b   : > { %v1327_v60 = vpop.permute.xlu1 %1326 }
 0x10c   : > { %v1347_v3 = vpop.permute.xlu0 %1346 }
 0x10f   : > { %v776_v1 = vpop.permute.xlu1 %775 }
 0x110   : > { %v1322_v4 = vpop.permute.xlu0 %1321  ;;  %v809_v54 = vsel %vm430_vm4, %v2811_v16, %v776_v1  ;;  %v1584_v16 = vsel %vm434_vm5, %v1582_v7, %v1554_v18 }
 0x111   : > { %v1355_v23 = vsel %vm430_vm4, %v2825_v46, %v1322_v4  ;;  %v811_v10 = vsel %vm434_vm5, %v809_v54, %v781_v57  ;;  %v1806_v46 = vsel %vm430_vm4, %v2779_v40, %v1773_v48  ;;  %v1586_v21 = vsel %vm437_vm7, %v1584_v16, %v1559_v47 }
 0x112   : > { %v1357_v5 = vsel %vm434_vm5, %v1355_v23, %v1327_v60  ;;  %v1808_v41 = vsel %vm434_vm5, %v1806_v46, %v1778_v56  ;;  %v1588_v11 = vsel %vm440_vm8, %v1586_v21, %v1564_v42 }
 0x113   : > { %v786_v12 = vpop.permute.xlu1 %785  ;;  %v1810_v26 = vsel %vm437_vm7, %v1808_v41, %v1783_v24  ;;  %v1590_v39 = vsel %vm443_vm10, %v1588_v11, %v1569_v50  ;;  %v2266_v50 = vld [vmem:[%s3041_s4 + $0x1c] sm:$0xf] }
 0x114   : > { %v1332_v37 = vpop.permute.xlu0 %1331  ;;  %v813_v8 = vsel %vm437_vm7, %v811_v10, %v786_v12  ;;  %v1812_v36 = vsel %vm440_vm8, %v1810_v26, %v1788_v51  ;;  %v1592_v18 = vsel %vm446_vm11, %v1590_v39, %v2938_v45  ;;  %v2239_v51 = vld [vmem:[%s3041_s4 + $0x10] sm:$0xf] }
 0x115   : > { %v1359_v9 = vsel %vm437_vm7, %v1357_v5, %v1332_v37  ;;  %v815_v15 = vsel %vm440_vm8, %v813_v8, %v791_v63  ;;  %v1814_v43 = vsel %vm443_vm10, %v1812_v36, %v1793_v55  ;;  %v1594_v24 = vsel %vm449_vm12, %v1592_v18, %v2940_v53  ;;  %v2257_v63 = vld [vmem:[%s3041_s4 + $0x18] sm:$0xf]  ;;  %v2275_v37 = vld [vmem:[%s3041_s4 + $0x20] sm:$0xf] }
 0x116   : > { %v1361_v2 = vsel %vm440_vm8, %v1359_v9, %v1337_v58  ;;  %v1598_v56 = vand.u32 %v1594_v24, %v2848_v13 }
 0x117   : > { %v796_v17 = vpop.permute.xlu1 %795 }
 0x118   : > { %v1342_v52 = vpop.permute.xlu0 %1341  ;;  %v817_v20 = vsel %vm443_vm10, %v815_v15, %v796_v17 }
 0x119   : > { %v1363_v14 = vsel %vm443_vm10, %v1361_v2, %v1342_v52  ;;  %v819_v28 = vsel %vm446_vm11, %v817_v20, %v801_v49 }
 0x11a   : > { %v1365_v32 = vsel %vm446_vm11, %v1363_v14, %v1347_v3 }
 0x11b   : > { %v806_v30 = vpop.permute.xlu1 %805 }
 0x11c   : > { %v1352_v40 = vpop.permute.xlu0 %1351  ;;  %v821_v31 = vsel %vm449_vm12, %v819_v28, %v806_v30 }
 0x11d   : > { %v1367_v27 = vsel %vm449_vm12, %v1365_v32, %v1352_v40  ;;  %v825_v33 = vand.u32 %v821_v31, %v2848_v13 }
 0x11e   : > { %v1371_v25 = vand.u32 %v1367_v27, %v2848_v13 }
 0x11f   : > { %2353 = vmatpush3.bf16.msra.mxu0 %v825_v33  ;;  %v2008_v59 = vpop.permute.xlu1 %2007 }
 0x120   : > { %v1798_v35 = vpop.permute.xlu0 %1797  ;;  %2371 = vmatpush3.bf16.msra.mxu1 %v1371_v25  ;;  %2364 = vmatprep.subr.bf16.mxu0 %v2437_v6 }
 0x121   : > { %2382 = vmatprep.subr.bf16.mxu1 %v2437_v6  ;;  %v1816_v44 = vsel %vm446_vm11, %v1814_v43, %v1798_v35 }
 0x122   : > { %2355 = vmatmul.mubr.msk.bf16.vlgmr.msra.gmra.mxu0 %vm585_vm13, %v2221_v62 }
 0x123   : > { %2373 = vmatmul.mubr.msk.bf16.vlgmr.msra.gmra.mxu1 %vm585_vm13, %v2248_v38  ;;  %2365 = vmatpush3.bf16.msra.mxu0 %v1183_v0  ;;  %v2018_v48 = vpop.permute.xlu1 %2017 }
 0x124   : > { %v1803_v29 = vpop.permute.xlu0 %1802  ;;  %2384 = vmatprep.mubr.msk.bf16.mxu1 %vm2438_vm3, %v2437_v6  ;;  %2366 = vmatprep.mubr.msk.bf16.mxu0 %vm2438_vm3, %v2437_v6 }
 0x125   : > { %v1818_v47 = vsel %vm449_vm12, %v1816_v44, %v1803_v29  ;;  %2376 = vmatprep.subr.bf16.mxu0 %v2437_v6 }
 0x126   : > { %v1822_v42 = vand.u32 %v1818_v47, %v2848_v13 }
 0x127   : > { %v2003_v45 = vpop.permute.xlu1 %2002 }
 0x128   : > { %2383 = vmatpush3.bf16.msra.mxu1 %v1822_v42  ;;  %v2036_v55 = vsel %vm430_vm4, %v2873_v61, %v2003_v45  ;;  %v2028_v60 = vpop.permute.xlu0 %2027 }
 0x129   : > { %v2038_v53 = vsel %vm434_vm5, %v2036_v55, %v2008_v59 }
 0x12a   : > { %2367 = vmatmul.mubr.msk.bf16.vlgmr.msra.gmra.mxu0 %vm585_vm13, %v2239_v51 }
 0x12b   : > { %2385 = vmatmul.mubr.msk.bf16.vlgmr.msra.gmra.mxu1 %vm585_vm13, %v2266_v50  ;;  %2377 = vmatpush3.bf16.msra.mxu0 %v1598_v56  ;;  %v2013_v49 = vpop.permute.xlu1 %2012 }
 0x12c   : > { %2378 = vmatprep.mubr.msk.bf16.mxu0 %vm2438_vm3, %v2437_v6  ;;  %v2040_v57 = vsel %vm437_vm7, %v2038_v53, %v2013_v49  ;;  %2388 = vmatprep.subr.bf16.mxu0 %v2437_v6 }
 0x12d   : > { %v2042_v58 = vsel %vm440_vm8, %v2040_v57, %v2018_v48 }
 0x12f   : > { %v2023_v61 = vpop.permute.xlu1 %2022 }
 0x130   : > { %v2044_v3 = vsel %vm443_vm10, %v2042_v58, %v2023_v61 }
 0x131   : > { %v2046_v4 = vsel %vm446_vm11, %v2044_v3, %v2028_v60 }
 0x132   : > { %2379 = vmatmul.mubr.msk.bf16.vlgmr.msra.gmra.mxu0 %vm585_vm13, %v2257_v63 }
 0x133   : > { %v2033_v23 = vpop.permute.xlu1 %2032  ;;  %2390 = vmatprep.mubr.msk.bf16.mxu0 %vm2438_vm3, %v2437_v6 }
 0x134   : > { %v2048_v1 = vsel %vm449_vm12, %v2046_v4, %v2033_v23 }
 0x135   : > { %v2052_v54 = vand.u32 %v2048_v1, %v2848_v13  ;;  %v2099_v29 = vpop.permute.xlu0 %2098 }
 0x137   : > { %2389 = vmatpush3.bf16.msra.mxu0 %v2052_v54 }
 0x13a   : > { %2391 = vmatmul.mubr.msk.bf16.vlgmr.msra.gmra.mxu0 %vm585_vm13, %v2275_v37 }
 0x169   : > { %v629_v5 = vpop.f32.mrf.mxu0 }
 0x16b   : > { %v2344_v9 = vpop.f32.mrf.mxu0 }
 0x16d   : > { %v632_v10 = vpop.f32.mrf.mxu0 }
 0x16f   : > { %v2345_v12 = vpop.f32.mrf.mxu0 }
 0x17d   : > { %v674_v7 = vpop.f32.mrf.mxu1 }
 0x17e   : > { %v675_v8 = vadd.f32 %v674_v7, %v629_v5 }
 0x17f   : > { %v2350_v46 = vpop.f32.mrf.mxu1 }
 0x181   : > { %v677_v52 = vpop.f32.mrf.mxu1 }
 0x183   : > { %v2351_v6 = vpop.f32.mrf.mxu1 }
 0x195   : > { %v1040_v2 = vpop.f32.mrf.mxu1 }
 0x197   : > { %v2362_v16 = vpop.f32.mrf.mxu1 }
 0x199   : > { %v1043_v14 = vpop.f32.mrf.mxu1 }
 0x19b   : > { %v2363_v13 = vpop.f32.mrf.mxu1 }
 0x1e2   : > { %v861_v17 = vpop.f32.mrf.mxu0 }
 0x1e3   : > { %v1407_v15 = vpop.f32.mrf.mxu1  ;;  %v867_v22 = vadd.f32 %v861_v17, %v675_v8 }
 0x1e4   : > { %v2356_v41 = vpop.f32.mrf.mxu0 }
 0x1e5   : > { %v2374_v19 = vpop.f32.mrf.mxu1  ;;  %v1046_v25 = vadd.f32 %v1040_v2, %v867_v22 }
 0x1e6   : > { %v864_v21 = vpop.f32.mrf.mxu0 }
 0x1e7   : > { %v1410_v20 = vpop.f32.mrf.mxu1 }
 0x1e8   : > { %v2357_v32 = vpop.f32.mrf.mxu0 }
 0x1e9   : > { %v2375_v40 = vpop.f32.mrf.mxu1 }
 0x1ea   : > { %v1219_v27 = vpop.f32.mrf.mxu0 }
 0x1eb   : > { %v1858_v26 = vpop.f32.mrf.mxu1  ;;  %v1225_v33 = vadd.f32 %v1219_v27, %v1046_v25 }
 0x1ec   : > { %v2368_v30 = vpop.f32.mrf.mxu0 }
 0x1ed   : > { %v2386_v28 = vpop.f32.mrf.mxu1  ;;  %v1413_v38 = vadd.f32 %v1407_v15, %v1225_v33 }
 0x1ee   : > { %v1222_v11 = vpop.f32.mrf.mxu0 }
 0x1ef   : > { %v1861_v31 = vpop.f32.mrf.mxu1 }
 0x1f0   : > { %v2369_v35 = vpop.f32.mrf.mxu0 }
 0x1f1   : > { %v2387_v34 = vpop.f32.mrf.mxu1 }
 0x1f2   : > { %v1634_v36 = vpop.f32.mrf.mxu0 }
 0x1f3   : > { %v1640_v62 = vadd.f32 %v1634_v36, %v1413_v38 }
 0x1f4   : > { %v2380_v59 = vpop.f32.mrf.mxu0 }
 0x1f5   : > { %v1864_v43 = vadd.f32 %v1858_v26, %v1640_v62 }
 0x1f6   : > { %v1637_v39 = vpop.f32.mrf.mxu0 }
 0x1f8   : > { %v2381_v0 = vpop.f32.mrf.mxu0 }
 0x1fa   : > { %v2088_v44 = vpop.f32.mrf.mxu0 }
 0x1fb   : > { %v2094_v18 = vadd.f32 %v2088_v44, %v1864_v43 }
 0x1fc   : > { %v2392_v47 = vpop.f32.mrf.mxu0 }
 0x1fd   : > { %v2101_v48 = vadd.f32 %v2099_v29, %v2094_v18 }
 0x1fe   : > { %v2091_v42 = vpop.f32.mrf.mxu0 }
 0x1ff   : > { %v2102_v24 = vmax.f32 %v2101_v48, 0.0 }
 0x200   : > { %v2393_v50 = vpop.f32.mrf.mxu0 }
 0x201   : > { %2104 = vst.msk [vmem:[%s309_s23] sm:$0xff] %vm2103_vm14, %v2102_v24 }
 0x202 PF: > { %s16_s21 = sadd.s32 1, %s2424_s21  }
 0x203   : > { %p13_p4 = scmp.ge.s32.totalorder %s16_s21, 4  }
 0x205   :  { %15 = sbr.rel (!%p13_p4) target bundleno = 1 (0x1), region = 91 }

// kernel: timm_backbone_forward.7
= control target key start
LH: loop header
LB: loop body
LE: loop exit
PB: predicated region body
PF: predicated region fallthrough
CT: control target
= control target key end

     0   :  { %s2298_s21 = smov 0   ;;  %s2798_s0 = inlined_call_operand.vmem [shape: bf16[2,8,5,5], index: 0, kind: input, shape index: {}]   ;;  %s2799_s1 = inlined_call_operand.vmem [shape: bf16[2,8,5,5], index: 1, kind: input, shape index: {}]   ;;  %s2800_s2 = inlined_call_operand.vmem [shape: bf16[2,8,5,5], index: 2, kind: input, shape index: {}]   ;;  %s2801_s3 = inlined_call_operand.vmem [shape: bf16[2,8,5,5], index: 3, kind: input, shape index: {}]   ;;  %s2802_s4 = inlined_call_operand.vmem [shape: bf16[9,16,8], index: 4, kind: input, shape index: {}]   ;;  %s2803_s5 = inlined_call_operand.vmem [shape: f32[16,1], index: 5, kind: input, shape index: {}]   ;;  %s2804_s6 = inlined_call_operand.vmem [shape: f32[2,16,16], index: 6, kind: output, shape index: {}]  }
   0x1 LB: > { %s2047_s22 = sadd.s32 4294967295, %s2252_s21   ;;  %p2051_p0 = scmp.ge.s32.totalorder %s2252_s21, 1  ;;  %s2252_s21 = sphi %s2298_s21, %s16_s21  }
   0x2   : > { %p242_p1 = scmp.lt.s32.totalorder %s2252_s21, 3 }
   0x4   : > { %p243_p2 = pnand %p2051_p0, %p242_p1 }
   0x5   : > { %p287_p3 = scmp.lt.s32.totalorder (!%p243_p2), %s2047_s22, 1  ;;  %s2255_s27 = smov (!%p243_p2), 127  }
   0x6   : > { %246 = sbr.rel (%p243_p2) target bundleno = 517 (0x205), region = 44  ;;  %s2258_s13 = smov (!%p243_p2), 8  }
   0x7   : > { %s2259_s14 = smov (!%p243_p2), 4   ;;  %s2260_s15 = smov (!%p243_p2), 12  }
   0xb   : > { %s2806_s22 = smov (!%p287_p3, %s2047_s22), 1  ;;  %v2254_v0 = vmov 0   ;;  %v327_v6 = vlaneseq  ;;  %v2256_v14 = vmov 1983009808   ;;  %v2257_v44 = vmov 1934713408  }
   0xc   : > { %2219 = vset.pattern.permute.xlu1 %v2254_v0  ;;  %2220 = vset.pattern.permute.xlu0 %v2254_v0  ;;  %s2311_s23 = sshll.u32 %s2806_s22, 5  ;;  %v325_v15 = vunpack.c.l.s4 %v2256_v14  ;;  %v341_v45 = vunpack.c.l.s4 %v2257_v44  ;;  %vm2262_vm0 = vmmov 0   ;;  %vm397_vm1 = vcmask 31744   ;;  %s2129_s16 = sshll.u32 %s2806_s22, 4 }
   0xd   : > { %s2317_s26 = scalar_lea.vmem %s2798_s0, %s2311_s23  ;;  %s2339_s30 = scalar_lea.vmem %s2800_s2, %s2311_s23  ;;  %v2341_v19 = vshrl.u32 %v327_v6, 7  ;;  %vm401_vm2 = vcmask 64512   ;;  %vm404_vm3 = vcmask 97280   ;;  %vm507_vm4 = vcmask 1043456  }
   0xe   : > { %v604_v1 = vld [vmem:[%s2317_s26 + $0x8] sm:$0x3]  ;;  %v602_v2 = vld [vmem:[%s2317_s26] sm:$0x3]  ;;  %v605_v3 = vld [vmem:[%s2317_s26 + $0xc] sm:$0x3]  ;;  %s2349_s9 = scalar_lea.vmem %s2799_s1, %s2311_s23  ;;  %v326_v33 = vunpack.c.0.s8 %v325_v15  ;;  %v342_v62 = vunpack.c.0.s8 %v341_v45  ;;  %s2407_s12 = scalar_lea.vmem %s2801_s3, %s2311_s23 }
   0xf   : > { %625 = vrot.lane.b32.xlu1 %v604_v1, %s2255_s27  ;;  %621 = vrot.lane.b32.xlu0 %v602_v2, %s2255_s27  ;;  %v603_v4 = vld [vmem:[%s2317_s26 + $0x4] sm:$0x3]  ;;  %v607_v5 = vld [vmem:[%s2317_s26 + $0x14] sm:$0x3]  ;;  %s311_s19 = scalar_lea.vmem %s2804_s6, %s2129_s16  ;;  %vm1953_vm5 = vcmask 130048  }
  0x10   : > { %v606_v7 = vld [vmem:[%s2317_s26 + $0x10] sm:$0x3]  ;;  %v1697_v8 = vld [vmem:[%s2317_s26 + $0x4] sm:$0x7]  ;;  %v1696_v9 = vld [vmem:[%s2317_s26] sm:$0x7]  ;;  %v2372_v53 = vsub.s32 %v326_v33, %v2341_v19 }
  0x11   : > { %v1717_v10 = vshrl.u32 %v1697_v8, 16  ;;  %v1720_v11 = vshll.u32 %v1697_v8, 16  ;;  %v1699_v12 = vld [vmem:[%s2317_s26 + $0xc] sm:$0x7]  ;;  %v1698_v13 = vld [vmem:[%s2317_s26 + $0x8] sm:$0x7] }
  0x12   : > { %v1708_v18 = vshrl.u32 %v1696_v9, 16  ;;  %v609_v20 = vld [vmem:[%s2317_s26 + $0x1c] sm:$0x3]  ;;  %v608_v21 = vld [vmem:[%s2317_s26 + $0x18] sm:$0x3]  ;;  %v1711_v22 = vshll.u32 %v1696_v9, 16 }
  0x13   : > { %627 = vrot.lane.b32.xlu1 %v605_v3, %s2255_s27  ;;  %623 = vrot.lane.b32.xlu0 %v603_v4, %s2255_s27  ;;  %v1719_v16 = vrot.slane %v1717_v10, 4  ;;  %v1722_v17 = vrot.slane %v1720_v11, 5  ;;  %v1735_v23 = vshrl.u32 %v1699_v12, 16  ;;  %v1738_v24 = vshll.u32 %v1699_v12, 16  ;;  %v1701_v26 = vld [vmem:[%s2317_s26 + $0x14] sm:$0x7] }
  0x14   : > { %v1726_v25 = vshrl.u32 %v1698_v13, 16  ;;  %v1070_v27 = vld [vmem:[%s2339_s30 + $0x4] sm:$0x3]  ;;  %v1069_v28 = vld [vmem:[%s2339_s30] sm:$0x3]  ;;  %v1710_v30 = vrot.slane %v1708_v18, 4 }
  0x15   : > { %v1723_v29 = vor.u32 %v1722_v17, %v1719_v16  ;;  %v1729_v31 = vshll.u32 %v1698_v13, 16  ;;  %v1700_v32 = vld [vmem:[%s2317_s26 + $0x10] sm:$0x7]  ;;  %v1713_v34 = vrot.slane %v1711_v22, 5  ;;  %v2357_v35 = vrot.slane %v1735_v23, 4 }
  0x16   : > { %v1753_v36 = vshrl.u32 %v1701_v26, 16  ;;  %v1756_v37 = vshll.u32 %v1701_v26, 16  ;;  %v2359_v38 = vrot.slane %v1738_v24, 5  ;;  %v2361_v39 = vrot.slane %v1726_v25, 4  ;;  %v1703_v40 = vld [vmem:[%s2317_s26 + $0x1c] sm:$0x7] }
  0x17   : > { %631 = vrot.lane.b32.xlu1 %v607_v5, %s2255_s27  ;;  %629 = vrot.lane.b32.xlu0 %v606_v7, %s2255_s27  ;;  %v1072_v41 = vld [vmem:[%s2339_s30 + $0xc] sm:$0x3]  ;;  %v1071_v42 = vld [vmem:[%s2339_s30 + $0x8] sm:$0x3]  ;;  %v1724_v46 = vrot.slane %v1723_v29, 4  ;;  %v2369_v47 = vrot.slane %v1729_v31, 5  ;;  %v1714_v7 = vor.u32 %v1713_v34, %v1710_v30  ;;  %v2397_v13 = vsub.s32 %v342_v62, %v2341_v19 }
  0x18   : > { %v1702_v43 = vld [vmem:[%s2317_s26 + $0x18] sm:$0x7]  ;;  %v1744_v48 = vshrl.u32 %v1700_v32, 16  ;;  %v1747_v49 = vshll.u32 %v1700_v32, 16  ;;  %v1755_v50 = vrot.slane %v1753_v36, 4  ;;  %v1758_v51 = vrot.slane %v1756_v37, 5 }
  0x19   : > { %v1771_v52 = vshrl.u32 %v1703_v40, 16  ;;  %v2221_v54 = vld [vmem:[%s2349_s9] ss:$16 sps:$4 sm:$0x33]   ;;  %v1074_v57 = vld [vmem:[%s2339_s30 + $0x14] sm:$0x3]  ;;  %v1741_v12 = vor.u32 %v2359_v38, %v2357_v35  ;;  %v1732_v22 = vor.u32 %v2369_v47, %v2361_v39 }
  0x1a   : > { %v2222_v55 = vld [vmem:[%s2349_s9 + $0x8] ss:$16 sps:$4 sm:$0x33]   ;;  %v2223_v56 = vld [vmem:[%s2349_s9 + $0x4] ss:$16 sps:$4 sm:$0x33]   ;;  %v425_v1 = vrot.slane %v2221_v54, %v2372_v53  ;;  %v1759_v23 = vor.u32 %v1758_v51, %v1755_v50 }
  0x1b   : > { %635 = vrot.lane.b32.xlu1 %v609_v20, %s2255_s27  ;;  %633 = vrot.lane.b32.xlu0 %v608_v21, %s2255_s27  ;;  %v1774_v58 = vshll.u32 %v1703_v40, 16  ;;  %v2224_v59 = vld [vmem:[%s2349_s9 + $0xc] ss:$16 sps:$4 sm:$0x33]   ;;  %v1762_v60 = vshrl.u32 %v1702_v43, 16  ;;  %v1765_v61 = vshll.u32 %v1702_v43, 16  ;;  %v433_v2 = vrot.slane %v2222_v55, %v2372_v53 }
  0x1c   : > { %v1073_v63 = vld [vmem:[%s2339_s30 + $0x10] sm:$0x3]  ;;  %v450_v3 = vrot.slane %v2223_v56, %v2372_v53  ;;  %v458_v4 = vrot.slane %v2224_v59, %v2372_v53  ;;  %v1076_v5 = vld [vmem:[%s2339_s30 + $0x1c] sm:$0x3]  ;;  %v1075_v6 = vld [vmem:[%s2339_s30 + $0x18] sm:$0x3] }
  0x1d   : > { %v2225_v8 = vld [vmem:[%s2317_s26] ss:$16 sps:$4 sm:$0x33]   ;;  %v2226_v9 = vld [vmem:[%s2317_s26 + $0x8] ss:$16 sps:$4 sm:$0x33]   ;;  %v434_v14 = vcombine.low %v425_v1, %v433_v2 }
  0x1e   : > { %v2227_v10 = vld [vmem:[%s2317_s26 + $0x4] ss:$16 sps:$4 sm:$0x33]   ;;  %v2228_v11 = vld [vmem:[%s2317_s26 + $0xc] ss:$16 sps:$4 sm:$0x33]   ;;  %v459_v15 = vcombine.low %v450_v3, %v458_v4  ;;  %v330_v18 = vrot.slane %v2225_v8, %v2372_v53  ;;  %v338_v20 = vrot.slane %v2226_v9, %v2372_v53 }
  0x1f   : > { %1090 = vrot.lane.b32.xlu1 %v1070_v27, %s2255_s27  ;;  %1088 = vrot.lane.b32.xlu0 %v1069_v28, %s2255_s27  ;;  %v1746_v16 = vrot.slane %v1744_v48, 4  ;;  %v1749_v17 = vrot.slane %v1747_v49, 5  ;;  %v1715_v21 = vrot.slane %v1714_v7, 4  ;;  %v1773_v24 = vrot.slane %v1771_v52, 4 }
  0x20   : > { %v1776_v19 = vrot.slane %v1774_v58, 5  ;;  %v1764_v25 = vrot.slane %v1762_v60, 4  ;;  %v355_v26 = vrot.slane %v2227_v10, %v2372_v53  ;;  %v363_v27 = vrot.slane %v2228_v11, %v2372_v53  ;;  %v2229_v31 = vld [vmem:[%s2339_s30] ss:$16 sps:$4 sm:$0x33]  }
  0x21   : > { %v1767_v28 = vrot.slane %v1765_v61, 5  ;;  %v2414_v29 = vrot.slane %v434_v14, %v2397_v13  ;;  %v2417_v30 = vrot.slane %v459_v15, %v2397_v13  ;;  %v2230_v32 = vld [vmem:[%s2339_s30 + $0x8] ss:$16 sps:$4 sm:$0x33]   ;;  %v1750_v33 = vor.u32 %v1749_v17, %v1746_v16 }
  0x22   : > { %v339_v34 = vcombine.low %v330_v18, %v338_v20  ;;  %v2231_v35 = vld [vmem:[%s2339_s30 + $0x4] ss:$16 sps:$4 sm:$0x33]   ;;  %v2232_v36 = vld [vmem:[%s2339_s30 + $0xc] ss:$16 sps:$4 sm:$0x33]   ;;  %v364_v40 = vcombine.low %v355_v26, %v363_v27  ;;  %v797_v49 = vrot.slane %v2229_v31, %v2372_v53  ;;  %v805_v50 = vrot.slane %v2230_v32, %v2372_v53 }
  0x23   : > { %1094 = vrot.lane.b32.xlu1 %v1072_v41, %s2255_s27  ;;  %1092 = vrot.lane.b32.xlu0 %v1071_v42, %s2255_s27  ;;  %v1742_v37 = vrot.slane %v1741_v12, 4  ;;  %v1733_v38 = vrot.slane %v1732_v22, 4  ;;  %v1760_v39 = vrot.slane %v1759_v23, 4  ;;  %v1777_v41 = vor.u32 %v1776_v19, %v1773_v24  ;;  %v2233_v54 = vld [vmem:[%s2407_s12] ss:$16 sps:$4 sm:$0x33]  }
  0x24   : > { %v1768_v42 = vor.u32 %v1767_v28, %v1764_v25  ;;  %v442_v43 = vcombine.high %v2414_v29, %v2254_v0  ;;  %v467_v44 = vcombine.high %v2417_v30, %v2254_v0  ;;  %v1751_v45 = vrot.slane %v1750_v33, 4  ;;  %v2234_v55 = vld [vmem:[%s2407_s12 + $0x8] ss:$16 sps:$4 sm:$0x33]  }
  0x25   : > { %v472_v47 = vshrl.u32 %v2417_v30, 16  ;;  %v2432_v48 = vrot.slane %v339_v34, %v2397_v13  ;;  %v822_v51 = vrot.slane %v2231_v35, %v2372_v53  ;;  %v830_v52 = vrot.slane %v2232_v36, %v2372_v53  ;;  %v2236_v58 = vld [vmem:[%s2407_s12 + $0xc] ss:$16 sps:$4 sm:$0x33]  }
  0x26   : > { %v2443_v56 = vrot.slane %v364_v40, %v2397_v13  ;;  %v1778_v59 = vrot.slane %v1777_v41, 4  ;;  %v1769_v60 = vrot.slane %v1768_v42, 4  ;;  %v476_v61 = vpack.i.b16 %v467_v44, %v442_v43 }
  0x27   : > { %1098 = vrot.lane.b32.xlu1 %v1074_v57, %s2255_s27  ;;  %1096 = vrot.lane.b32.xlu0 %v1073_v63, %s2255_s27  ;;  %v2235_v57 = vld [vmem:[%s2407_s12 + $0x4] ss:$16 sps:$4 sm:$0x33]   ;;  %v477_v62 = vshrl.u32 %v442_v43, 16  ;;  %v478_v1 = vshrl.u32 %v467_v44, 16  ;;  %v347_v2 = vcombine.high %v2432_v48, %v2254_v0  ;;  %v376_v4 = vshrl.u32 %v2432_v48, 16 }
  0x28   : > { %v372_v3 = vcombine.high %v2443_v56, %v2254_v0  ;;  %v942_v7 = vrot.slane %v2233_v54, %v2372_v53  ;;  %v377_v8 = vshrl.u32 %v2443_v56, 16  ;;  %v950_v9 = vrot.slane %v2234_v55, %v2372_v53 }
  0x29   : > { %v967_v10 = vrot.slane %v2235_v57, %v2372_v53  ;;  %v975_v11 = vrot.slane %v2236_v58, %v2372_v53  ;;  %v479_v12 = vpack.i.b16 %v478_v1, %v477_v62  ;;  %v382_v14 = vshrl.u32 %v347_v2, 16 }
  0x2a   : > { %v383_v15 = vshrl.u32 %v372_v3, 16  ;;  %v2068_v16 = vcombine.low %v476_v61, %v476_v61  ;;  %v951_v22 = vcombine.low %v942_v7, %v950_v9  ;;  %v381_v25 = vpack.i.b16 %v372_v3, %v347_v2  ;;  %v1246_v2 = vld [vmem:[%s2317_s26] sm:$0x7]  ;;  %v1247_v3 = vld [vmem:[%s2317_s26 + $0x4] sm:$0x7] }
  0x2b   : > { %1102 = vrot.lane.b32.xlu1 %v1076_v5, %s2255_s27  ;;  %1100 = vrot.lane.b32.xlu0 %v1075_v6, %s2255_s27  ;;  %v806_v5 = vcombine.low %v797_v49, %v805_v50  ;;  %v831_v6 = vcombine.low %v822_v51, %v830_v52  ;;  %v976_v23 = vcombine.low %v967_v10, %v975_v11  ;;  %v1252_v7 = vld [vmem:[%s2317_s26 + $0x18] sm:$0x7]  ;;  %v1261_v9 = vshll.u32 %v1246_v2, 16 }
  0x2c   : > { %v2069_v24 = vcombine.low %v479_v12, %v479_v12  ;;  %v384_v19 = vpack.i.b16 %v383_v15, %v382_v14  ;;  %v2476_v33 = vrot.slane %v951_v22, %v2397_v13  ;;  %v2063_v36 = vcombine.low %v381_v25, %v381_v25  ;;  %v1249_v15 = vld [vmem:[%s2317_s26 + $0xc] sm:$0x7] }
  0x2d   : > { %v2460_v18 = vrot.slane %v806_v5, %v2397_v13  ;;  %v2463_v20 = vrot.slane %v831_v6, %v2397_v13  ;;  %v2479_v34 = vrot.slane %v976_v23, %v2397_v13  ;;  %v375_v61 = vpack.i.b16 %v2443_v56, %v2432_v48  ;;  %v1250_v5 = vld [vmem:[%s2317_s26 + $0x10] sm:$0x7]  ;;  %v1251_v6 = vld [vmem:[%s2317_s26 + $0x14] sm:$0x7]  ;;  %v2238_v48 = vld [vmem:[%s2802_s4 + $0x8] sm:$0xff]  }
  0x2e   : > { %v2064_v35 = vcombine.low %v384_v19, %v384_v19  ;;  %v988_v41 = vshrl.u32 %v2476_v33, 16  ;;  %v959_v43 = vcombine.high %v2476_v33, %v2254_v0  ;;  %v1267_v10 = vshrl.u32 %v1247_v3, 16 }
  0x2f   : > { %1781 = vrot.lane.b32.xlu1 %v1724_v46, %s2255_s27  ;;  %1779 = vrot.lane.b32.xlu0 %v1715_v21, %s2255_s27  ;;  %v471_v46 = vshrl.u32 %v2414_v29, 16  ;;  %v378_v21 = vpack.i.b16 %v377_v8, %v376_v4  ;;  %v843_v26 = vshrl.u32 %v2460_v18, 16  ;;  %v844_v27 = vshrl.u32 %v2463_v20, 16  ;;  %v1248_v4 = vld [vmem:[%s2317_s26 + $0x8] sm:$0x7] }
  0x30   : > { %v814_v28 = vcombine.high %v2460_v18, %v2254_v0  ;;  %v839_v31 = vcombine.high %v2463_v20, %v2254_v0  ;;  %v989_v42 = vshrl.u32 %v2479_v34, 16  ;;  %v984_v44 = vcombine.high %v2479_v34, %v2254_v0 }
  0x31   : > { %v473_v63 = vpack.i.b16 %v472_v47, %v471_v46  ;;  %v2062_v32 = vcombine.low %v378_v21, %v378_v21  ;;  %v994_v50 = vshrl.u32 %v959_v43, 16  ;;  %v842_v62 = vpack.i.b16 %v2463_v20, %v2460_v18  ;;  %v1937_v18 = vld [vmem:[%s2803_s5] sm:$0xff] }
  0x32   : > { %v850_v40 = vshrl.u32 %v839_v31, 16  ;;  %v990_v49 = vpack.i.b16 %v989_v42, %v988_v41  ;;  %v995_v51 = vshrl.u32 %v984_v44, 16  ;;  %v993_v55 = vpack.i.b16 %v984_v44, %v959_v43  ;;  %v1471_v44 = vld [vmem:[%s2349_s9] sm:$0x7] }
  0x33   : > { %1785 = vrot.lane.b32.xlu1 %v1742_v37, %s2255_s27  ;;  %1783 = vrot.lane.b32.xlu0 %v1733_v38, %s2255_s27  ;;  %v2067_v17 = vcombine.low %v473_v63, %v473_v63  ;;  %v845_v37 = vpack.i.b16 %v844_v27, %v843_v26  ;;  %v848_v38 = vpack.i.b16 %v839_v31, %v814_v28  ;;  %v2261_v63 = vmov 0.0  }
  0x34   : > { %v2090_v54 = vcombine.low %v990_v49, %v990_v49  ;;  %v996_v57 = vpack.i.b16 %v995_v51, %v994_v50  ;;  %v2091_v58 = vcombine.low %v993_v55, %v993_v55  ;;  %2148 = vmatprep.subr.bf16.mxu0 %v2261_v63  ;;  %2154 = vmatprep.subr.bf16.mxu1 %v2261_v63  ;;  %v1258_v8 = vshrl.u32 %v1246_v2, 16 }
  0x35   : > { %v2084_v47 = vcombine.low %v848_v38, %v848_v38  ;;  %v987_v1 = vpack.i.b16 %v2479_v34, %v2476_v33  ;;  %2156 = vmatprep.mubr.msk.bf16.mxu1 %vm2262_vm0, %v2261_v63  ;;  %2150 = vmatprep.mubr.msk.bf16.mxu0 %vm2262_vm0, %v2261_v63  ;;  %v1270_v11 = vshll.u32 %v1247_v3, 16  ;;  %v1276_v12 = vshrl.u32 %v1248_v4, 16  ;;  %v2239_v33 = vld [vmem:[%s2802_s4 + $0x10] sm:$0xff]  }
  0x36   : > { %v1279_v14 = vshll.u32 %v1248_v4, 16  ;;  %v1303_v21 = vshrl.u32 %v1251_v6, 16  ;;  %v1306_v22 = vshll.u32 %v1251_v6, 16  ;;  %v1312_v23 = vshrl.u32 %v1252_v7, 16 }
  0x37   : > { %1789 = vrot.lane.b32.xlu1 %v1760_v39, %s2255_s27  ;;  %1787 = vrot.lane.b32.xlu0 %v1751_v45, %s2255_s27  ;;  %v849_v39 = vshrl.u32 %v814_v28, 16  ;;  %v2083_v45 = vcombine.low %v845_v37, %v845_v37  ;;  %v1260_v19 = vrot.slane %v1258_v8, 4  ;;  %v1263_v25 = vrot.slane %v1261_v9, 5 }
  0x38   : > { %v1269_v26 = vrot.slane %v1267_v10, 4  ;;  %v1272_v27 = vrot.slane %v1270_v11, 5  ;;  %v1278_v28 = vrot.slane %v1276_v12, 4  ;;  %v1281_v31 = vrot.slane %v1279_v14, 5  ;;  %v1473_v12 = vld [vmem:[%s2349_s9 + $0x8] sm:$0x7] }
  0x39   : > { %v851_v46 = vpack.i.b16 %v850_v40, %v849_v39  ;;  %v1305_v39 = vrot.slane %v1303_v21, 4  ;;  %v1308_v40 = vrot.slane %v1306_v22, 5  ;;  %v1314_v41 = vrot.slane %v1312_v23, 4 }
  0x3a   : > { %v1264_v43 = vor.u32 %v1263_v25, %v1260_v19  ;;  %v1475_v19 = vld [vmem:[%s2349_s9 + $0x10] sm:$0x7]  ;;  %v1477_v25 = vld [vmem:[%s2349_s9 + $0x18] sm:$0x7] }
  0x3b   : > { %1793 = vrot.lane.b32.xlu1 %v1778_v59, %s2255_s27  ;;  %1791 = vrot.lane.b32.xlu0 %v1769_v60, %s2255_s27  ;;  %v2085_v52 = vcombine.low %v851_v46, %v851_v46  ;;  %v2092_v59 = vcombine.low %v996_v57, %v996_v57  ;;  %v470_v60 = vpack.i.b16 %v2417_v30, %v2414_v29  ;;  %v1472_v57 = vld [vmem:[%s2349_s9 + $0x4] sm:$0x7] }
  0x3c   : > { %v1282_v46 = vor.u32 %v1281_v31, %v1278_v28  ;;  %v2525_v4 = vrot.slane %v1264_v43, 4  ;;  %v1492_v14 = vshrl.u32 %v1472_v57, 16  ;;  %v1495_v21 = vshll.u32 %v1472_v57, 16 }
  0x3e   : > { %v2529_v6 = vrot.slane %v1282_v46, 4  ;;  %v1537_v46 = vshrl.u32 %v1477_v25, 16 }
  0x3f   : > { %486 = vrot.lane.b32.xlu1 %v2068_v16, %s2258_s13  ;;  %482 = vrot.lane.b32.xlu0 %v2067_v17, %s2259_s14  ;;  %v1294_v16 = vshrl.u32 %v1250_v5, 16  ;;  %v1297_v17 = vshll.u32 %v1250_v5, 16 }
  0x41   : > { %v1296_v37 = vrot.slane %v1294_v16, 4  ;;  %v1299_v38 = vrot.slane %v1297_v17, 5 }
  0x43   : > { %490 = vrot.lane.b32.xlu0 %v2069_v24, %s2260_s15  ;;  %387 = vrot.lane.b32.xlu1 %v2062_v32, %s2259_s14  ;;  %v1315_v24 = vshll.u32 %v1252_v7, 16  ;;  %v1285_v32 = vshrl.u32 %v1249_v15, 16 }
  0x45   : > { %v1317_v42 = vrot.slane %v1315_v24, 5  ;;  %v1287_v50 = vrot.slane %v1285_v32, 4  ;;  %v1474_v32 = vld [vmem:[%s2349_s9 + $0xc] sm:$0x7] }
  0x47   : > { %395 = vrot.lane.b32.xlu1 %v2064_v35, %s2260_s15  ;;  %391 = vrot.lane.b32.xlu0 %v2063_v36, %s2258_s13  ;;  %v1288_v35 = vshll.u32 %v1249_v15, 16  ;;  %v1253_v36 = vld [vmem:[%s2317_s26 + $0x1c] sm:$0x7]  ;;  %v1318_v55 = vor.u32 %v1317_v42, %v1314_v41  ;;  %v1504_v41 = vshll.u32 %v1473_v12, 16 }
  0x48   : > { %v1324_v49 = vshll.u32 %v1253_v36, 16 }
  0x49   : > { %v1290_v51 = vrot.slane %v1288_v35, 5  ;;  %v2536_v15 = vrot.slane %v1318_v55, 4  ;;  %v1494_v35 = vrot.slane %v1492_v14, 4 }
  0x4a   : > { %v1326_v8 = vrot.slane %v1324_v49, 5 }
  0x4b   : > { %854 = vrot.lane.b32.xlu1 %v2083_v45, %s2259_s14  ;;  %858 = vrot.lane.b32.xlu0 %v2084_v47, %s2258_s13  ;;  %v1273_v45 = vor.u32 %v1272_v27, %v1269_v26  ;;  %v1321_v47 = vshrl.u32 %v1253_v36, 16  ;;  %v1291_v9 = vor.u32 %v1290_v51, %v1287_v50  ;;  %v1501_v26 = vshrl.u32 %v1473_v12, 16 }
  0x4c   : > { %v1345_v36 = vcombine.low %v2529_v6, %v2536_v15  ;;  %v1510_v51 = vshrl.u32 %v1474_v32, 16  ;;  %v1506_v6 = vrot.slane %v1504_v41, 5 }
  0x4d   : > { %v2527_v5 = vrot.slane %v1273_v45, 4  ;;  %v1323_v7 = vrot.slane %v1321_v47, 4  ;;  %v2544_v27 = vrot.slane %v1291_v9, 4  ;;  %v1522_v45 = vshll.u32 %v1475_v19, 16 }
  0x4e   : > { %v1540_v47 = vshll.u32 %v1477_v25, 16  ;;  %v1503_v50 = vrot.slane %v1501_v26, 4 }
  0x4f   : > { %862 = vrot.lane.b32.xlu1 %v2085_v52, %s2260_s15  ;;  %999 = vrot.lane.b32.xlu0 %v2090_v54, %s2259_s14  ;;  %v1300_v52 = vor.u32 %v1299_v38, %v1296_v37  ;;  %v1309_v54 = vor.u32 %v1308_v40, %v1305_v39  ;;  %v1327_v24 = vor.u32 %v1326_v8, %v1323_v7  ;;  %v1476_v37 = vld [vmem:[%s2349_s9 + $0x14] sm:$0x7]  ;;  %v1478_v38 = vld [vmem:[%s2349_s9 + $0x1c] sm:$0x7]  ;;  %v1497_v40 = vrot.slane %v1495_v21, 5 }
  0x50   : > { %v1531_v55 = vshll.u32 %v1476_v37, 16  ;;  %v1546_v57 = vshrl.u32 %v1478_v38, 16  ;;  %v1542_v12 = vrot.slane %v1540_v47, 5 }
  0x51   : > { %v2531_v10 = vrot.slane %v1300_v52, 4  ;;  %v2533_v11 = vrot.slane %v1309_v54, 4  ;;  %v1328_v49 = vrot.slane %v1327_v24, 4  ;;  %v1513_v52 = vshll.u32 %v1474_v32, 16 }
  0x52   : > { %v1528_v54 = vshrl.u32 %v1476_v37, 16  ;;  %v1533_v24 = vrot.slane %v1531_v55, 5 }
  0x53   : > { %1003 = vrot.lane.b32.xlu1 %v2091_v58, %s2258_s13  ;;  %1007 = vrot.lane.b32.xlu0 %v2092_v59, %s2260_s15  ;;  %v1483_v58 = vshrl.u32 %v1471_v44, 16  ;;  %v1486_v59 = vshll.u32 %v1471_v44, 16  ;;  %v1337_v28 = vcombine.low %v2525_v4, %v2531_v10  ;;  %v1362_v31 = vcombine.low %v2527_v5, %v2533_v11 }
  0x54   : > { %v1519_v44 = vshrl.u32 %v1475_v19, 16  ;;  %v1498_v5 = vor.u32 %v1497_v40, %v1494_v35  ;;  %v1524_v10 = vrot.slane %v1522_v45, 5  ;;  %v1539_v11 = vrot.slane %v1537_v46, 4 }
  0x55   : > { %v2538_v16 = vrot.slane %v1483_v58, 4  ;;  %v2540_v17 = vrot.slane %v1486_v59, 5  ;;  %v1549_v58 = vshll.u32 %v1478_v38, 16  ;;  %v1530_v21 = vrot.slane %v1528_v54, 4 }
  0x56   : > { %v1521_v9 = vrot.slane %v1519_v44, 4  ;;  %v1548_v19 = vrot.slane %v1546_v57, 4  ;;  %v1543_v40 = vor.u32 %v1542_v12, %v1539_v11  ;;  %v1369_v44 = vrot.slane %v1362_v31, %v2372_v53 }
  0x57   : > { %v1489_v39 = vor.u32 %v2540_v17, %v2538_v16  ;;  %v1512_v16 = vrot.slane %v1510_v51, 4  ;;  %v1515_v17 = vrot.slane %v1513_v52, 5  ;;  %v1551_v25 = vrot.slane %v1549_v58, 5 }
  0x58   : > { %v1525_v38 = vor.u32 %v1524_v10, %v1521_v9  ;;  %v1352_v45 = vrot.slane %v1345_v36, %v2372_v53  ;;  %v1534_v47 = vor.u32 %v1533_v24, %v1530_v21  ;;  %v1544_v31 = vrot.slane %v1543_v40, 4 }
  0x59   : > { %v1516_v46 = vor.u32 %v1515_v17, %v1512_v16  ;;  %v1552_v51 = vor.u32 %v1551_v25, %v1548_v19 }
  0x5a   : > { %v1526_v58 = vrot.slane %v1525_v38, 4 }
  0x81   : > { %v2521_v2 = vpop.permute.xlu1 %625  ;;  %v2523_v3 = vpop.permute.xlu0 %621 }
  0x85   : > { %v628_v22 = vpop.permute.xlu1 %627  ;;  %v624_v23 = vpop.permute.xlu0 %623 }
  0x89   : > { %v632_v42 = vpop.permute.xlu1 %631  ;;  %v630_v43 = vpop.permute.xlu0 %629 }
  0x8a   : > { %v670_v59 = vcombine.low %v624_v23, %v632_v42  ;;  %v645_v4 = vcombine.low %v2523_v3, %v630_v43  ;;  %v1344_v43 = vrot.slane %v1337_v28, %v2372_v53 }
  0x8c   : > { %v677_v23 = vrot.slane %v670_v59, %v2372_v53  ;;  %v652_v3 = vrot.slane %v645_v4, %v2372_v53  ;;  %v1353_v19 = vcombine.low %v1344_v43, %v1352_v45 }
  0x8d   : > { %v636_v7 = vpop.permute.xlu1 %635  ;;  %v634_v8 = vpop.permute.xlu0 %633 }
  0x8e   : > { %v678_v14 = vcombine.low %v628_v22, %v636_v7  ;;  %v653_v15 = vcombine.low %v2521_v2, %v634_v8  ;;  %v1370_v2 = vcombine.low %v2544_v27, %v1328_v49  ;;  %v1507_v22 = vor.u32 %v1506_v6, %v1503_v50 }
  0x8f   : > { %v1490_v27 = vrot.slane %v1489_v39, 4  ;;  %v1499_v49 = vrot.slane %v1498_v5, 4  ;;  %v1517_v7 = vrot.slane %v1516_v46, 4  ;;  %v1535_v39 = vrot.slane %v1534_v47, 4 }
  0x90   : > { %v685_v26 = vrot.slane %v678_v14, %v2372_v53  ;;  %v660_v32 = vrot.slane %v653_v15, %v2372_v53  ;;  %v1377_v57 = vrot.slane %v1370_v2, %v2372_v53  ;;  %v1508_v28 = vrot.slane %v1507_v22, 4 }
  0x91   : > { %v2563_v35 = vpop.permute.xlu1 %1090  ;;  %v2565_v37 = vpop.permute.xlu0 %1088  ;;  %v1553_v5 = vrot.slane %v1552_v51, 4  ;;  %v1562_v16 = vcombine.low %v1490_v27, %v1526_v58 }
  0x92   : > { %v686_v41 = vcombine.low %v677_v23, %v685_v26  ;;  %v661_v42 = vcombine.low %v652_v3, %v660_v32  ;;  %v1570_v17 = vcombine.low %v1508_v28, %v1544_v31  ;;  %v1378_v23 = vcombine.low %v1369_v44, %v1377_v57 }
  0x93   : > { %v1587_v3 = vcombine.low %v1499_v49, %v1535_v39  ;;  %v1595_v26 = vcombine.low %v1517_v7, %v1553_v5  ;;  %v1569_v40 = vrot.slane %v1562_v16, %v2372_v53  ;;  %v2593_v44 = vrot.slane %v1353_v19, %v2397_v13 }
  0x94   : > { %v2572_v52 = vrot.slane %v686_v41, %v2397_v13  ;;  %v2575_v54 = vrot.slane %v661_v42, %v2397_v13  ;;  %v1577_v41 = vrot.slane %v1570_v17, %v2372_v53 }
  0x95   : > { %v1095_v50 = vpop.permute.xlu1 %1094  ;;  %v1093_v55 = vpop.permute.xlu0 %1092  ;;  %v1602_v46 = vrot.slane %v1595_v26, %v2372_v53  ;;  %v1361_v31 = vcombine.high %v2593_v44, %v2254_v0  ;;  %v1390_v7 = vshrl.u32 %v2593_v44, 16 }
  0x96   : > { %v669_v36 = vcombine.high %v2575_v54, %v2254_v0  ;;  %v694_v59 = vcombine.high %v2572_v52, %v2254_v0  ;;  %v698_v4 = vshrl.u32 %v2575_v54, 16  ;;  %v699_v6 = vshrl.u32 %v2572_v52, 16 }
  0x97   : > { %v697_v8 = vpack.i.b16 %v2572_v52, %v2575_v54  ;;  %v1578_v57 = vcombine.low %v1569_v40, %v1577_v41  ;;  %v2241_v52 = vld [vmem:[%s2802_s4 + $0x20] sm:$0xff]  }
  0x98   : > { %v703_v9 = vpack.i.b16 %v694_v59, %v669_v36  ;;  %v700_v10 = vpack.i.b16 %v699_v6, %v698_v4  ;;  %v704_v11 = vshrl.u32 %v669_v36, 16  ;;  %v705_v12 = vshrl.u32 %v694_v59, 16 }
  0x99   : > { %v1099_v14 = vpop.permute.xlu1 %1098  ;;  %v1097_v15 = vpop.permute.xlu0 %1096 }
  0x9a   : > { %v2077_v21 = vcombine.low %v703_v9, %v703_v9  ;;  %v2076_v24 = vcombine.low %v700_v10, %v700_v10  ;;  %v706_v25 = vpack.i.b16 %v705_v12, %v704_v11  ;;  %v1137_v32 = vcombine.low %v2563_v35, %v1099_v14 }
  0x9b   : > { %v1112_v2 = vcombine.low %v2565_v37, %v1097_v15  ;;  %v2596_v35 = vrot.slane %v1378_v23, %v2397_v13  ;;  %v1594_v37 = vrot.slane %v1587_v3, %v2372_v53  ;;  %v1396_v10 = vshrl.u32 %v1361_v31, 16 }
  0x9c   : > { %713 = vrot.lane.b32.xlu1 %v2077_v21, %s2258_s13  ;;  %709 = vrot.lane.b32.xlu0 %v2076_v24, %s2259_s14  ;;  %v2078_v45 = vcombine.low %v706_v25, %v706_v25  ;;  %v1144_v47 = vrot.slane %v1137_v32, %v2372_v53  ;;  %v2618_v12 = vrot.slane %v1578_v57, %v2397_v13 }
  0x9d   : > { %v1103_v22 = vpop.permute.xlu1 %1102  ;;  %v1101_v38 = vpop.permute.xlu0 %1100  ;;  %v1119_v51 = vrot.slane %v1112_v2, %v2372_v53  ;;  %v1386_v36 = vcombine.high %v2596_v35, %v2254_v0  ;;  %v1603_v59 = vcombine.low %v1594_v37, %v1602_v46  ;;  %v1391_v39 = vshrl.u32 %v2596_v35, 16 }
  0x9e   : > { %v1145_v42 = vcombine.low %v1095_v50, %v1103_v22  ;;  %v1120_v43 = vcombine.low %v1093_v55, %v1101_v38  ;;  %v1615_v22 = vshrl.u32 %v2618_v12, 16  ;;  %v1586_v37 = vcombine.high %v2618_v12, %v2254_v0 }
  0x9f   : > { %v1397_v11 = vshrl.u32 %v1386_v36, 16  ;;  %v2627_v21 = vrot.slane %v1603_v59, %v2397_v13  ;;  %v1395_v23 = vpack.i.b16 %v1386_v36, %v1361_v31  ;;  %v1392_v3 = vpack.i.b16 %v1391_v39, %v1390_v7 }
  0xa0   : > { %v1152_v27 = vrot.slane %v1145_v42, %v2372_v53  ;;  %v1127_v49 = vrot.slane %v1120_v43, %v2372_v53  ;;  %717 = vrot.lane.b32.xlu0 %v2078_v45, %s2260_s15  ;;  %v1621_v36 = vshrl.u32 %v1586_v37, 16 }
  0xa1   : > { %v1782_v50 = vpop.permute.xlu1 %1781  ;;  %v1780_v55 = vpop.permute.xlu0 %1779  ;;  %v1398_v2 = vpack.i.b16 %v1397_v11, %v1396_v10  ;;  %v1616_v45 = vshrl.u32 %v2627_v21, 16  ;;  %v1611_v46 = vcombine.high %v2627_v21, %v2254_v0 }
  0xa2   : > { %v1153_v28 = vcombine.low %v1144_v47, %v1152_v27  ;;  %v1128_v58 = vcombine.low %v1119_v51, %v1127_v49  ;;  %v2105_v51 = vcombine.low %v1395_v23, %v1395_v23  ;;  %v2104_v27 = vcombine.low %v1392_v3, %v1392_v3 }
  0xa3   : > { %v1617_v7 = vpack.i.b16 %v1616_v45, %v1615_v22  ;;  %v1620_v39 = vpack.i.b16 %v1611_v46, %v1586_v37  ;;  %v1622_v10 = vshrl.u32 %v1611_v46, 16 }
  0xa4   : > { %v2610_v4 = vrot.slane %v1153_v28, %v2397_v13  ;;  %v2613_v6 = vrot.slane %v1128_v58, %v2397_v13  ;;  %v2106_v28 = vcombine.low %v1398_v2, %v1398_v2 }
  0xa5   : > { %v1786_v5 = vpop.permute.xlu1 %1785  ;;  %v1784_v9 = vpop.permute.xlu0 %1783  ;;  %v2112_v23 = vcombine.low %v1620_v39, %v1620_v39  ;;  %v1623_v3 = vpack.i.b16 %v1622_v10, %v1621_v36 }
  0xa6   : > { %v1165_v14 = vshrl.u32 %v2613_v6, 16  ;;  %v1166_v15 = vshrl.u32 %v2610_v4, 16  ;;  %v1136_v16 = vcombine.high %v2613_v6, %v2254_v0  ;;  %v1161_v17 = vcombine.high %v2610_v4, %v2254_v0 }
  0xa7   : > { %v1164_v24 = vpack.i.b16 %v2610_v4, %v2613_v6  ;;  %v2242_v6 = vld [vmem:[%s2802_s4 + $0x28] sm:$0xff]  }
  0xa8   : > { %v1167_v19 = vpack.i.b16 %v1166_v15, %v1165_v14  ;;  %v1170_v25 = vpack.i.b16 %v1161_v17, %v1136_v16  ;;  %v1171_v41 = vshrl.u32 %v1136_v16, 16  ;;  %v1172_v42 = vshrl.u32 %v1161_v17, 16 }
  0xa9   : > { %v1790_v26 = vpop.permute.xlu1 %1789  ;;  %v1788_v32 = vpop.permute.xlu0 %1787 }
  0xaa   : > { %v2097_v38 = vcombine.low %v1167_v19, %v1167_v19  ;;  %v2098_v40 = vcombine.low %v1170_v25, %v1170_v25  ;;  %v1828_v43 = vcombine.low %v1782_v50, %v1790_v26  ;;  %v1803_v47 = vcombine.low %v1780_v55, %v1788_v32 }
  0xab   : > { %v1173_v31 = vpack.i.b16 %v1172_v42, %v1171_v41  ;;  %v2111_v25 = vcombine.low %v1617_v7, %v1617_v7  ;;  %v2113_v42 = vcombine.low %v1623_v3, %v1623_v3 }
  0xac   : > { %1176 = vrot.lane.b32.xlu1 %v2097_v38, %s2259_s14  ;;  %1180 = vrot.lane.b32.xlu0 %v2098_v40, %s2258_s13  ;;  %v1835_v59 = vrot.slane %v1828_v43, %v2372_v53  ;;  %v1810_v55 = vrot.slane %v1803_v47, %v2372_v53 }
  0xad   : > { %v1794_v49 = vpop.permute.xlu1 %1793  ;;  %v1792_v57 = vpop.permute.xlu0 %1791  ;;  %v2099_v17 = vcombine.low %v1173_v31, %v1173_v31 }
  0xae   : > { %v1836_v50 = vcombine.low %v1786_v5, %v1794_v49  ;;  %v1811_v58 = vcombine.low %v1784_v9, %v1792_v57 }
  0xb0   : > { %v1843_v11 = vrot.slane %v1836_v50, %v2372_v53  ;;  %v1818_v14 = vrot.slane %v1811_v58, %v2372_v53  ;;  %1405 = vrot.lane.b32.xlu1 %v2105_v51, %s2258_s13  ;;  %1401 = vrot.lane.b32.xlu0 %v2104_v27, %s2259_s14  ;;  %v2237_v50 = vld [vmem:[%s2802_s4] sm:$0xff]  }
  0xb1   : > { %v487_v15 = vpop.permute.xlu1 %486  ;;  %v483_v5 = vpop.permute.xlu0 %482 }
  0xb2   : > { %v1844_v9 = vcombine.low %v1835_v59, %v1843_v11  ;;  %v1819_v16 = vcombine.low %v1810_v55, %v1818_v14  ;;  %v494_v19 = vsel %vm397_vm1, %v470_v60, %v483_v5  ;;  %v2240_v55 = vld [vmem:[%s2802_s4 + $0x18] sm:$0xff]  }
  0xb3   : > { %v496_v32 = vsel %vm401_vm2, %v494_v19, %v487_v15 }
  0xb4   : > { %v2650_v53 = vrot.slane %v1844_v9, %v2397_v13  ;;  %v2653_v26 = vrot.slane %v1819_v16, %v2397_v13  ;;  %1184 = vrot.lane.b32.xlu1 %v2099_v17, %s2260_s15  ;;  %1409 = vrot.lane.b32.xlu0 %v2106_v28, %s2260_s15 }
  0xb5   : > { %v491_v2 = vpop.permute.xlu0 %490  ;;  %v388_v29 = vpop.permute.xlu1 %387 }
  0xb6   : > { %v1856_v30 = vshrl.u32 %v2653_v26, 16  ;;  %v1857_v60 = vshrl.u32 %v2650_v53, 16  ;;  %v1827_v22 = vcombine.high %v2653_v26, %v2254_v0  ;;  %v1852_v13 = vcombine.high %v2650_v53, %v2254_v0 }
  0xb7   : > { %v400_v38 = vsel %vm397_vm1, %v375_v61, %v388_v29  ;;  %v498_v40 = vsel %vm404_vm3, %v496_v32, %v491_v2  ;;  %v1855_v41 = vpack.i.b16 %v2650_v53, %v2653_v26  ;;  %v1389_v2 = vpack.i.b16 %v2596_v35, %v2593_v44 }
  0xb8   : > { %1626 = vrot.lane.b32.xlu1 %v2111_v25, %s2259_s14  ;;  %1630 = vrot.lane.b32.xlu0 %v2112_v23, %s2258_s13  ;;  %v1858_v43 = vpack.i.b16 %v1857_v60, %v1856_v30  ;;  %v1862_v45 = vshrl.u32 %v1827_v22, 16  ;;  %v1863_v37 = vshrl.u32 %v1852_v13, 16  ;;  %v508_v47 = vsel %vm507_vm4, %v498_v40, 0 }
  0xb9   : > { %v396_v46 = vpop.permute.xlu1 %395  ;;  %v392_v0 = vpop.permute.xlu0 %391  ;;  %v1861_v61 = vpack.i.b16 %v1852_v13, %v1827_v22  ;;  %2149 = vmatpush3.bf16.msra.mxu0 %v508_v47 }
  0xba   : > { %v2118_v56 = vcombine.low %v1858_v43, %v1858_v43  ;;  %v1864_v51 = vpack.i.b16 %v1863_v37, %v1862_v45  ;;  %v403_v27 = vsel %vm401_vm2, %v400_v38, %v392_v0  ;;  %2160 = vmatprep.subr.bf16.mxu0 %v2261_v63  ;;  %v1614_v43 = vpack.i.b16 %v2627_v21, %v2618_v12 }
  0xbb   : > { %v406_v49 = vsel %vm404_vm3, %v403_v27, %v396_v46  ;;  %v2119_v58 = vcombine.low %v1861_v61, %v1861_v61  ;;  %v2244_v61 = vld [vmem:[%s2802_s4 + $0x38] sm:$0xff]  }
  0xbc   : > { %1634 = vrot.lane.b32.xlu1 %v2113_v42, %s2260_s15  ;;  %1867 = vrot.lane.b32.xlu0 %v2118_v56, %s2259_s14  ;;  %v559_v57 = vsel %vm507_vm4, %v406_v49, 0  ;;  %v2120_v31 = vcombine.low %v1864_v51, %v1864_v51 }
  0xbd   : > { %v855_v28 = vpop.permute.xlu1 %854  ;;  %2155 = vmatpush3.bf16.msra.mxu1 %v559_v57  ;;  %2151 = vmatmul.mubr.msk.bf16.vlgmr.msra.gmra.mxu0 %vm401_vm2, %v2238_v48  ;;  %v859_v59 = vpop.permute.xlu0 %858 }
  0xbe   : > { %v866_v36 = vsel %vm397_vm1, %v842_v62, %v855_v28  ;;  %2166 = vmatprep.subr.bf16.mxu1 %v2261_v63  ;;  %2162 = vmatprep.mubr.msk.bf16.mxu0 %vm2262_vm0, %v2261_v63  ;;  %v1938_v62 = vld [vmem:[%s2803_s5 + $0x8] sm:$0xff] }
  0xbf   : > { %v868_v7 = vsel %vm401_vm2, %v866_v36, %v859_v59 }
  0xc0   : > { %1871 = vrot.lane.b32.xlu1 %v2119_v58, %s2258_s13  ;;  %1875 = vrot.lane.b32.xlu0 %v2120_v31, %s2260_s15 }
  0xc1   : > { %v863_v39 = vpop.permute.xlu1 %862  ;;  %2157 = vmatmul.mubr.msk.bf16.vlgmr.msra.gmra.mxu1 %vm401_vm2, %v2237_v50  ;;  %v1000_v11 = vpop.permute.xlu0 %999  ;;  %v2245_v50 = vld [vmem:[%s2802_s4 + $0x40] sm:$0xff]  }
  0xc2   : > { %v870_v20 = vsel %vm404_vm3, %v868_v7, %v863_v39  ;;  %2168 = vmatprep.mubr.msk.bf16.mxu1 %vm2262_vm0, %v2261_v63  ;;  %v1011_v9 = vsel %vm397_vm1, %v987_v1, %v1000_v11 }
  0xc3   : > { %v879_v10 = vsel %vm507_vm4, %v870_v20, 0 }
  0xc4   : > { %2167 = vmatpush3.bf16.msra.mxu1 %v879_v10  ;;  %1941 = vperm.xlu1 %2219, %v1937_v18  }
  0xc5   : > { %2178 = vmatprep.subr.bf16.mxu1 %v2261_v63  ;;  %1946 = vperm.xlu0 %2220, %v1938_v62   ;;  %v1008_v14 = vpop.permute.xlu0 %1007  ;;  %v1004_v15 = vpop.permute.xlu1 %1003 }
  0xc6   : > { %v1013_v19 = vsel %vm401_vm2, %v1011_v9, %v1004_v15 }
  0xc7   : > { %v1015_v34 = vsel %vm404_vm3, %v1013_v19, %v1008_v14 }
  0xc8   : > { %v1024_v1 = vsel %vm507_vm4, %v1015_v34, 0 }
  0xc9   : > { %2169 = vmatmul.mubr.msk.bf16.vlgmr.msra.gmra.mxu1 %vm401_vm2, %v2240_v55 }
  0xca   : > { %2180 = vmatprep.mubr.msk.bf16.mxu1 %vm2262_vm0, %v2261_v63 }
 0x10e   : > { %v710_v5 = vpop.permute.xlu0 %709  ;;  %v714_v16 = vpop.permute.xlu1 %713 }
 0x10f   : > { %v721_v17 = vsel %vm397_vm1, %v697_v8, %v710_v5 }
 0x110   : > { %v723_v25 = vsel %vm401_vm2, %v721_v17, %v714_v16 }
 0x112   : > { %v718_v23 = vpop.permute.xlu0 %717 }
 0x113   : > { %v725_v3 = vsel %vm404_vm3, %v723_v25, %v718_v23 }
 0x114   : > { %v734_v32 = vsel %vm507_vm4, %v725_v3, 0 }
 0x115   : > { %2161 = vmatpush3.bf16.msra.mxu0 %v734_v32 }
 0x116   : > { %2172 = vmatprep.subr.bf16.mxu0 %v2261_v63 }
 0x118   : > { %2163 = vmatmul.mubr.msk.bf16.vlgmr.msra.gmra.mxu0 %vm401_vm2, %v2239_v33 }
 0x119   : > { %2173 = vmatpush3.bf16.msra.mxu0 %v1024_v1  ;;  %2174 = vmatprep.mubr.msk.bf16.mxu0 %vm2262_vm0, %v2261_v63 }
 0x11a   : > { %2184 = vmatprep.subr.bf16.mxu0 %v2261_v63 }
 0x11e   : > { %v1177_v54 = vpop.permute.xlu1 %1176  ;;  %v1181_v8 = vpop.permute.xlu0 %1180 }
 0x11f   : > { %v1188_v60 = vsel %vm397_vm1, %v1164_v24, %v1177_v54  ;;  %v2243_v24 = vld [vmem:[%s2802_s4 + $0x30] sm:$0xff]  }
 0x120   : > { %2175 = vmatmul.mubr.msk.bf16.vlgmr.msra.gmra.mxu0 %vm401_vm2, %v2241_v52  ;;  %v1190_v13 = vsel %vm401_vm2, %v1188_v60, %v1181_v8 }
 0x121   : > { %2186 = vmatprep.mubr.msk.bf16.mxu0 %vm2262_vm0, %v2261_v63 }
 0x122   : > { %v1406_v29 = vpop.permute.xlu1 %1405  ;;  %v1402_v30 = vpop.permute.xlu0 %1401 }
 0x123   : > { %v1413_v22 = vsel %vm397_vm1, %v1389_v2, %v1402_v30 }
 0x124   : > { %v1415_v40 = vsel %vm401_vm2, %v1413_v22, %v1406_v29 }
 0x126   : > { %v1185_v38 = vpop.permute.xlu1 %1184  ;;  %v1410_v44 = vpop.permute.xlu0 %1409 }
 0x127   : > { %v1192_v35 = vsel %vm404_vm3, %v1190_v13, %v1185_v38  ;;  %v1417_v42 = vsel %vm404_vm3, %v1415_v40, %v1410_v44 }
 0x128   : > { %v1201_v45 = vsel %vm507_vm4, %v1192_v35, 0  ;;  %v1426_v4 = vsel %vm507_vm4, %v1417_v42, 0 }
 0x129   : > { %2179 = vmatpush3.bf16.msra.mxu1 %v1201_v45  ;;  %2185 = vmatpush3.bf16.msra.mxu0 %v1426_v4 }
 0x12a   : > { %v1627_v37 = vpop.permute.xlu1 %1626  ;;  %v1631_v46 = vpop.permute.xlu0 %1630  ;;  %2190 = vmatprep.subr.bf16.mxu1 %v2261_v63  ;;  %2196 = vmatprep.subr.bf16.mxu0 %v2261_v63 }
 0x12b   : > { %v1638_v12 = vsel %vm397_vm1, %v1614_v43, %v1627_v37 }
 0x12c   : > { %2181 = vmatmul.mubr.msk.bf16.vlgmr.msra.gmra.mxu1 %vm401_vm2, %v2242_v6  ;;  %2187 = vmatmul.mubr.msk.bf16.vlgmr.msra.gmra.mxu0 %vm401_vm2, %v2243_v24  ;;  %v1640_v21 = vsel %vm401_vm2, %v1638_v12, %v1631_v46 }
 0x12d   : > { %2192 = vmatprep.mubr.msk.bf16.mxu1 %vm2262_vm0, %v2261_v63  ;;  %2198 = vmatprep.mubr.msk.bf16.mxu0 %vm2262_vm0, %v2261_v63 }
 0x12e   : > { %v1635_v0 = vpop.permute.xlu1 %1634  ;;  %v1868_v47 = vpop.permute.xlu0 %1867 }
 0x12f   : > { %v1642_v48 = vsel %vm404_vm3, %v1640_v21, %v1635_v0  ;;  %v1879_v51 = vsel %vm397_vm1, %v1855_v41, %v1868_v47 }
 0x130   : > { %v1651_v56 = vsel %vm507_vm4, %v1642_v48, 0 }
 0x131   : > { %2191 = vmatpush3.bf16.msra.mxu1 %v1651_v56 }
 0x132   : > { %v1872_v27 = vpop.permute.xlu1 %1871  ;;  %v1876_v63 = vpop.permute.xlu0 %1875 }
 0x133   : > { %v1881_v49 = vsel %vm401_vm2, %v1879_v51, %v1872_v27 }
 0x134   : > { %v1883_v57 = vsel %vm404_vm3, %v1881_v49, %v1876_v63  ;;  %2193 = vmatmul.mubr.msk.bf16.vlgmr.msra.gmra.mxu1 %vm401_vm2, %v2244_v61 }
 0x135   : > { %v1892_v28 = vsel %vm507_vm4, %v1883_v57, 0 }
 0x136   : > { %2197 = vmatpush3.bf16.msra.mxu0 %v1892_v28 }
 0x139   : > { %2199 = vmatmul.mubr.msk.bf16.vlgmr.msra.gmra.mxu0 %vm401_vm2, %v2245_v50 }
 0x13f   : > { %v1942_v45 = vpop.permute.xlu1 %1941 }
 0x140   : > { %v1947_v0 = vpop.permute.xlu0 %1946 }
 0x17d   : > { %v544_v53 = vpop.f32.mrf.mxu0 }
 0x17f   : > { %v2152_v26 = vpop.f32.mrf.mxu0 }
 0x181   : > { %v547_v41 = vpop.f32.mrf.mxu0  ;;  %v595_v58 = vpop.f32.mrf.mxu1 }
 0x182   : > { %v596_v31 = vadd.f32 %v595_v58, %v544_v53 }
 0x183   : > { %v2153_v36 = vpop.f32.mrf.mxu0  ;;  %v2158_v59 = vpop.f32.mrf.mxu1 }
 0x185   : > { %v598_v7 = vpop.f32.mrf.mxu1 }
 0x186   : > { %v599_v39 = vadd.f32 %v598_v7, %v547_v41 }
 0x187   : > { %v2159_v18 = vpop.f32.mrf.mxu1 }
 0x189   : > { %v915_v20 = vpop.f32.mrf.mxu1 }
 0x18b   : > { %v2170_v62 = vpop.f32.mrf.mxu1 }
 0x18d   : > { %v918_v10 = vpop.f32.mrf.mxu1 }
 0x18f   : > { %v2171_v55 = vpop.f32.mrf.mxu1 }
 0x1d8   : > { %v770_v11 = vpop.f32.mrf.mxu0 }
 0x1d9   : > { %v777_v25 = vadd.f32 %v770_v11, %v596_v31 }
 0x1da   : > { %v2164_v14 = vpop.f32.mrf.mxu0 }
 0x1db   : > { %v922_v23 = vadd.f32 %v915_v20, %v777_v25 }
 0x1dc   : > { %v773_v15 = vpop.f32.mrf.mxu0 }
 0x1dd   : > { %v778_v33 = vadd.f32 %v773_v15, %v599_v39 }
 0x1de   : > { %v2165_v5 = vpop.f32.mrf.mxu0 }
 0x1df   : > { %v923_v2 = vadd.f32 %v918_v10, %v778_v33 }
 0x1e0   : > { %v1060_v9 = vpop.f32.mrf.mxu0 }
 0x1e1   : > { %v1067_v52 = vadd.f32 %v1060_v9, %v922_v23 }
 0x1e2   : > { %v2176_v16 = vpop.f32.mrf.mxu0 }
 0x1e4   : > { %v1063_v17 = vpop.f32.mrf.mxu0 }
 0x1e5   : > { %v1068_v22 = vadd.f32 %v1063_v17, %v923_v2 }
 0x1e6   : > { %v2177_v19 = vpop.f32.mrf.mxu0 }
 0x1ec   : > { %v1237_v3 = vpop.f32.mrf.mxu1  ;;  %v1462_v32 = vpop.f32.mrf.mxu0 }
 0x1ed   : > { %v1244_v29 = vadd.f32 %v1237_v3, %v1067_v52 }
 0x1ee   : > { %v2182_v34 = vpop.f32.mrf.mxu1  ;;  %v2188_v1 = vpop.f32.mrf.mxu0 }
 0x1ef   : > { %v1469_v38 = vadd.f32 %v1462_v32, %v1244_v29 }
 0x1f0   : > { %v1240_v54 = vpop.f32.mrf.mxu1  ;;  %v1465_v8 = vpop.f32.mrf.mxu0 }
 0x1f1   : > { %v1245_v40 = vadd.f32 %v1240_v54, %v1068_v22 }
 0x1f2   : > { %v2183_v30 = vpop.f32.mrf.mxu1  ;;  %v2189_v60 = vpop.f32.mrf.mxu0 }
 0x1f3   : > { %v1470_v4 = vadd.f32 %v1465_v8, %v1245_v40 }
 0x1f4   : > { %v1687_v13 = vpop.f32.mrf.mxu1 }
 0x1f5   : > { %v1694_v35 = vadd.f32 %v1687_v13, %v1469_v38 }
 0x1f6   : > { %v2194_v44 = vpop.f32.mrf.mxu1 }
 0x1f8   : > { %v1690_v42 = vpop.f32.mrf.mxu1 }
 0x1f9   : > { %v1928_v43 = vpop.f32.mrf.mxu0  ;;  %v1695_v46 = vadd.f32 %v1690_v42, %v1470_v4 }
 0x1fa   : > { %v1935_v6 = vadd.f32 %v1928_v43, %v1694_v35  ;;  %v2195_v24 = vpop.f32.mrf.mxu1 }
 0x1fb   : > { %v2200_v37 = vpop.f32.mrf.mxu0 }
 0x1fc   : > { %v1949_v12 = vadd.f32 %v1942_v45, %v1935_v6 }
 0x1fd   : > { %v1931_v21 = vpop.f32.mrf.mxu0 }
 0x1fe   : > { %v1951_v47 = vmax.f32 %v1949_v12, 0.0  ;;  %v1936_v48 = vadd.f32 %v1931_v21, %v1695_v46 }
 0x1ff   : > { %v2201_v56 = vpop.f32.mrf.mxu0 }
 0x200   : > { %1954 = vst.msk [vmem:[%s311_s19] sm:$0xff] %vm1953_vm5, %v1951_v47  ;;  %v1950_v61 = vadd.f32 %v1947_v0, %v1936_v48 }
 0x202   : > { %v1952_v51 = vmax.f32 %v1950_v61, 0.0 }
 0x204   : > { %1955 = vst.msk [vmem:[%s311_s19 + $0x8] sm:$0xff] %vm1953_vm5, %v1952_v51 }
 0x205 PF: > { %s16_s21 = sadd.s32 1, %s2252_s21  }
 0x206   : > { %p13_p4 = scmp.ge.s32.totalorder %s16_s21, 4  }
 0x208   :  { %15 = sbr.rel (!%p13_p4) target bundleno = 1 (0x1), region = 91 }

// kernel: timm_backbone_forward.10
= control target key start
LH: loop header
LB: loop body
LE: loop exit
PB: predicated region body
PF: predicated region fallthrough
CT: control target
= control target key end

     0   :  { %s362_s9 = smov 0   ;;  %s389_s0 = inlined_call_operand.vmem [shape: f32[2,16,16], index: 0, kind: input, shape index: {}]   ;;  %s390_s1 = inlined_call_operand.vmem [shape: f32[16,64], index: 1, kind: input, shape index: {}]   ;;  %s391_s2 = inlined_call_operand.vmem [shape: f32[2,16,64], index: 2, kind: output, shape index: {}]  }
   0x1 LB: > { %s303_s10 = sadd.s32 4294967295, %s345_s9   ;;  %p307_p0 = scmp.ge.s32.totalorder %s345_s9, 1  ;;  %s345_s9 = sphi %s362_s9, %s12_s9  }
   0x2   : > { %p112_p1 = scmp.lt.s32.totalorder %s345_s9, 3 }
   0x4   : > { %p113_p2 = pnand %p307_p0, %p112_p1 }
   0x5   : > { %p134_p3 = scmp.lt.s32.totalorder (!%p113_p2), %s303_s10, 1 }
   0x6   : > { %116 = sbr.rel (%p113_p2) target bundleno = 247 (0xf7), region = 28 }
   0xb   : > { %v163_v0 = vld [vmem:[%s390_s1 + $0x8] sm:$0xff]  ;;  %v162_v1 = vld [vmem:[%s390_s1] sm:$0xff]  ;;  %s393_s10 = smov (!%p134_p3, %s303_s10), 1  ;;  %vm148_vm0 = vcmask 130048   ;;  %vm245_vm1 = vcmask 523264  }
   0xc   : > { %322 = vmatprep.subr.mxu0 %v163_v0  ;;  %s316_s15 = sshll.u32 %s393_s10, 4 }
   0xd   : > { %323 = vmatpush3.msra.mxu0 %v163_v0  ;;  %s138_s18 = scalar_lea.vmem %s389_s0, %s316_s15  ;;  %s143_s21 = scalar_lea.vmem %s391_s2, %s316_s15 }
   0xe   : > { %324 = vmatprep.subr.mxu0 %v162_v1  ;;  %v144_v2 = vld [vmem:[%s138_s18] sm:$0xff]  ;;  %v145_v3 = vld [vmem:[%s138_s18 + $0x8] sm:$0xff] }
   0xf   : > { %325 = vmatpush3.msra.mxu0 %v162_v1  ;;  %v146_v4 = vmul.f32 %v144_v2, %v144_v2  ;;  %v147_v5 = vmul.f32 %v145_v3, %v145_v3 }
  0x11   : > { %v149_v6 = vsel %vm148_vm0, %v146_v4, 0.0  ;;  %v150_v7 = vsel %vm148_vm0, %v147_v5, 0.0 }
  0x12   : > { %v151_v8 = vadd.f32 %v150_v7, %v149_v6 }
  0x14   : > { %v152_v9 = vrot.slane %v151_v8, 4 }
  0x16   : > { %v153_v10 = vadd.f32 %v152_v9, %v151_v8 }
  0x18   : > { %v154_v11 = vrot.slane %v153_v10, 2 }
  0x1a   : > { %v155_v12 = vadd.f32 %v154_v11, %v153_v10 }
  0x1c   : > { %v156_v13 = vrot.slane %v155_v12, 1 }
  0x1e   : > { %v157_v14 = vadd.f32 %v156_v13, %v155_v12 }
  0x20   : > { %v158_v15 = vmax.f32 %v157_v14, 1e-24 }
  0x22   : > { %337 = vrsqrt.f32 %v158_v15 }
  0x2f   : > { %v338_v16 = vpop.eup %337 }
  0x30   : > { %v160_v17 = vmul.f32 %v338_v16, %v144_v2  ;;  %v161_v18 = vmul.f32 %v338_v16, %v145_v3 }
  0x32   : > { %326 = vmatprep.mubr.msk.f32.mxu0 %vm148_vm0, %v160_v17 }
  0x33   : > { %327 = vmatmul.mubr.msk.f32.vlgmr.msra.gmra.mxu0 %vm148_vm0, %v161_v18 }
  0xf3   : > { %v328_v19 = vpop.f32.mrf.mxu0 }
  0xf4   : > { %247 = vst.msk [vmem:[%s143_s21 + $0x8] sm:$0xff] %vm245_vm1, %v328_v19 }
  0xf5   : > { %v236_v20 = vpop.f32.mrf.mxu0 }
  0xf6   : > { %246 = vst.msk [vmem:[%s143_s21] sm:$0xff] %vm245_vm1, %v236_v20 }
  0xf7 PF: > { %s12_s9 = sadd.s32 1, %s345_s9  }
  0xf8   : > { %p9_p4 = scmp.ge.s32.totalorder %s12_s9, 4  }
  0xfa   :  { %11 = sbr.rel (!%p9_p4) target bundleno = 1 (0x1), region = 58 }

// kernel: timm_backbone_forward.8
= control target key start
LH: loop header
LB: loop body
LE: loop exit
PB: predicated region body
PF: predicated region fallthrough
CT: control target
= control target key end

     0   :  { %s3352_s21 = smov 0   ;;  %s4180_s0 = inlined_call_operand.vmem [shape: bf16[2,16,3,3], index: 0, kind: input, shape index: {}]   ;;  %s4181_s1 = inlined_call_operand.vmem [shape: bf16[2,16,3,3], index: 1, kind: input, shape index: {}]   ;;  %s4182_s2 = inlined_call_operand.vmem [shape: bf16[2,16,3,3], index: 2, kind: input, shape index: {}]   ;;  %s4183_s3 = inlined_call_operand.vmem [shape: bf16[2,16,3,3], index: 3, kind: input, shape index: {}]   ;;  %s4184_s4 = inlined_call_operand.vmem [shape: bf16[9,32,16], index: 4, kind: input, shape index: {}]   ;;  %s4185_s5 = inlined_call_operand.vmem [shape: f32[32,1], index: 5, kind: input, shape index: {}]   ;;  %s4186_s6 = inlined_call_operand.vmem [shape: f32[2,32,4], index: 6, kind: output, shape index: {}]  }
   0x1 LB: > { %s3036_s22 = sadd.s32 4294967295, %s3310_s21   ;;  %p3040_p0 = scmp.ge.s32.totalorder %s3310_s21, 1  ;;  %s3310_s21 = sphi %s3352_s21, %s16_s21  }
   0x2   : > { %p242_p1 = scmp.lt.s32.totalorder %s3310_s21, 3 }
   0x4   : > { %p243_p2 = pnand %p3040_p0, %p242_p1 }
   0x6   : > { %246 = sbr.rel (%p243_p2) target bundleno = 564 (0x234), region = 44 }
   0xb   : > { %p287_p3 = scmp.lt.s32.totalorder %s3036_s22, 1  ;;  %s3312_s27 = smov 127   ;;  %v337_v46 = vlaneseq  ;;  %vm621_vm0 = vcmask 130048   ;;  %vm457_vm1 = vcmask 15360   ;;  %vm2940_vm2 = vcmask 31744  }
   0xc   : > { %s3315_s13 = smov 2  }
   0xd   : > { %s4311_s22 = smov (!%p287_p3, %s3036_s22), 1  ;;  %v3428_v62 = vshrl.u32 %v337_v46, 7 }
   0xe   : > { %s3360_s23 = sshll.u32 %s4311_s22, 5 }
   0xf   : > { %s3366_s26 = scalar_lea.vmem %s4180_s0, %s3360_s23  ;;  %s3404_s30 = scalar_lea.vmem %s4181_s1, %s3360_s23 }
  0x10   : > { %v744_v0 = vld [vmem:[%s3366_s26 + $0x4] sm:$0x1]  ;;  %v742_v1 = vld [vmem:[%s3366_s26] sm:$0x1]  ;;  %v745_v2 = vld [vmem:[%s3366_s26 + $0x6] sm:$0x1]  ;;  %s3412_s9 = scalar_lea.vmem %s4182_s2, %s3360_s23  ;;  %s3530_s12 = scalar_lea.vmem %s4183_s3, %s3360_s23 }
  0x11   : > { %783 = vrot.lane.b32.xlu1 %v744_v0, %s3312_s27  ;;  %779 = vrot.lane.b32.xlu0 %v742_v1, %s3312_s27  ;;  %v743_v3 = vld [vmem:[%s3366_s26 + $0x2] sm:$0x1]  ;;  %v747_v4 = vld [vmem:[%s3366_s26 + $0xa] sm:$0x1] }
  0x12   : > { %v746_v5 = vld [vmem:[%s3366_s26 + $0x8] sm:$0x1]  ;;  %v749_v6 = vld [vmem:[%s3366_s26 + $0xe] sm:$0x1]  ;;  %v748_v7 = vld [vmem:[%s3366_s26 + $0xc] sm:$0x1] }
  0x13   : > { %v751_v8 = vld [vmem:[%s3366_s26 + $0x12] sm:$0x1]  ;;  %v750_v9 = vld [vmem:[%s3366_s26 + $0x10] sm:$0x1]  ;;  %v753_v10 = vld [vmem:[%s3366_s26 + $0x16] sm:$0x1] }
  0x14   : > { %v752_v11 = vld [vmem:[%s3366_s26 + $0x14] sm:$0x1]  ;;  %v2499_v12 = vld [vmem:[%s3366_s26 + $0x2] sm:$0x3]  ;;  %v2498_v13 = vld [vmem:[%s3366_s26] sm:$0x3] }
  0x15   : > { %785 = vrot.lane.b32.xlu1 %v745_v2, %s3312_s27  ;;  %781 = vrot.lane.b32.xlu0 %v743_v3, %s3312_s27  ;;  %v755_v14 = vld [vmem:[%s3366_s26 + $0x1a] sm:$0x1]  ;;  %v754_v15 = vld [vmem:[%s3366_s26 + $0x18] sm:$0x1]  ;;  %v2529_v17 = vshrl.u32 %v2499_v12, 16  ;;  %v2532_v18 = vshll.u32 %v2499_v12, 16 }
  0x16   : > { %v2501_v16 = vld [vmem:[%s3366_s26 + $0x6] sm:$0x3]  ;;  %v2500_v19 = vld [vmem:[%s3366_s26 + $0x4] sm:$0x3]  ;;  %v757_v20 = vld [vmem:[%s3366_s26 + $0x1e] sm:$0x1] }
  0x17   : > { %v756_v21 = vld [vmem:[%s3366_s26 + $0x1c] sm:$0x1]  ;;  %v2520_v22 = vshrl.u32 %v2498_v13, 16  ;;  %v2523_v23 = vshll.u32 %v2498_v13, 16  ;;  %v2547_v24 = vshrl.u32 %v2501_v16, 16  ;;  %v2550_v25 = vshll.u32 %v2501_v16, 16 }
  0x18   : > { %v2503_v26 = vld [vmem:[%s3366_s26 + $0xa] sm:$0x3]  ;;  %v2538_v27 = vshrl.u32 %v2500_v19, 16  ;;  %v2541_v28 = vshll.u32 %v2500_v19, 16  ;;  %v2502_v29 = vld [vmem:[%s3366_s26 + $0x8] sm:$0x3] }
  0x19   : > { %789 = vrot.lane.b32.xlu1 %v747_v4, %s3312_s27  ;;  %787 = vrot.lane.b32.xlu0 %v746_v5, %s3312_s27  ;;  %v2531_v30 = vrot.slane %v2529_v17, 6  ;;  %v2534_v31 = vrot.slane %v2532_v18, 7  ;;  %v1461_v32 = vld [vmem:[%s3412_s9 + $0x2] sm:$0x1]  ;;  %v1460_v33 = vld [vmem:[%s3412_s9] sm:$0x1] }
  0x1a   : > { %v2522_v34 = vrot.slane %v2520_v22, 6  ;;  %v2525_v35 = vrot.slane %v2523_v23, 7  ;;  %v2565_v36 = vshrl.u32 %v2503_v26, 16  ;;  %v2568_v37 = vshll.u32 %v2503_v26, 16  ;;  %v2505_v44 = vld [vmem:[%s3366_s26 + $0xe] sm:$0x3] }
  0x1b   : > { %v2556_v38 = vshrl.u32 %v2502_v29, 16  ;;  %v2559_v39 = vshll.u32 %v2502_v29, 16  ;;  %v2549_v40 = vrot.slane %v2547_v24, 6  ;;  %v2552_v41 = vrot.slane %v2550_v25, 7  ;;  %v2504_v45 = vld [vmem:[%s3366_s26 + $0xc] sm:$0x3] }
  0x1c   : > { %v2540_v42 = vrot.slane %v2538_v27, 6  ;;  %v2543_v43 = vrot.slane %v2541_v28, 7  ;;  %v1463_v47 = vld [vmem:[%s3412_s9 + $0x6] sm:$0x1]  ;;  %v1462_v48 = vld [vmem:[%s3412_s9 + $0x4] sm:$0x1]  ;;  %v2535_v54 = vor.u32 %v2534_v31, %v2531_v30  ;;  %v2526_v55 = vor.u32 %v2525_v35, %v2522_v34 }
  0x1d   : > { %793 = vrot.lane.b32.xlu1 %v749_v6, %s3312_s27  ;;  %791 = vrot.lane.b32.xlu0 %v748_v7, %s3312_s27  ;;  %v2567_v49 = vrot.slane %v2565_v36, 6  ;;  %v2570_v50 = vrot.slane %v2568_v37, 7  ;;  %v2507_v51 = vld [vmem:[%s3366_s26 + $0x12] sm:$0x3]  ;;  %v2558_v52 = vrot.slane %v2556_v38, 6  ;;  %v2561_v53 = vrot.slane %v2559_v39, 7 }
  0x1e   : > { %v2553_v56 = vor.u32 %v2552_v41, %v2549_v40  ;;  %v2583_v57 = vshrl.u32 %v2505_v44, 16  ;;  %v2506_v58 = vld [vmem:[%s3366_s26 + $0x10] sm:$0x3]  ;;  %v2586_v59 = vshll.u32 %v2505_v44, 16  ;;  %v2574_v60 = vshrl.u32 %v2504_v45, 16 }
  0x1f   : > { %v2577_v61 = vshll.u32 %v2504_v45, 16  ;;  %v2544_v63 = vor.u32 %v2543_v43, %v2540_v42  ;;  %v2601_v0 = vshrl.u32 %v2507_v51, 16  ;;  %v2604_v1 = vshll.u32 %v2507_v51, 16  ;;  %v1465_v2 = vld [vmem:[%s3412_s9 + $0xa] sm:$0x1] }
  0x20   : > { %v1464_v3 = vld [vmem:[%s3412_s9 + $0x8] sm:$0x1]  ;;  %v2571_v4 = vor.u32 %v2570_v50, %v2567_v49  ;;  %v2562_v5 = vor.u32 %v2561_v53, %v2558_v52  ;;  %v3434_v6 = vrot.slane %v2535_v54, 2  ;;  %v3436_v7 = vrot.slane %v2526_v55, 2  ;;  %v1467_v16 = vld [vmem:[%s3412_s9 + $0xe] sm:$0x1] }
  0x21   : > { %797 = vrot.lane.b32.xlu1 %v751_v8, %s3312_s27  ;;  %795 = vrot.lane.b32.xlu0 %v750_v9, %s3312_s27  ;;  %v3438_v8 = vrot.slane %v2553_v56, 2  ;;  %v2585_v9 = vrot.slane %v2583_v57, 6  ;;  %v2576_v12 = vrot.slane %v2574_v60, 6  ;;  %v2579_v13 = vrot.slane %v2577_v61, 7  ;;  %v1466_v17 = vld [vmem:[%s3412_s9 + $0xc] sm:$0x1] }
  0x22   : > { %v3444_v18 = vrot.slane %v2544_v63, 2  ;;  %v2603_v19 = vrot.slane %v2601_v0, 6  ;;  %v2511_v22 = vld [vmem:[%s3366_s26 + $0x1a] sm:$0x3]  ;;  %v3449_v23 = vrot.slane %v2571_v4, 2  ;;  %v3451_v24 = vrot.slane %v2562_v5, 2 }
  0x23   : > { %v3313_v27 = vmov 1934713408   ;;  %v2580_v30 = vor.u32 %v2579_v13, %v2576_v12  ;;  %v1468_v34 = vld [vmem:[%s3412_s9 + $0x10] sm:$0x1]  ;;  %v2510_v38 = vld [vmem:[%s3366_s26 + $0x18] sm:$0x3] }
  0x24   : > { %v335_v28 = vunpack.c.l.s4 %v3313_v27  ;;  %v2637_v39 = vshrl.u32 %v2511_v22, 16  ;;  %v2640_v40 = vshll.u32 %v2511_v22, 16  ;;  %v1471_v44 = vld [vmem:[%s3412_s9 + $0x16] sm:$0x1]  ;;  %v1470_v45 = vld [vmem:[%s3412_s9 + $0x14] sm:$0x1] }
  0x25   : > { %801 = vrot.lane.b32.xlu1 %v753_v10, %s3312_s27  ;;  %799 = vrot.lane.b32.xlu0 %v752_v11, %s3312_s27  ;;  %v2509_v10 = vld [vmem:[%s3366_s26 + $0x16] sm:$0x3]  ;;  %v2588_v11 = vrot.slane %v2586_v59, 7  ;;  %v3460_v42 = vrot.slane %v2580_v30, 2  ;;  %v2628_v53 = vshrl.u32 %v2510_v38, 16  ;;  %v2631_v0 = vshll.u32 %v2510_v38, 16 }
  0x26   : > { %v2619_v25 = vshrl.u32 %v2509_v10, 16  ;;  %v2622_v26 = vshll.u32 %v2509_v10, 16  ;;  %v336_v43 = vunpack.c.0.s8 %v335_v28  ;;  %v2639_v51 = vrot.slane %v2637_v39, 6  ;;  %v2513_v54 = vld [vmem:[%s3366_s26 + $0x1e] sm:$0x3] }
  0x27   : > { %v2589_v29 = vor.u32 %v2588_v11, %v2585_v9  ;;  %v2642_v52 = vrot.slane %v2640_v40, 7  ;;  %v3470_v56 = vld.sshfl [vmem:[%s3404_s30] sm:$0x3 pattern:$0x73516240]  ;;  %v2658_v9 = vshll.u32 %v2513_v54, 16 }
  0x28   : > { %v3473_v57 = vld.sshfl [vmem:[%s3404_s30 + $0x2] sm:$0x3 pattern:$0x73516240]  ;;  %v1473_v59 = vld [vmem:[%s3412_s9 + $0x1a] sm:$0x1] }
  0x29   : > { %805 = vrot.lane.b32.xlu1 %v755_v14, %s3312_s27  ;;  %803 = vrot.lane.b32.xlu0 %v754_v15, %s3312_s27  ;;  %v2592_v14 = vshrl.u32 %v2506_v58, 16  ;;  %v2508_v15 = vld [vmem:[%s3366_s26 + $0x14] sm:$0x3]  ;;  %v3458_v41 = vrot.slane %v2589_v29, 2  ;;  %v1472_v60 = vld [vmem:[%s3412_s9 + $0x18] sm:$0x1]  ;;  %v2643_v11 = vor.u32 %v2642_v52, %v2639_v51 }
  0x2a   : > { %v2613_v37 = vshll.u32 %v2508_v15, 16  ;;  %v3481_v61 = vld.sshfl [vmem:[%s3404_s30 + $0xa] sm:$0x3 pattern:$0x73516240]  ;;  %v3520_v29 = vrot.slane %v2658_v9, 7 }
  0x2b   : > { %v2594_v31 = vrot.slane %v2592_v14, 6  ;;  %4226 = vst [vmem:[#allocation3_spill] sm:$0xff] %v3481_v61  ;;  %v3492_v4 = vld.sshfl [vmem:[%s3404_s30 + $0x10] sm:$0x3 pattern:$0x73516240] }
  0x2c   : > { %v2615_v50 = vrot.slane %v2613_v37, 7  ;;  %4227 = vst [vmem:[#allocation4_spill] sm:$0xff] %v3492_v4  ;;  %v3497_v12 = vld.sshfl [vmem:[%s3404_s30 + $0x12] sm:$0x3 pattern:$0x73516240] }
  0x2d   : > { %809 = vrot.lane.b32.xlu1 %v757_v20, %s3312_s27  ;;  %807 = vrot.lane.b32.xlu0 %v756_v21, %s3312_s27  ;;  %v2606_v20 = vrot.slane %v2604_v1, 7  ;;  %v2595_v21 = vshll.u32 %v2506_v58, 16  ;;  %v3476_v58 = vld.sshfl [vmem:[%s3404_s30 + $0x8] sm:$0x3 pattern:$0x73516240] }
  0x2e   : > { %4225 = vst [vmem:[#allocation2_spill] sm:$0xff] %v3476_v58  ;;  %v2655_v1 = vshrl.u32 %v2513_v54, 16  ;;  %4228 = vst [vmem:[#allocation5_spill] sm:$0xff] %v3497_v12  ;;  %v1475_v14 = vld [vmem:[%s3412_s9 + $0x1e] sm:$0x1]  ;;  %v3518_v28 = vrot.slane %v2643_v11, 2 }
  0x2f   : > { %v2607_v35 = vor.u32 %v2606_v20, %v2603_v19  ;;  %v2597_v36 = vrot.slane %v2595_v21, 7  ;;  %v3500_v13 = vld.sshfl [vmem:[%s3404_s30 + $0x18] sm:$0x3 pattern:$0x73516240]  ;;  %v3507_v19 = vrot.slane %v2628_v53, 6 }
  0x30   : > { %4229 = vst [vmem:[#allocation6_spill] sm:$0xff] %v3500_v13  ;;  %v1474_v20 = vld [vmem:[%s3412_s9 + $0x1c] sm:$0x1]  ;;  %v3510_v21 = vrot.slane %v2631_v0, 7  ;;  %v3512_v22 = vrot.slane %v2655_v1, 6 }
  0x31   : > { %1499 = vrot.lane.b32.xlu1 %v1461_v32, %s3312_s27  ;;  %1497 = vrot.lane.b32.xlu0 %v1460_v33, %s3312_s27  ;;  %v2610_v32 = vshrl.u32 %v2508_v15, 16  ;;  %v1469_v33 = vld [vmem:[%s3412_s9 + $0x12] sm:$0x1]  ;;  %v3464_v46 = vrot.slane %v2607_v35, 2  ;;  %v2598_v55 = vor.u32 %v2597_v36, %v2594_v31  ;;  %v3314_v15 = vmov 1983009808  }
  0x32   : > { %v3523_v30 = vld.sshfl [vmem:[%s3404_s30 + $0x1a] sm:$0x3 pattern:$0x73516240]  ;;  %v550_v31 = vshrl.u32 %v3470_v56, 16  ;;  %v557_v35 = vshrl.u32 %v3481_v61, 16 }
  0x33   : > { %v2612_v49 = vrot.slane %v2610_v32, 6  ;;  %v3494_v5 = vrot.slane %v2598_v55, 2  ;;  %4230 = vst [vmem:[#allocation7_spill] sm:$0xff] %v3523_v30  ;;  %v551_v32 = vshrl.u32 %v3473_v57, 16  ;;  %v562_v36 = vshrl.u32 %v3492_v4, 16 }
  0x34   : > { %v3542_v37 = vld.sshfl [vmem:[%s3366_s26 + $0x2] sm:$0x3 pattern:$0x73516240] }
  0x35   : > { %1503 = vrot.lane.b32.xlu1 %v1463_v47, %s3312_s27  ;;  %1501 = vrot.lane.b32.xlu0 %v1462_v48, %s3312_s27  ;;  %v2621_v47 = vrot.slane %v2619_v25, 6  ;;  %v2624_v48 = vrot.slane %v2622_v26, 7  ;;  %v2616_v10 = vor.u32 %v2615_v50, %v2612_v49  ;;  %4232 = vst [vmem:[#allocation9_spill] sm:$0xff] %v3542_v37  ;;  %v401_v1 = vshrl.u32 %v3542_v37, 16 }
  0x36   : > { %v3545_v38 = vld.sshfl [vmem:[%s3366_s26 + $0x8] sm:$0x3 pattern:$0x73516240] }
  0x37   : > { %v2625_v63 = vor.u32 %v2624_v48, %v2621_v47  ;;  %v3516_v27 = vrot.slane %v2616_v10, 2  ;;  %4233 = vst [vmem:[#allocation10_spill] sm:$0xff] %v3545_v38  ;;  %v3548_v39 = vld.sshfl [vmem:[%s3366_s26 + $0xa] sm:$0x3 pattern:$0x73516240] }
  0x38   : > { %4234 = vst [vmem:[#allocation11_spill] sm:$0xff] %v3548_v39  ;;  %v3551_v40 = vld.sshfl [vmem:[%s3366_s26 + $0x10] sm:$0x3 pattern:$0x73516240]  ;;  %v406_v9 = vshrl.u32 %v3545_v38, 16 }
  0x39   : > { %1507 = vrot.lane.b32.xlu1 %v1465_v2, %s3312_s27  ;;  %1505 = vrot.lane.b32.xlu0 %v1464_v3, %s3312_s27  ;;  %v3486_v2 = vld [vmem:[%s3366_s26 + $0x1c] sm:$0x3]  ;;  %v3489_v3 = vsub.s32 %v336_v43, %v3428_v62  ;;  %4235 = vst [vmem:[#allocation12_spill] sm:$0xff] %v3551_v40  ;;  %v407_v10 = vshrl.u32 %v3548_v39, 16  ;;  %v412_v11 = vshrl.u32 %v3551_v40, 16 }
  0x3a   : > { %v2646_v25 = vshrl.u32 %v3486_v2, 16  ;;  %v3560_v47 = vld.sshfl [vmem:[%s3366_s26 + $0x1a] sm:$0x3 pattern:$0x73516240] }
  0x3b   : > { %4238 = vst [vmem:[#allocation15_spill] sm:$0xff] %v3560_v47  ;;  %v3563_v48 = vld.sshfl [vmem:[%s3412_s9] sm:$0x3 pattern:$0x73516240] }
  0x3c   : > { %4239 = vst [vmem:[#allocation16_spill] sm:$0xff] %v3563_v48  ;;  %v3566_v49 = vld.sshfl [vmem:[%s3412_s9 + $0x2] sm:$0x3 pattern:$0x73516240]  ;;  %v3622_v26 = vrot.slane %v2646_v25, 6 }
  0x3d   : > { %1511 = vrot.lane.b32.xlu1 %v1467_v16, %s3312_s27  ;;  %1509 = vrot.lane.b32.xlu0 %v1466_v17, %s3312_s27  ;;  %v424_v16 = vunpack.c.l.s4 %v3314_v15  ;;  %v3505_v17 = vrot.slane %v2625_v63, 2  ;;  %4240 = vst [vmem:[#allocation17_spill] sm:$0xff] %v3566_v49  ;;  %v3569_v50 = vld.sshfl [vmem:[%s3412_s9 + $0x8] sm:$0x3 pattern:$0x73516240]  ;;  %v2634_v63 = vor.u32 %v3510_v21, %v3507_v19 }
  0x3e   : > { %4241 = vst [vmem:[#allocation18_spill] sm:$0xff] %v3569_v50  ;;  %v3572_v51 = vld.sshfl [vmem:[%s3412_s9 + $0xa] sm:$0x3 pattern:$0x73516240]  ;;  %v1113_v15 = vshrl.u32 %v3566_v49, 16 }
  0x3f   : > { %v425_v43 = vunpack.c.0.s8 %v424_v16  ;;  %4242 = vst [vmem:[#allocation19_spill] sm:$0xff] %v3572_v51  ;;  %v3575_v52 = vld.sshfl [vmem:[%s3412_s9 + $0x10] sm:$0x3 pattern:$0x73516240]  ;;  %v1118_v16 = vshrl.u32 %v3569_v50, 16 }
  0x40   : > { %4243 = vst [vmem:[#allocation20_spill] sm:$0xff] %v3575_v52  ;;  %v3578_v53 = vld.sshfl [vmem:[%s3412_s9 + $0x12] sm:$0x3 pattern:$0x73516240]  ;;  %v1119_v19 = vshrl.u32 %v3572_v51, 16 }
  0x41   : > { %1515 = vrot.lane.b32.xlu1 %v1469_v33, %s3312_s27  ;;  %1513 = vrot.lane.b32.xlu0 %v1468_v34, %s3312_s27  ;;  %v556_v33 = vshrl.u32 %v3476_v58, 16  ;;  %v3535_v34 = vld.sshfl [vmem:[%s3366_s26] sm:$0x3 pattern:$0x73516240]  ;;  %4244 = vst [vmem:[#allocation21_spill] sm:$0xff] %v3578_v53  ;;  %v3595_v0 = vsub.s32 %v425_v43, %v3428_v62 }
  0x42   : > { %4231 = vst [vmem:[#allocation8_spill] sm:$0xff] %v3535_v34  ;;  %v3581_v54 = vld.sshfl [vmem:[%s3412_s9 + $0x18] sm:$0x3 pattern:$0x73516240]  ;;  %v1125_v21 = vshrl.u32 %v3578_v53, 16 }
  0x43   : > { %4245 = vst [vmem:[#allocation22_spill] sm:$0xff] %v3581_v54  ;;  %v3584_v55 = vld.sshfl [vmem:[%s3412_s9 + $0x1a] sm:$0x3 pattern:$0x73516240]  ;;  %v1130_v43 = vshrl.u32 %v3581_v54, 16 }
  0x44   : > { %4246 = vst [vmem:[#allocation23_spill] sm:$0xff] %v3584_v55  ;;  %v1742_v49 = vld [vmem:[%s3366_s26] sm:$0x3]  ;;  %v1743_v51 = vld [vmem:[%s3366_s26 + $0x2] sm:$0x3]  ;;  %v4247_v25 = vshll.u32 %v3486_v2, 16 }
  0x45   : > { %1519 = vrot.lane.b32.xlu1 %v1471_v44, %s3312_s27  ;;  %1517 = vrot.lane.b32.xlu0 %v1470_v45, %s3312_s27  ;;  %v3554_v44 = vld.sshfl [vmem:[%s3366_s26 + $0x12] sm:$0x3 pattern:$0x73516240]  ;;  %v1744_v39 = vld [vmem:[%s3366_s26 + $0x4] sm:$0x3] }
  0x46   : > { %4236 = vst [vmem:[#allocation13_spill] sm:$0xff] %v3554_v44  ;;  %v3557_v45 = vld.sshfl [vmem:[%s3366_s26 + $0x18] sm:$0x3 pattern:$0x73516240]  ;;  %v413_v62 = vshrl.u32 %v3554_v44, 16  ;;  %v408_v44 = vpack.i.b16 %v407_v10, %v406_v9 }
  0x47   : > { %4237 = vst [vmem:[#allocation14_spill] sm:$0xff] %v3557_v45  ;;  %v1782_v9 = vshrl.u32 %v1744_v39, 16  ;;  %v1785_v10 = vshll.u32 %v1744_v39, 16 }
  0x48   : > { %v414_v40 = vpack.i.b16 %v413_v62, %v412_v11 }
  0x49   : > { %1523 = vrot.lane.b32.xlu1 %v1473_v59, %s3312_s27  ;;  %1521 = vrot.lane.b32.xlu0 %v1472_v60, %s3312_s27  ;;  %v563_v59 = vshrl.u32 %v3497_v12, 16  ;;  %v568_v60 = vshrl.u32 %v3500_v13, 16 }
  0x4d   : > { %1527 = vrot.lane.b32.xlu1 %v1475_v14, %s3312_s27  ;;  %1525 = vrot.lane.b32.xlu0 %v1474_v20, %s3312_s27  ;;  %v418_v14 = vshrl.u32 %v3557_v45, 16  ;;  %v1124_v20 = vshrl.u32 %v3575_v52, 16 }
  0x51   : > { %2665 = vrot.lane.b32.xlu1 %v3434_v6, %s3312_s27  ;;  %2663 = vrot.lane.b32.xlu0 %v3436_v7, %s3312_s27  ;;  %v569_v6 = vshrl.u32 %v3523_v30, 16  ;;  %v400_v7 = vshrl.u32 %v3535_v34, 16 }
  0x53   : > { %v570_v45 = vpack.i.b16 %v569_v6, %v568_v60  ;;  %v402_v50 = vpack.i.b16 %v401_v1, %v400_v7  ;;  %v1764_v60 = vshrl.u32 %v1742_v49, 16  ;;  %v1767_v6 = vshll.u32 %v1742_v49, 16  ;;  %v1746_v49 = vld [vmem:[%s3366_s26 + $0x8] sm:$0x3] }
  0x54   : > { %v1773_v7 = vshrl.u32 %v1743_v51, 16  ;;  %v1776_v1 = vshll.u32 %v1743_v51, 16 }
  0x55   : > { %2669 = vrot.lane.b32.xlu1 %v3438_v8, %s3312_s27  ;;  %2667 = vrot.lane.b32.xlu0 %v3444_v18, %s3312_s27  ;;  %v419_v8 = vshrl.u32 %v3560_v47, 16  ;;  %v1112_v18 = vshrl.u32 %v3563_v48, 16  ;;  %v558_v48 = vpack.i.b16 %v557_v35, %v556_v33  ;;  %v564_v47 = vpack.i.b16 %v563_v59, %v562_v36  ;;  %v1745_v59 = vld [vmem:[%s3366_s26 + $0x6] sm:$0x3] }
  0x56   : > { %v1120_v33 = vpack.i.b16 %v1119_v19, %v1118_v16  ;;  %v1126_v35 = vpack.i.b16 %v1125_v21, %v1124_v20  ;;  %v438_v62 = vcombine.low %v402_v50, %v408_v44  ;;  %v1766_v39 = vrot.slane %v1764_v60, 6  ;;  %v1747_v50 = vld [vmem:[%s3366_s26 + $0xa] sm:$0x3]  ;;  %v1751_v60 = vld [vmem:[%s3366_s26 + $0x12] sm:$0x3] }
  0x57   : > { %v589_v2 = vcombine.low %v564_v47, %v570_v45  ;;  %v1775_v16 = vrot.slane %v1773_v7, 6  ;;  %v1787_v45 = vrot.slane %v1785_v10, 7 }
  0x59   : > { %2673 = vrot.lane.b32.xlu1 %v3449_v23, %s3312_s27  ;;  %2671 = vrot.lane.b32.xlu0 %v3451_v24, %s3312_s27  ;;  %v1131_v23 = vshrl.u32 %v3584_v55, 16  ;;  %v552_v24 = vpack.i.b16 %v551_v32, %v550_v31  ;;  %v2651_v55 = vrot.slane %v4247_v25, 7  ;;  %v420_v31 = vpack.i.b16 %v419_v8, %v418_v14  ;;  %v1749_v25 = vld [vmem:[%s3366_s26 + $0xe] sm:$0x3] }
  0x5a   : > { %v1114_v32 = vpack.i.b16 %v1113_v15, %v1112_v18  ;;  %v1791_v18 = vshrl.u32 %v1745_v59, 16  ;;  %v1794_v15 = vshll.u32 %v1745_v59, 16  ;;  %v3650_v44 = vrot.slane %v589_v2, %v3595_v0  ;;  %v1750_v59 = vld [vmem:[%s3366_s26 + $0x10] sm:$0x3] }
  0x5b   : > { %v1132_v36 = vpack.i.b16 %v1131_v23, %v1130_v43  ;;  %v588_v11 = vcombine.low %v552_v24, %v558_v48  ;;  %v439_v14 = vcombine.low %v414_v40, %v420_v31  ;;  %v1803_v40 = vshll.u32 %v1746_v49, 16 }
  0x5c   : > { %v1150_v8 = vcombine.low %v1114_v32, %v1120_v33  ;;  %v3653_v48 = vrot.slane %v438_v62, %v3595_v0  ;;  %v1809_v33 = vshrl.u32 %v1747_v50, 16 }
  0x5d   : > { %2677 = vrot.lane.b32.xlu1 %v3458_v41, %s3312_s27  ;;  %2675 = vrot.lane.b32.xlu0 %v3460_v42, %s3312_s27  ;;  %v2635_v41 = vrot.slane %v2634_v63, 2  ;;  %v2661_v42 = vor.u32 %v3520_v29, %v3512_v22  ;;  %v1151_v51 = vcombine.low %v1126_v35, %v1132_v36  ;;  %v1769_v63 = vrot.slane %v1767_v6, 7 }
  0x5e   : > { %v1778_v22 = vrot.slane %v1776_v1, 7  ;;  %v1784_v29 = vrot.slane %v1782_v9, 6  ;;  %v3643_v47 = vrot.slane %v588_v11, %v3595_v0  ;;  %v453_v19 = vrot.slane %v439_v14, %v3595_v0  ;;  %v1753_v11 = vld [vmem:[%s3366_s26 + $0x16] sm:$0x3] }
  0x5f   : > { %v3658_v20 = vrot.slane %v1150_v8, %v3595_v0  ;;  %v1770_v21 = vor.u32 %v1769_v63, %v1766_v39  ;;  %v2662_v43 = vrot.slane %v2661_v42, 2  ;;  %v3667_v32 = vrot.slane %v1803_v40, 7  ;;  %v1752_v42 = vld [vmem:[%s3366_s26 + $0x14] sm:$0x3] }
  0x60   : > { %v1779_v23 = vor.u32 %v1778_v22, %v1775_v16  ;;  %v1788_v24 = vor.u32 %v1787_v45, %v1784_v29  ;;  %v1812_v35 = vshll.u32 %v1747_v50, 16  ;;  %v604_v1 = vcombine.low %v3643_v47, %v3650_v44  ;;  %v1756_v45 = vld [vmem:[%s3366_s26 + $0x1c] sm:$0x3]  ;;  %v1757_v44 = vld [vmem:[%s3366_s26 + $0x1e] sm:$0x3] }
  0x61   : > { %2681 = vrot.lane.b32.xlu1 %v3464_v46, %s3312_s27  ;;  %2679 = vrot.lane.b32.xlu0 %v3494_v5, %s3312_s27  ;;  %v2652_v46 = vor.u32 %v2651_v55, %v3622_v26  ;;  %v1800_v5 = vshrl.u32 %v1746_v49, 16  ;;  %v1793_v26 = vrot.slane %v1791_v18, 6  ;;  %v1796_v55 = vrot.slane %v1794_v15, 7  ;;  %v1755_v49 = vld [vmem:[%s3366_s26 + $0x1a] sm:$0x3] }
  0x62   : > { %v454_v9 = vcombine.low %v3653_v48, %v453_v19  ;;  %v3681_v2 = vrot.slane %v1770_v21, 2  ;;  %v3686_v62 = vrot.slane %v1788_v24, 2  ;;  %v1827_v8 = vshrl.u32 %v1749_v25, 16 }
  0x63   : > { %v3665_v31 = vrot.slane %v1800_v5, 6  ;;  %v2653_v36 = vrot.slane %v2652_v46, 2  ;;  %v1797_v6 = vor.u32 %v1796_v55, %v1793_v26  ;;  %v1814_v39 = vrot.slane %v1812_v35, 7 }
  0x64   : > { %v1830_v63 = vshll.u32 %v1749_v25, 16  ;;  %v1836_v22 = vshrl.u32 %v1750_v59, 16  ;;  %v1839_v29 = vshll.u32 %v1750_v59, 16  ;;  %v1845_v46 = vshrl.u32 %v1751_v60, 16 }
  0x65   : > { %2685 = vrot.lane.b32.xlu1 %v3505_v17, %s3312_s27  ;;  %2683 = vrot.lane.b32.xlu0 %v3516_v27, %s3312_s27  ;;  %v3661_v17 = vrot.slane %v1151_v51, %v3595_v0  ;;  %v1748_v27 = vld [vmem:[%s3366_s26 + $0xc] sm:$0x3]  ;;  %v1806_v18 = vor.u32 %v3667_v32, %v3665_v31  ;;  %v1811_v51 = vrot.slane %v1809_v33, 6  ;;  %v3693_v15 = vrot.slane %v1797_v6, 2 }
  0x66   : > { %v1818_v7 = vshrl.u32 %v1748_v27, 16  ;;  %v1821_v14 = vshll.u32 %v1748_v27, 16  ;;  %v1848_v47 = vshll.u32 %v1751_v60, 16  ;;  %v1854_v5 = vshrl.u32 %v1752_v42, 16 }
  0x67   : > { %v1166_v10 = vcombine.low %v3658_v20, %v3661_v17  ;;  %v1857_v40 = vshll.u32 %v1752_v42, 16  ;;  %v1829_v50 = vrot.slane %v1827_v8, 6  ;;  %v1863_v26 = vshrl.u32 %v1753_v11, 16 }
  0x68   : > { %v1820_v16 = vrot.slane %v1818_v7, 6  ;;  %v1823_v48 = vrot.slane %v1821_v14, 7  ;;  %v1866_v55 = vshll.u32 %v1753_v11, 16  ;;  %v1815_v21 = vor.u32 %v1814_v39, %v1811_v51 }
  0x69   : > { %2689 = vrot.lane.b32.xlu1 %v3518_v28, %s3312_s27  ;;  %2687 = vrot.lane.b32.xlu0 %v2635_v41, %s3312_s27  ;;  %v1754_v28 = vld [vmem:[%s3366_s26 + $0x18] sm:$0x3]  ;;  %v3684_v41 = vrot.slane %v1779_v23, 2  ;;  %v1838_v32 = vrot.slane %v1836_v22, 6  ;;  %v1841_v33 = vrot.slane %v1839_v29, 7  ;;  %v1881_v35 = vshrl.u32 %v1755_v49, 16 }
  0x6a   : > { %v3698_v19 = vld.sshfl [vmem:[%s3530_s12] sm:$0x3 pattern:$0x73516240]  ;;  %v1872_v23 = vshrl.u32 %v1754_v28, 16  ;;  %v1875_v24 = vshll.u32 %v1754_v28, 16  ;;  %v1824_v22 = vor.u32 %v1823_v48, %v1820_v16 }
  0x6b   : > { %4248 = vst [vmem:[#allocation24_spill] sm:$0xff] %v3698_v19  ;;  %v3701_v20 = vld.sshfl [vmem:[%s3530_s12 + $0x2] sm:$0x3 pattern:$0x73516240]  ;;  %v1847_v6 = vrot.slane %v1845_v46, 6 }
  0x6c   : > { %4249 = vst [vmem:[#allocation25_spill] sm:$0xff] %v3701_v20  ;;  %v3704_v17 = vld.sshfl [vmem:[%s3530_s12 + $0x8] sm:$0x3 pattern:$0x73516240]  ;;  %v1850_v7 = vrot.slane %v1848_v47, 7 }
  0x6d   : > { %2693 = vrot.lane.b32.xlu1 %v2662_v43, %s3312_s27  ;;  %2691 = vrot.lane.b32.xlu0 %v2653_v36, %s3312_s27  ;;  %4250 = vst [vmem:[#allocation26_spill] sm:$0xff] %v3704_v17  ;;  %v3707_v27 = vld.sshfl [vmem:[%s3530_s12 + $0xa] sm:$0x3 pattern:$0x73516240]  ;;  %v1832_v43 = vrot.slane %v1830_v63, 7 }
  0x6e   : > { %4251 = vst [vmem:[#allocation27_spill] sm:$0xff] %v3707_v27  ;;  %v3712_v25 = vld.sshfl [vmem:[%s3530_s12 + $0x10] sm:$0x3 pattern:$0x73516240]  ;;  %v1884_v36 = vshll.u32 %v1755_v49, 16  ;;  %v1851_v38 = vor.u32 %v1850_v7, %v1847_v6 }
  0x6f   : > { %4252 = vst [vmem:[#allocation28_spill] sm:$0xff] %v3712_v25  ;;  %v3715_v31 = vld.sshfl [vmem:[%s3530_s12 + $0x12] sm:$0x3 pattern:$0x73516240]  ;;  %v1856_v42 = vrot.slane %v1854_v5, 6  ;;  %v1833_v49 = vor.u32 %v1832_v43, %v1829_v50 }
  0x70   : > { %4253 = vst [vmem:[#allocation29_spill] sm:$0xff] %v3715_v31  ;;  %v3718_v59 = vld.sshfl [vmem:[%s3530_s12 + $0x18] sm:$0x3 pattern:$0x73516240]  ;;  %v1859_v11 = vrot.slane %v1857_v40, 7 }
  0x71   : > { %605 = vrot.lane.b32.xlu0 %v604_v1, %s3315_s13  ;;  %455 = vrot.lane.b32.xlu1 %v454_v9, %s3315_s13  ;;  %4254 = vst [vmem:[#allocation30_spill] sm:$0xff] %v3718_v59  ;;  %v3721_v60 = vld.sshfl [vmem:[%s3530_s12 + $0x1a] sm:$0x3 pattern:$0x73516240]  ;;  %v1865_v28 = vrot.slane %v1863_v26, 6 }
  0x72   : > { %4255 = vst [vmem:[#allocation31_spill] sm:$0xff] %v3721_v60  ;;  %v1868_v1 = vrot.slane %v1866_v55, 7  ;;  %v1890_v14 = vshrl.u32 %v1756_v45, 16  ;;  %v1893_v9 = vshll.u32 %v1756_v45, 16  ;;  %v1874_v8 = vrot.slane %v1872_v23, 6 }
  0x73   : > { %v1877_v51 = vrot.slane %v1875_v24, 7  ;;  %v1899_v39 = vshrl.u32 %v1757_v44, 16  ;;  %v1902_v63 = vshll.u32 %v1757_v44, 16  ;;  %v1883_v29 = vrot.slane %v1881_v35, 6 }
  0x74   : > { %v1886_v54 = vrot.slane %v1884_v36, 7  ;;  %v1892_v53 = vrot.slane %v1890_v14, 6  ;;  %v1895_v52 = vrot.slane %v1893_v9, 7  ;;  %v1807_v5 = vrot.slane %v1806_v18, 2 }
  0x75   : > { %1167 = vrot.lane.b32.xlu1 %v1166_v10, %s3315_s13  ;;  %v1901_v46 = vrot.slane %v1899_v39, 6  ;;  %v1904_v47 = vrot.slane %v1902_v63, 7  ;;  %v1816_v40 = vrot.slane %v1815_v21, 2  ;;  %v1825_v26 = vrot.slane %v1824_v22, 2 }
  0x76   : > { %v1834_v55 = vrot.slane %v1833_v49, 2  ;;  %v1330_v45 = vshrl.u32 %v3698_v19, 16  ;;  %v1331_v23 = vshrl.u32 %v3701_v20, 16  ;;  %v1842_v24 = vor.u32 %v1841_v33, %v1838_v32 }
  0x77   : > { %v1860_v44 = vor.u32 %v1859_v11, %v1856_v42  ;;  %v1869_v10 = vor.u32 %v1868_v1, %v1865_v28  ;;  %v1878_v16 = vor.u32 %v1877_v51, %v1874_v8  ;;  %v1896_v48 = vor.u32 %v1895_v52, %v1892_v53 }
  0x78   : > { %v1336_v50 = vshrl.u32 %v3704_v17, 16  ;;  %v1337_v43 = vshrl.u32 %v3707_v27, 16  ;;  %v1887_v35 = vor.u32 %v1886_v54, %v1883_v29  ;;  %v1905_v36 = vor.u32 %v1904_v47, %v1901_v46 }
  0x79   : > { %v1923_v18 = vcombine.low %v3681_v2, %v3686_v62  ;;  %v1931_v21 = vcombine.low %v3684_v41, %v3693_v15  ;;  %v1939_v14 = vcombine.low %v1807_v5, %v1825_v26  ;;  %v1947_v9 = vcombine.low %v1816_v40, %v1834_v55  ;;  %v2120_v40 = vld [vmem:[%s3404_s30] sm:$0x3] }
  0x7a   : > { %v1342_v32 = vshrl.u32 %v3712_v25, 16  ;;  %v1343_v33 = vshrl.u32 %v3715_v31, 16  ;;  %v1843_v6 = vrot.slane %v1842_v24, 2  ;;  %v1861_v52 = vrot.slane %v1860_v44, 2  ;;  %v2132_v31 = vld [vmem:[%s3404_s30 + $0x18] sm:$0x3] }
  0x7b   : > { %v1852_v53 = vrot.slane %v1851_v38, 2  ;;  %v1870_v7 = vrot.slane %v1869_v10, 2  ;;  %v1879_v42 = vrot.slane %v1878_v16, 2  ;;  %v1897_v11 = vrot.slane %v1896_v48, 2  ;;  %v2121_v10 = vld [vmem:[%s3404_s30 + $0x2] sm:$0x3] }
  0x7c   : > { %v1348_v54 = vshrl.u32 %v3718_v59, 16  ;;  %v1349_v28 = vshrl.u32 %v3721_v60, 16  ;;  %v1888_v2 = vrot.slane %v1887_v35, 2  ;;  %v1906_v62 = vrot.slane %v1905_v36, 2  ;;  %v2133_v25 = vld [vmem:[%s3404_s30 + $0x1a] sm:$0x3] }
  0x7d   : > { %v3737_v41 = vrot.slane %v1923_v18, %v3489_v3  ;;  %v3740_v15 = vrot.slane %v1931_v21, %v3489_v3  ;;  %v3743_v1 = vrot.slane %v1939_v14, %v3489_v3  ;;  %v3746_v38 = vrot.slane %v1947_v9, %v3489_v3 }
  0x7e   : > { %v1955_v8 = vcombine.low %v1843_v6, %v1861_v52  ;;  %v1332_v63 = vpack.i.b16 %v1331_v23, %v1330_v45  ;;  %v1963_v22 = vcombine.low %v1852_v53, %v1870_v7  ;;  %v1971_v49 = vcombine.low %v1879_v42, %v1897_v11 }
  0x7f   : > { %4256 = vst [vmem:[#allocation32_spill] sm:$0xff] %v3737_v41  ;;  %4257 = vst [vmem:[#allocation33_spill] sm:$0xff] %v3740_v15  ;;  %v1338_v29 = vpack.i.b16 %v1337_v43, %v1336_v50  ;;  %v1344_v46 = vpack.i.b16 %v1343_v33, %v1342_v32  ;;  %v1350_v47 = vpack.i.b16 %v1349_v28, %v1348_v54  ;;  %v1990_v26 = vshrl.u32 %v3737_v41, 16 }
  0x80   : > { %4258 = vst [vmem:[#allocation34_spill] sm:$0xff] %v3743_v1  ;;  %4259 = vst [vmem:[#allocation35_spill] sm:$0xff] %v3746_v38  ;;  %v1979_v5 = vcombine.low %v1888_v2, %v1906_v62  ;;  %v1991_v55 = vshrl.u32 %v3740_v15, 16  ;;  %v1996_v24 = vshrl.u32 %v3743_v1, 16  ;;  %v1997_v44 = vshrl.u32 %v3746_v38, 16 }
  0x81   : > { %v3755_v48 = vrot.slane %v1955_v8, %v3489_v3  ;;  %v3758_v50 = vrot.slane %v1963_v22, %v3489_v3  ;;  %v3761_v43 = vrot.slane %v1971_v49, %v3489_v3  ;;  %v2142_v35 = vshrl.u32 %v2120_v40, 16  ;;  %v2122_v62 = vld [vmem:[%s3404_s30 + $0x4] sm:$0x3]  ;;  %v2123_v22 = vld [vmem:[%s3404_s30 + $0x6] sm:$0x3] }
  0x82   : > { %v2145_v36 = vshll.u32 %v2120_v40, 16  ;;  %v3764_v21 = vrot.slane %v1979_v5, %v3489_v3  ;;  %v2151_v14 = vshrl.u32 %v2121_v10, 16  ;;  %v2154_v9 = vshll.u32 %v2121_v10, 16 }
  0x83   : > { %v784_v51 = vpop.permute.xlu1 %783  ;;  %v780_v39 = vpop.permute.xlu0 %779  ;;  %4260 = vst [vmem:[#allocation36_spill] sm:$0xff] %v3755_v48  ;;  %4261 = vst [vmem:[#allocation37_spill] sm:$0xff] %v3758_v50  ;;  %v1368_v32 = vcombine.low %v1332_v63, %v1338_v29  ;;  %v1369_v33 = vcombine.low %v1344_v46, %v1350_v47  ;;  %v1992_v6 = vpack.i.b16 %v1991_v55, %v1990_v26  ;;  %v2002_v42 = vshrl.u32 %v3755_v48, 16 }
  0x84   : > { %v827_v16 = vcombine.low %v780_v39, %v784_v51  ;;  %4262 = vst [vmem:[#allocation38_spill] sm:$0xff] %v3761_v43  ;;  %4263 = vst [vmem:[#allocation39_spill] sm:$0xff] %v3764_v21  ;;  %v1998_v52 = vpack.i.b16 %v1997_v44, %v1996_v24  ;;  %v2003_v28 = vshrl.u32 %v3758_v50, 16  ;;  %v2008_v2 = vshrl.u32 %v3761_v43, 16 }
  0x85   : > { %v2144_v8 = vrot.slane %v2142_v35, 6  ;;  %v2147_v51 = vrot.slane %v2145_v36, 7  ;;  %v2009_v63 = vshrl.u32 %v3764_v21, 16  ;;  %v2153_v49 = vrot.slane %v2151_v14, 6  ;;  %v2124_v36 = vld [vmem:[%s3404_s30 + $0x8] sm:$0x3] }
  0x86   : > { %v3767_v53 = vrot.slane %v827_v16, %v3489_v3  ;;  %v2156_v29 = vrot.slane %v2154_v9, 7  ;;  %v3781_v46 = vrot.slane %v1368_v32, %v3595_v0  ;;  %v3784_v47 = vrot.slane %v1369_v33, %v3595_v0 }
  0x87   : > { %v786_v45 = vpop.permute.xlu1 %785  ;;  %v782_v23 = vpop.permute.xlu0 %781  ;;  %v2028_v5 = vcombine.low %v1992_v6, %v1998_v52  ;;  %v2160_v40 = vshrl.u32 %v2122_v62, 16  ;;  %v2004_v24 = vpack.i.b16 %v2003_v28, %v2002_v42  ;;  %v2148_v44 = vor.u32 %v2147_v51, %v2144_v8  ;;  %v2125_v6 = vld [vmem:[%s3404_s30 + $0xa] sm:$0x3]  ;;  %v2126_v52 = vld [vmem:[%s3404_s30 + $0xc] sm:$0x3] }
  0x88   : > { %v835_v18 = vcombine.low %v782_v23, %v786_v45  ;;  %v2163_v10 = vshll.u32 %v2122_v62, 16  ;;  %v2169_v16 = vshrl.u32 %v2123_v22, 16  ;;  %v2010_v35 = vpack.i.b16 %v2009_v63, %v2008_v2  ;;  %v2127_v2 = vld [vmem:[%s3404_s30 + $0xe] sm:$0x3] }
  0x89   : > { %v3790_v9 = vrot.slane %v2028_v5, %v3595_v0  ;;  %v3800_v42 = vrot.slane %v2160_v40, 6  ;;  %v3803_v62 = vrot.slane %v2148_v44, 2  ;;  %v2178_v63 = vshrl.u32 %v2124_v36, 16  ;;  %v2128_v5 = vld [vmem:[%s3404_s30 + $0x10] sm:$0x3] }
  0x8a   : > { %v3770_v7 = vrot.slane %v835_v18, %v3489_v3  ;;  %v2157_v18 = vor.u32 %v2156_v29, %v2153_v49  ;;  %v3805_v8 = vrot.slane %v2163_v10, 7  ;;  %v3807_v51 = vrot.slane %v2169_v16, 6 }
  0x8b   : > { %v790_v11 = vpop.permute.xlu1 %789  ;;  %v788_v54 = vpop.permute.xlu0 %787  ;;  %v2029_v29 = vcombine.low %v2004_v24, %v2010_v35  ;;  %v2181_v40 = vshll.u32 %v2124_v36, 16  ;;  %v2205_v16 = vshrl.u32 %v2127_v2, 16  ;;  %v2208_v14 = vshll.u32 %v2127_v2, 16 }
  0x8c   : > { %v893_v39 = vpack.i.b16 %v3770_v7, %v3767_v53  ;;  %v3820_v35 = vrot.slane %v2178_v63, 6  ;;  %v2214_v36 = vshrl.u32 %v2128_v5, 16  ;;  %v2253_v19 = vshll.u32 %v2132_v31, 16 }
  0x8d   : > { %v2262_v37 = vshll.u32 %v2133_v25, 16 }
  0x8f   : > { %v794_v26 = vpop.permute.xlu1 %793  ;;  %v792_v55 = vpop.permute.xlu0 %791 }
  0x90   : > { %v851_v45 = vcombine.low %v790_v11, %v794_v26  ;;  %v843_v23 = vcombine.low %v788_v54, %v792_v55  ;;  %v2172_v11 = vshll.u32 %v2123_v22, 16  ;;  %v3812_v26 = vrot.slane %v2157_v18, 2 }
  0x91   : > { %v2187_v55 = vshrl.u32 %v2125_v6, 16  ;;  %v2190_v22 = vshll.u32 %v2125_v6, 16  ;;  %v2217_v18 = vshll.u32 %v2128_v5, 16 }
  0x92   : > { %v3793_v32 = vrot.slane %v851_v45, %v3489_v3  ;;  %v3796_v33 = vrot.slane %v843_v23, %v3489_v3  ;;  %v2196_v45 = vshrl.u32 %v2126_v52, 16  ;;  %v2199_v23 = vshll.u32 %v2126_v52, 16 }
  0x93   : > { %v798_v54 = vpop.permute.xlu1 %797  ;;  %v796_v28 = vpop.permute.xlu0 %795  ;;  %v3816_v10 = vrot.slane %v2172_v11, 7  ;;  %v3823_v52 = vrot.slane %v2029_v29, %v3595_v0  ;;  %v3826_v11 = vrot.slane %v2181_v40, 7  ;;  %v3829_v2 = vrot.slane %v2187_v55, 6 }
  0x94   : > { %v899_v49 = vpack.i.b16 %v3793_v32, %v3796_v33  ;;  %v3831_v48 = vrot.slane %v2190_v22, 7  ;;  %v3833_v38 = vrot.slane %v2196_v45, 6  ;;  %v3835_v24 = vrot.slane %v2199_v23, 7 }
  0x95   : > { %v895_v29 = vshrl.u32 %v3770_v7, 16  ;;  %v3845_v55 = vrot.slane %v2214_v36, 6  ;;  %v3847_v22 = vrot.slane %v2217_v18, 7  ;;  %v894_v23 = vshrl.u32 %v3767_v53, 16 }
  0x96   : > { %v3814_v44 = vcombine.low %v893_v39, %v899_v49  ;;  %v2129_v39 = vld [vmem:[%s3404_s30 + $0x12] sm:$0x3]  ;;  %v2130_v49 = vld [vmem:[%s3404_s30 + $0x14] sm:$0x3] }
  0x97   : > { %v802_v21 = vpop.permute.xlu1 %801  ;;  %v800_v43 = vpop.permute.xlu0 %799  ;;  %v2223_v45 = vshrl.u32 %v2129_v39, 16  ;;  %v2232_v15 = vshrl.u32 %v2130_v49, 16 }
  0x98   : > { %v867_v6 = vcombine.low %v798_v54, %v802_v21  ;;  %v859_v50 = vcombine.low %v796_v28, %v800_v43  ;;  %v2131_v43 = vld [vmem:[%s3404_s30 + $0x16] sm:$0x3]  ;;  %v3840_v54 = vrot.slane %v2205_v16, 6  ;;  %v3842_v28 = vrot.slane %v2208_v14, 7 }
  0x99   : > { %v900_v14 = vshrl.u32 %v3796_v33, 16  ;;  %v2235_v16 = vshll.u32 %v2130_v49, 16  ;;  %v2241_v7 = vshrl.u32 %v2131_v43, 16  ;;  %v3864_v36 = vrot.slane %v2223_v45, 6 }
  0x9a   : > { %v874_v63 = vrot.slane %v867_v6, %v3489_v3  ;;  %v866_v21 = vrot.slane %v859_v50, %v3489_v3  ;;  %v2226_v6 = vshll.u32 %v2129_v39, 16  ;;  %v901_v50 = vshrl.u32 %v3793_v32, 16 }
  0x9b   : > { %v806_v5 = vpop.permute.xlu1 %805  ;;  %v804_v40 = vpop.permute.xlu0 %803  ;;  %v896_v32 = vpack.i.b16 %v895_v29, %v894_v23  ;;  %v3870_v27 = vrot.slane %v2232_v15, 6  ;;  %v2134_v23 = vld [vmem:[%s3404_s30 + $0x1c] sm:$0x3]  ;;  %v3873_v39 = vrot.slane %v2235_v16, 7  ;;  %v3875_v17 = vrot.slane %v2241_v7, 6 }
  0x9c   : > { %v905_v1 = vpack.i.b16 %v874_v63, %v866_v21  ;;  %v3868_v53 = vrot.slane %v2226_v6, 7  ;;  %v902_v29 = vpack.i.b16 %v901_v50, %v900_v14  ;;  %v2244_v33 = vshll.u32 %v2131_v43, 16 }
  0x9d   : > { %v907_v20 = vshrl.u32 %v874_v63, 16  ;;  %v906_v49 = vshrl.u32 %v866_v21, 16  ;;  %v2250_v6 = vshrl.u32 %v2132_v31, 16  ;;  %v2259_v15 = vshrl.u32 %v2133_v25, 16 }
  0x9e   : > { %v2268_v34 = vshrl.u32 %v2134_v23, 16  ;;  %v2246_v7 = vrot.slane %v2244_v33, 7  ;;  %v2271_v30 = vshll.u32 %v2134_v23, 16  ;;  %v932_v12 = vcombine.low %v896_v32, %v902_v29  ;;  %v3256_v33 = vld [vmem:[%s4184_s4] sm:$0xff]  }
  0x9f   : > { %v810_v41 = vpop.permute.xlu1 %809  ;;  %v808_v60 = vpop.permute.xlu0 %807  ;;  %v908_v21 = vpack.i.b16 %v907_v20, %v906_v49  ;;  %v2252_v61 = vrot.slane %v2250_v6, 6  ;;  %v2255_v25 = vrot.slane %v2253_v19, 7  ;;  %v2261_v58 = vrot.slane %v2259_v15, 6  ;;  %3161 = vmatprep.mubr.msk.bf16.mxu1 %vm621_vm0, %v3256_v33 }
  0xa0   : > { %v883_v18 = vcombine.low %v806_v5, %v810_v41  ;;  %v875_v59 = vcombine.low %v804_v40, %v808_v60  ;;  %v2135_v60 = vld [vmem:[%s3404_s30 + $0x1e] sm:$0x3]  ;;  %v2270_v49 = vrot.slane %v2268_v34, 6  ;;  %v923_v34 = vrot.slane %v3814_v44, %v3595_v0 }
  0xa1   : > { %v2277_v43 = vshrl.u32 %v2135_v60, 16  ;;  %v2280_v63 = vshll.u32 %v2135_v60, 16 }
  0xa2   : > { %v890_v45 = vrot.slane %v883_v18, %v3489_v3  ;;  %v882_v41 = vrot.slane %v875_v59, %v3489_v3  ;;  %v3254_v59 = vld [vmem:[%s4184_s4 + $0x10] sm:$0xff]  }
  0xa3   : > { %v1500_v5 = vpop.permute.xlu1 %1499  ;;  %v1498_v40 = vpop.permute.xlu0 %1497  ;;  %v2279_v32 = vrot.slane %v2277_v43, 6  ;;  %v2282_v29 = vrot.slane %v2280_v63, 7  ;;  %3155 = vmatprep.mubr.msk.bf16.mxu0 %vm621_vm0, %v3254_v59  ;;  %v4268_v59 = vor.u32 %v3835_v24, %v3833_v38 }
  0xa4   : > { %v913_v50 = vshrl.u32 %v890_v45, 16  ;;  %v911_v14 = vpack.i.b16 %v890_v45, %v882_v41  ;;  %v912_v16 = vshrl.u32 %v882_v41, 16  ;;  %v2264_v45 = vrot.slane %v2262_v37, 7 }
  0xa5   : > { %v940_v37 = vrot.slane %v932_v12, %v3595_v0 }
  0xa6   : > { %v914_v13 = vpack.i.b16 %v913_v50, %v912_v16  ;;  %v916_v18 = vcombine.low %v905_v1, %v911_v14  ;;  %v2273_v1 = vrot.slane %v2271_v30, 7  ;;  %v2238_v30 = vor.u32 %v3873_v39, %v3870_v27 }
  0xa7   : > { %v1504_v4 = vpop.permute.xlu1 %1503  ;;  %v1502_v31 = vpop.permute.xlu0 %1501  ;;  %v2247_v50 = vor.u32 %v2246_v7, %v3875_v17  ;;  %v2256_v14 = vor.u32 %v2255_v25, %v2252_v61  ;;  %v2265_v16 = vor.u32 %v2264_v45, %v2261_v58  ;;  %v4264_v27 = vor.u32 %v3805_v8, %v3800_v42 }
  0xa8   : > { %v1553_v23 = vcombine.low %v1500_v5, %v1504_v4  ;;  %v1545_v41 = vcombine.low %v1498_v40, %v1502_v31  ;;  %v933_v20 = vcombine.low %v908_v21, %v914_v13  ;;  %v2229_v13 = vor.u32 %v3868_v53, %v3864_v36 }
  0xa9   : > { %v930_v40 = vrot.slane %v916_v18, %v3595_v0  ;;  %v2274_v43 = vor.u32 %v2273_v1, %v2270_v49  ;;  %v2283_v36 = vor.u32 %v2282_v29, %v2279_v32  ;;  %v2167_v44 = vrot.slane %v4264_v27, 2 }
  0xaa   : > { %v3887_v60 = vrot.slane %v1553_v23, %v3489_v3  ;;  %v3890_v6 = vrot.slane %v1545_v41, %v3489_v3  ;;  %v947_v19 = vrot.slane %v933_v20, %v3595_v0  ;;  %v4265_v39 = vor.u32 %v3816_v10, %v3807_v51 }
  0xab   : > { %v1508_v4 = vpop.permute.xlu1 %1507  ;;  %v1506_v5 = vpop.permute.xlu0 %1505  ;;  %v3906_v53 = vcombine.low %v923_v34, %v930_v40  ;;  %v4266_v21 = vor.u32 %v3826_v11, %v3820_v35  ;;  %v4267_v58 = vor.u32 %v3831_v48, %v3829_v2  ;;  %v2203_v31 = vrot.slane %v4268_v59, 2 }
  0xac   : > { %v1611_v12 = vpack.i.b16 %v3887_v60, %v3890_v6  ;;  %v948_v15 = vcombine.low %v940_v37, %v947_v19  ;;  %v2176_v63 = vrot.slane %v4265_v39, 2  ;;  %v4269_v42 = vor.u32 %v3842_v28, %v3840_v54 }
  0xad   : > { %v2185_v17 = vrot.slane %v4266_v21, 2  ;;  %v2194_v61 = vrot.slane %v4267_v58, 2  ;;  %v4270_v51 = vor.u32 %v3847_v22, %v3845_v55  ;;  %v2230_v35 = vrot.slane %v2229_v13, 2 }
  0xae   : > { %949 = vrot.lane.b32.xlu0 %v948_v15, %s3315_s13  ;;  %v2212_v8 = vrot.slane %v4269_v42, 2  ;;  %v2239_v45 = vrot.slane %v2238_v30, 2  ;;  %v2248_v48 = vrot.slane %v2247_v50, 2  ;;  %v2257_v2 = vrot.slane %v2256_v14, 2 }
  0xaf   : > { %v1512_v7 = vpop.permute.xlu1 %1511  ;;  %v1510_v18 = vpop.permute.xlu0 %1509  ;;  %v2221_v10 = vrot.slane %v4270_v51, 2  ;;  %v2266_v33 = vrot.slane %v2265_v16, 2  ;;  %v2275_v23 = vrot.slane %v2274_v43, 2  ;;  %v2284_v41 = vrot.slane %v2283_v36, 2 }
  0xb0   : > { %v1569_v11 = vcombine.low %v1508_v4, %v1512_v7  ;;  %v1561_v25 = vcombine.low %v1506_v5, %v1510_v18  ;;  %v4271_v54 = vcombine.low %v3781_v46, %v3784_v47  ;;  %v2044_v28 = vcombine.low %v3790_v9, %v3823_v52 }
  0xb1   : > { %v2301_v20 = vcombine.low %v3803_v62, %v2167_v44  ;;  %v2309_v49 = vcombine.low %v3812_v26, %v2176_v63  ;;  %v2317_v1 = vcombine.low %v2185_v17, %v2203_v31  ;;  %v2325_v32 = vcombine.low %v2194_v61, %v2212_v8 }
  0xb2   : > { %v1576_v38 = vrot.slane %v1569_v11, %v3489_v3  ;;  %v1568_v24 = vrot.slane %v1561_v25, %v3489_v3  ;;  %1385 = vrot.lane.b32.xlu0 %v4271_v54, %s3315_s13  ;;  %v2333_v37 = vcombine.low %v2221_v10, %v2239_v45  ;;  %v2341_v19 = vcombine.low %v2230_v35, %v2248_v48 }
  0xb3   : > { %v1516_v55 = vpop.permute.xlu1 %1515  ;;  %v1514_v22 = vpop.permute.xlu0 %1513  ;;  %v2349_v4 = vcombine.low %v2257_v2, %v2275_v23  ;;  %v2357_v5 = vcombine.low %v2266_v33, %v2284_v41  ;;  %v3944_v9 = vrot.slane %v2301_v20, %v3489_v3  ;;  %v3947_v62 = vrot.slane %v2309_v49, %v3489_v3 }
  0xb4   : > { %v1617_v29 = vpack.i.b16 %v1576_v38, %v1568_v24  ;;  %v3950_v26 = vrot.slane %v2317_v1, %v3489_v3  ;;  %v3953_v52 = vrot.slane %v2325_v32, %v3489_v3  ;;  %v3956_v40 = vrot.slane %v2333_v37, %v3489_v3 }
  0xb5   : > { %v3962_v15 = vrot.slane %v2349_v4, %v3489_v3  ;;  %v3965_v50 = vrot.slane %v2357_v5, %v3489_v3  ;;  %v2368_v27 = vshrl.u32 %v3944_v9, 16  ;;  %v2369_v44 = vshrl.u32 %v3947_v62, 16 }
  0xb6   : > { %v3940_v13 = vcombine.low %v1611_v12, %v1617_v29  ;;  %2045 = vrot.lane.b32.xlu0 %v2044_v28, %s3315_s13  ;;  %v3959_v12 = vrot.slane %v2341_v19, %v3489_v3  ;;  %v2374_v39 = vshrl.u32 %v3950_v26, 16  ;;  %v2375_v21 = vshrl.u32 %v3953_v52, 16 }
  0xb7   : > { %v1520_v46 = vpop.permute.xlu1 %1519  ;;  %v1518_v47 = vpop.permute.xlu0 %1517  ;;  %v2380_v17 = vshrl.u32 %v3956_v40, 16  ;;  %v1619_v61 = vshrl.u32 %v1576_v38, 16  ;;  %v1618_v7 = vshrl.u32 %v1568_v24, 16  ;;  %v2386_v18 = vshrl.u32 %v3962_v15, 16 }
  0xb8   : > { %v1585_v30 = vcombine.low %v1516_v55, %v1520_v46  ;;  %v1577_v34 = vcombine.low %v1514_v22, %v1518_v47  ;;  %v2381_v58 = vshrl.u32 %v3959_v12, 16  ;;  %v2387_v59 = vshrl.u32 %v3965_v50, 16 }
  0xb9   : > { %v1613_v31 = vshrl.u32 %v3887_v60, 16  ;;  %v1612_v42 = vshrl.u32 %v3890_v6, 16  ;;  %v2370_v11 = vpack.i.b16 %v2369_v44, %v2368_v27  ;;  %v1620_v25 = vpack.i.b16 %v1619_v61, %v1618_v7 }
  0xba   : > { %v1592_v14 = vrot.slane %v1585_v30, %v3489_v3  ;;  %v1584_v16 = vrot.slane %v1577_v34, %v3489_v3  ;;  %v2376_v45 = vpack.i.b16 %v2375_v21, %v2374_v39  ;;  %v2382_v48 = vpack.i.b16 %v2381_v58, %v2380_v17 }
  0xbb   : > { %v1524_v43 = vpop.permute.xlu1 %1523  ;;  %v1522_v36 = vpop.permute.xlu0 %1521  ;;  %v2388_v2 = vpack.i.b16 %v2387_v59, %v2386_v18  ;;  %v1614_v24 = vpack.i.b16 %v1613_v31, %v1612_v42  ;;  %v1641_v4 = vrot.slane %v3940_v13, %v3595_v0  ;;  %v2373_v21 = vpack.i.b16 %v3953_v52, %v3950_v26 }
  0xbc   : > { %v1623_v63 = vpack.i.b16 %v1592_v14, %v1584_v16  ;;  %v1625_v33 = vshrl.u32 %v1592_v14, 16  ;;  %v1624_v23 = vshrl.u32 %v1584_v16, 16  ;;  %v2406_v20 = vcombine.low %v2370_v11, %v2376_v45  ;;  %v4272_v11 = vld [vmem:[#allocation2_spill] sm:$0xff] }
  0xbd   : > { %v1650_v22 = vcombine.low %v1614_v24, %v1620_v25  ;;  %v2407_v49 = vcombine.low %v2382_v48, %v2388_v2  ;;  %v2379_v17 = vpack.i.b16 %v3959_v12, %v3956_v40  ;;  %v2385_v58 = vpack.i.b16 %v3965_v50, %v3962_v15  ;;  %v4273_v25 = vld [vmem:[#allocation3_spill] sm:$0xff]  ;;  %v4274_v48 = vld [vmem:[#allocation4_spill] sm:$0xff]  ;;  %v4275_v2 = vld [vmem:[#allocation5_spill] sm:$0xff] }
  0xbe   : > { %v1626_v1 = vpack.i.b16 %v1625_v33, %v1624_v23  ;;  %v2414_v14 = vrot.slane %v2406_v20, %v3595_v0  ;;  %v555_v45 = vpack.i.b16 %v4273_v25, %v4272_v11  ;;  %v561_v33 = vpack.i.b16 %v4275_v2, %v4274_v48  ;;  %v4276_v23 = vld [vmem:[#allocation6_spill] sm:$0xff]  ;;  %v4278_v24 = vld [vmem:[#allocation8_spill] sm:$0xff] }
  0xbf   : > { %v1528_v8 = vpop.permute.xlu1 %1527  ;;  %v1526_v51 = vpop.permute.xlu0 %1525  ;;  %v1658_v34 = vrot.slane %v1650_v22, %v3595_v0  ;;  %v2421_v16 = vrot.slane %v2407_v49, %v3595_v0  ;;  %v2390_v31 = vcombine.low %v2379_v17, %v2385_v58  ;;  %v4282_v22 = vld [vmem:[#allocation12_spill] sm:$0xff]  ;;  %v4284_v20 = vld [vmem:[#allocation14_spill] sm:$0xff]  ;;  %v4285_v49 = vld [vmem:[#allocation15_spill] sm:$0xff] }
  0xc0   : > { %v1601_v10 = vcombine.low %v1524_v43, %v1528_v8  ;;  %v1593_v35 = vcombine.low %v1522_v36, %v1526_v51  ;;  %v2367_v43 = vpack.i.b16 %v3947_v62, %v3944_v9  ;;  %v549_v51 = vpack.i.b16 %v3473_v57, %v3470_v56  ;;  %v4283_v56 = vld [vmem:[#allocation13_spill] sm:$0xff] }
  0xc1   : > { %v2422_v7 = vcombine.low %v2414_v14, %v2421_v16  ;;  %v2404_v40 = vrot.slane %v2390_v31, %v3595_v0  ;;  %v411_v57 = vpack.i.b16 %v4283_v56, %v4282_v22  ;;  %v4291_v14 = vld [vmem:[#allocation21_spill] sm:$0xff] }
  0xc2   : > { %v1608_v41 = vrot.slane %v1601_v10, %v3489_v3  ;;  %v1600_v38 = vrot.slane %v1593_v35, %v3489_v3  ;;  %v2389_v61 = vcombine.low %v2367_v43, %v2373_v21  ;;  %v4292_v43 = vld [vmem:[#allocation22_spill] sm:$0xff]  ;;  %v571_v17 = vcombine.low %v549_v51, %v555_v45 }
  0xc3   : > { %v2666_v54 = vpop.permute.xlu1 %2665  ;;  %v2664_v60 = vpop.permute.xlu0 %2663 }
  0xc4   : > { %v1631_v28 = vshrl.u32 %v1608_v41, 16  ;;  %v1629_v6 = vpack.i.b16 %v1608_v41, %v1600_v38  ;;  %v1630_v55 = vshrl.u32 %v1600_v38, 16  ;;  %v2397_v42 = vrot.slane %v2389_v61, %v3595_v0  ;;  %v4277_v41 = vld [vmem:[#allocation7_spill] sm:$0xff] }
  0xc5   : > { %v567_v38 = vpack.i.b16 %v4277_v41, %v4276_v23 }
  0xc6   : > { %v1632_v32 = vpack.i.b16 %v1631_v28, %v1630_v55  ;;  %v1634_v29 = vcombine.low %v1623_v63, %v1629_v6  ;;  %v4014_v10 = vcombine.low %v2397_v42, %v2404_v40  ;;  %v4280_v28 = vld [vmem:[#allocation10_spill] sm:$0xff]  ;;  %v4281_v6 = vld [vmem:[#allocation11_spill] sm:$0xff] }
  0xc7   : > { %v2670_v37 = vpop.permute.xlu1 %2669  ;;  %v2668_v19 = vpop.permute.xlu0 %2667  ;;  %v405_v55 = vpack.i.b16 %v4281_v6, %v4280_v28 }
  0xc8   : > { %v2719_v5 = vcombine.low %v2666_v54, %v2670_v37  ;;  %v2711_v46 = vcombine.low %v2664_v60, %v2668_v19  ;;  %v1651_v47 = vcombine.low %v1626_v1, %v1632_v32  ;;  %v1648_v30 = vrot.slane %v1634_v29, %v3595_v0  ;;  %v4279_v54 = vld [vmem:[#allocation9_spill] sm:$0xff]  ;;  %v4286_v19 = vld [vmem:[#allocation16_spill] sm:$0xff] }
  0xc9   : > { %v399_v60 = vpack.i.b16 %v4279_v54, %v4278_v24  ;;  %v417_v1 = vpack.i.b16 %v4285_v49, %v4284_v20 }
  0xca   : > { %v3990_v36 = vrot.slane %v2719_v5, %v3489_v3  ;;  %v3993_v27 = vrot.slane %v2711_v46, %v3489_v3  ;;  %v1665_v13 = vrot.slane %v1651_v47, %v3595_v0  ;;  %v3996_v44 = vcombine.low %v1641_v4, %v1648_v30  ;;  %v4287_v4 = vld [vmem:[#allocation17_spill] sm:$0xff]  ;;  %v4288_v46 = vld [vmem:[#allocation18_spill] sm:$0xff]  ;;  %v4289_v47 = vld [vmem:[#allocation19_spill] sm:$0xff] }
  0xcb   : > { %v2674_v39 = vpop.permute.xlu1 %2673  ;;  %v2672_v63 = vpop.permute.xlu0 %2671  ;;  %v1111_v5 = vpack.i.b16 %v4287_v4, %v4286_v19  ;;  %v1117_v30 = vpack.i.b16 %v4289_v47, %v4288_v46  ;;  %v422_v58 = vcombine.low %v411_v57, %v417_v1  ;;  %v3255_v1 = vld [vmem:[%s4184_s4 + $0x18] sm:$0xff]   ;;  %v3257_v4 = vld [vmem:[%s4184_s4 + $0x8] sm:$0xff]   ;;  %v2908_v46 = vld [vmem:[%s4185_s5] sm:$0xff] }
  0xcc   : > { %v2777_v9 = vpack.i.b16 %v3990_v36, %v3993_v27  ;;  %v1666_v62 = vcombine.low %v1658_v34, %v1665_v13  ;;  %v4290_v34 = vld [vmem:[#allocation20_spill] sm:$0xff]  ;;  %v4293_v13 = vld [vmem:[#allocation23_spill] sm:$0xff]  ;;  %v2779_v11 = vshrl.u32 %v3990_v36, 16  ;;  %v2778_v25 = vshrl.u32 %v3993_v27, 16 }
  0xcd   : > { %v1123_v16 = vpack.i.b16 %v4291_v14, %v4290_v34  ;;  %v1133_v31 = vcombine.low %v1111_v5, %v1117_v30  ;;  %v436_v51 = vrot.slane %v422_v58, %v3595_v0  ;;  %v3258_v5 = vld [vmem:[%s4184_s4 + $0x20] sm:$0xff]   ;;  %v3260_v30 = vld [vmem:[%s4184_s4 + $0x30] sm:$0xff]   ;;  %v3316_v14 = vmov 0  }
  0xce   : > { %1667 = vrot.lane.b32.xlu1 %v1666_v62, %s3315_s13  ;;  %v572_v62 = vcombine.low %v561_v33, %v567_v38  ;;  %v2780_v28 = vpack.i.b16 %v2779_v11, %v2778_v25  ;;  %3221 = vset.pattern.permute.xlu0 %v3316_v14  ;;  %v3264_v58 = vld [vmem:[%s4184_s4 + $0x50] sm:$0xff]  }
  0xcf   : > { %v2678_v18 = vpop.permute.xlu1 %2677  ;;  %v2676_v59 = vpop.permute.xlu0 %2675  ;;  %v1141_v2 = vrot.slane %v1133_v31, %v3595_v0  ;;  %3220 = vset.pattern.permute.xlu1 %v3316_v14  ;;  %v4296_v31 = vld [vmem:[#allocation26_spill] sm:$0xff]  ;;  %v3268_v14 = vld [vmem:[%s4184_s4 + $0x70] sm:$0xff]  }
  0xd0   : > { %v2735_v26 = vcombine.low %v2674_v39, %v2678_v18  ;;  %v2727_v52 = vcombine.low %v2672_v63, %v2676_v59  ;;  %v1129_v39 = vpack.i.b16 %v4293_v13, %v4292_v43  ;;  %v586_v40 = vrot.slane %v572_v62, %v3595_v0  ;;  %v2911_v62 = vld [vmem:[%s4185_s5 + $0x18] sm:$0xff] }
  0xd2   : > { %v2742_v12 = vrot.slane %v2735_v26, %v3489_v3  ;;  %v2734_v8 = vrot.slane %v2727_v52, %v3489_v3  ;;  %2423 = vrot.lane.b32.xlu1 %v2422_v7, %s3315_s13  ;;  %v1134_v42 = vcombine.low %v1123_v16, %v1129_v39  ;;  %v579_v52 = vrot.slane %v571_v17, %v3595_v0  ;;  %v2910_v39 = vld [vmem:[%s4185_s5 + $0x10] sm:$0xff] }
  0xd3   : > { %v2682_v15 = vpop.permute.xlu1 %2681  ;;  %v2680_v50 = vpop.permute.xlu0 %2679 }
  0xd4   : > { %v2783_v35 = vpack.i.b16 %v2742_v12, %v2734_v8  ;;  %v1148_v33 = vrot.slane %v1134_v42, %v3595_v0  ;;  %v587_v38 = vcombine.low %v579_v52, %v586_v40  ;;  %v4297_v42 = vld [vmem:[#allocation27_spill] sm:$0xff]  ;;  %v4298_v52 = vld [vmem:[#allocation28_spill] sm:$0xff]  ;;  %v4299_v40 = vld [vmem:[#allocation29_spill] sm:$0xff] }
  0xd6   : > { %v4030_v32 = vcombine.low %v2777_v9, %v2783_v35  ;;  %v421_v9 = vcombine.low %v399_v60, %v405_v55  ;;  %v2785_v35 = vshrl.u32 %v2742_v12, 16  ;;  %v1149_v55 = vcombine.low %v1141_v2, %v1148_v33  ;;  %2914 = vperm.xlu1 %3220, %v2908_v46   ;;  %v4304_v33 = vld [vmem:[#allocation34_spill] sm:$0xff] }
  0xd7   : > { %v2686_v29 = vpop.permute.xlu1 %2685  ;;  %v2684_v37 = vpop.permute.xlu0 %2683  ;;  %v3270_v46 = vld [vmem:[%s4184_s4 + $0x80] sm:$0xff]  }
  0xd8   : > { %v2751_v63 = vcombine.low %v2682_v15, %v2686_v29  ;;  %v2743_v21 = vcombine.low %v2680_v50, %v2684_v37  ;;  %v2784_v15 = vshrl.u32 %v2734_v8, 16  ;;  %v429_v50 = vrot.slane %v421_v9, %v3595_v0  ;;  %v3261_v9 = vld [vmem:[%s4184_s4 + $0x38] sm:$0xff]  }
  0xd9   : > { %v2807_v34 = vrot.slane %v4030_v32, %v3595_v0 }
  0xda   : > { %v2758_v61 = vrot.slane %v2751_v63, %v3489_v3  ;;  %v2750_v7 = vrot.slane %v2743_v21, %v3489_v3  ;;  %v2786_v24 = vpack.i.b16 %v2785_v35, %v2784_v15  ;;  %v437_v12 = vcombine.low %v429_v50, %v436_v51  ;;  %2924 = vperm.xlu1 %3220, %v2910_v39   ;;  %v4300_v15 = vld [vmem:[#allocation30_spill] sm:$0xff]  ;;  %v4301_v50 = vld [vmem:[#allocation31_spill] sm:$0xff] }
  0xdb   : > { %v2690_v18 = vpop.permute.xlu1 %2689  ;;  %v2688_v59 = vpop.permute.xlu0 %2687  ;;  %v1341_v35 = vpack.i.b16 %v4299_v40, %v4298_v52  ;;  %v1347_v51 = vpack.i.b16 %v4301_v50, %v4300_v15 }
  0xdc   : > { %v2789_v26 = vpack.i.b16 %v2758_v61, %v2750_v7  ;;  %v2791_v8 = vshrl.u32 %v2758_v61, 16  ;;  %v2790_v54 = vshrl.u32 %v2750_v7, 16  ;;  %v2816_v49 = vcombine.low %v2780_v28, %v2786_v24  ;;  %v2909_v61 = vld [vmem:[%s4185_s5 + $0x8] sm:$0xff]  ;;  %v4294_v7 = vld [vmem:[#allocation24_spill] sm:$0xff]  ;;  %v4307_v24 = vld [vmem:[#allocation37_spill] sm:$0xff] }
  0xdd   : > { %v1352_v25 = vcombine.low %v1341_v35, %v1347_v51 }
  0xde   : > { %v2792_v37 = vpack.i.b16 %v2791_v8, %v2790_v54  ;;  %v2824_v63 = vrot.slane %v2816_v49, %v3595_v0  ;;  %2929 = vperm.xlu1 %3220, %v2911_v62   ;;  %v4308_v8 = vld [vmem:[#allocation38_spill] sm:$0xff]  ;;  %v4309_v54 = vld [vmem:[#allocation39_spill] sm:$0xff] }
  0xdf   : > { %v2694_v45 = vpop.permute.xlu1 %2693  ;;  %v2692_v48 = vpop.permute.xlu0 %2691  ;;  %v1366_v28 = vrot.slane %v1352_v25, %v3595_v0  ;;  %v3259_v49 = vld [vmem:[%s4184_s4 + $0x28] sm:$0xff]  }
  0xe0   : > { %v2767_v23 = vcombine.low %v2690_v18, %v2694_v45  ;;  %v2759_v41 = vcombine.low %v2688_v59, %v2692_v48  ;;  %v4295_v18 = vld [vmem:[#allocation25_spill] sm:$0xff]  ;;  %v4302_v45 = vld [vmem:[#allocation32_spill] sm:$0xff] }
  0xe1   : > { %v1329_v59 = vpack.i.b16 %v4295_v18, %v4294_v7  ;;  %v4303_v48 = vld [vmem:[#allocation33_spill] sm:$0xff] }
  0xe2   : > { %v2774_v60 = vrot.slane %v2767_v23, %v3489_v3  ;;  %v2766_v36 = vrot.slane %v2759_v41, %v3489_v3  ;;  %v1989_v2 = vpack.i.b16 %v4303_v48, %v4302_v45  ;;  %v4305_v23 = vld [vmem:[#allocation35_spill] sm:$0xff] }
  0xe3   : > { %v606_v27 = vpop.permute.xlu0 %605  ;;  %v456_v6 = vpop.permute.xlu1 %455  ;;  %v1995_v41 = vpack.i.b16 %v4305_v23, %v4304_v33 }
  0xe4   : > { %v2797_v22 = vshrl.u32 %v2774_v60, 16  ;;  %v2795_v56 = vpack.i.b16 %v2774_v60, %v2766_v36  ;;  %v2796_v57 = vshrl.u32 %v2766_v36, 16  ;;  %v609_v20 = vsel %vm457_vm1, %v587_v38, %v606_v27  ;;  %v4306_v38 = vld [vmem:[#allocation36_spill] sm:$0xff] }
  0xe5   : > { %3153 = vmatprep.subr.bf16.mxu0 %v609_v20  ;;  %v460_v29 = vsel %vm457_vm1, %v437_v12, %v456_v6  ;;  %v2001_v12 = vpack.i.b16 %v4307_v24, %v4306_v38  ;;  %v2007_v60 = vpack.i.b16 %v4309_v54, %v4308_v8  ;;  %v2011_v27 = vcombine.low %v1989_v2, %v1995_v41 }
  0xe6   : > { %v2798_v19 = vpack.i.b16 %v2797_v22, %v2796_v57  ;;  %v2800_v3 = vcombine.low %v2789_v26, %v2795_v56  ;;  %3154 = vmatpush3.bf16.msra.mxu0 %v609_v20  ;;  %3159 = vmatprep.subr.bf16.mxu1 %v460_v29  ;;  %v1335_v26 = vpack.i.b16 %v4297_v42, %v4296_v31 }
  0xe7   : > { %3160 = vmatpush3.bf16.msra.mxu1 %v460_v29  ;;  %v1168_v47 = vpop.permute.xlu1 %1167  ;;  %v2012_v6 = vcombine.low %v2001_v12, %v2007_v60  ;;  %v2019_v57 = vrot.slane %v2011_v27, %v3595_v0 }
  0xe8   : > { %v2817_v16 = vcombine.low %v2792_v37, %v2798_v19  ;;  %v1171_v43 = vsel %vm457_vm1, %v1149_v55, %v1168_v47  ;;  %v2814_v13 = vrot.slane %v2800_v3, %v3595_v0  ;;  %v1351_v11 = vcombine.low %v1329_v59, %v1335_v26  ;;  %v3263_v3 = vld [vmem:[%s4184_s4 + $0x48] sm:$0xff]  }
  0xe9   : > { %3156 = vmatmul.mubr.msk.bf16.vlgmr.msra.gmra.mxu0 %vm621_vm0, %v3255_v1  ;;  %3171 = vmatprep.subr.bf16.mxu1 %v1171_v43  ;;  %v2026_v20 = vrot.slane %v2012_v6, %v3595_v0  ;;  %v3262_v1 = vld [vmem:[%s4184_s4 + $0x40] sm:$0xff]  }
  0xea   : > { %v2831_v32 = vrot.slane %v2817_v16, %v3595_v0  ;;  %3162 = vmatmul.mubr.msk.bf16.vlgmr.msra.gmra.mxu1 %vm621_vm0, %v3257_v4  ;;  %3167 = vmatprep.mubr.msk.bf16.mxu0 %vm621_vm0, %v3258_v5  ;;  %v4081_v21 = vcombine.low %v2807_v34, %v2814_v13  ;;  %v1359_v36 = vrot.slane %v1351_v11, %v3595_v0  ;;  %v3266_v4 = vld [vmem:[%s4184_s4 + $0x60] sm:$0xff]   ;;  %v3267_v5 = vld [vmem:[%s4184_s4 + $0x68] sm:$0xff]   ;;  %v3265_v34 = vld [vmem:[%s4184_s4 + $0x58] sm:$0xff]  }
  0xeb   : > { %3172 = vmatpush3.bf16.msra.mxu1 %v1171_v43  ;;  %3173 = vmatprep.mubr.msk.bf16.mxu1 %vm621_vm0, %v3260_v30  ;;  %v2027_v19 = vcombine.low %v2019_v57, %v2026_v20 }
  0xec   : > { %v2832_v17 = vcombine.low %v2824_v63, %v2831_v32  ;;  %v1367_v56 = vcombine.low %v1359_v36, %v1366_v28 }
  0xee   : > { %2833 = vrot.lane.b32.xlu0 %v2832_v17, %s3315_s13  ;;  %s311_s13 = scalar_lea.vmem %s4186_s6, %s3360_s23 }
  0xf2   : > { %3174 = vmatmul.mubr.msk.bf16.vlgmr.msra.gmra.mxu1 %vm621_vm0, %v3261_v9  ;;  %2919 = vperm.xlu0 %3221, %v2909_v61  }
  0xf3   : > { %3185 = vmatprep.mubr.msk.bf16.mxu1 %vm621_vm0, %v3264_v58 }
 0x120   : > { %v950_v55 = vpop.permute.xlu0 %949 }
 0x121   : > { %v953_v22 = vsel %vm457_vm1, %v3906_v53, %v950_v55 }
 0x122   : > { %3165 = vmatprep.subr.bf16.mxu0 %v953_v22 }
 0x123   : > { %3166 = vmatpush3.bf16.msra.mxu0 %v953_v22 }
 0x124   : > { %v1386_v29 = vpop.permute.xlu0 %1385 }
 0x125   : > { %v1389_v37 = vsel %vm457_vm1, %v1367_v56, %v1386_v29 }
 0x126   : > { %3168 = vmatmul.mubr.msk.bf16.vlgmr.msra.gmra.mxu0 %vm621_vm0, %v3259_v49  ;;  %3177 = vmatprep.subr.bf16.mxu0 %v1389_v37 }
 0x127   : > { %3178 = vmatpush3.bf16.msra.mxu0 %v1389_v37  ;;  %3179 = vmatprep.mubr.msk.bf16.mxu0 %vm621_vm0, %v3262_v1 }
 0x128   : > { %v2046_v0 = vpop.permute.xlu0 %2045 }
 0x129   : > { %v2049_v53 = vsel %vm457_vm1, %v2027_v19, %v2046_v0 }
 0x12a   : > { %3189 = vmatprep.subr.bf16.mxu0 %v2049_v53 }
 0x12e   : > { %3180 = vmatmul.mubr.msk.bf16.vlgmr.msra.gmra.mxu0 %vm621_vm0, %v3263_v3 }
 0x12f   : > { %3190 = vmatpush3.bf16.msra.mxu0 %v2049_v53  ;;  %3191 = vmatprep.mubr.msk.bf16.mxu0 %vm621_vm0, %v3266_v4 }
 0x136   : > { %3192 = vmatmul.mubr.msk.bf16.vlgmr.msra.gmra.mxu0 %vm621_vm0, %v3267_v5 }
 0x137   : > { %3203 = vmatprep.mubr.msk.bf16.mxu0 %vm621_vm0, %v3270_v46 }
 0x140   : > { %v1668_v47 = vpop.permute.xlu1 %1667 }
 0x141   : > { %v1671_v30 = vsel %vm457_vm1, %v3996_v44, %v1668_v47  ;;  %v3269_v44 = vld [vmem:[%s4184_s4 + $0x78] sm:$0xff]  }
 0x142   : > { %3183 = vmatprep.subr.bf16.mxu1 %v1671_v30 }
 0x143   : > { %3184 = vmatpush3.bf16.msra.mxu1 %v1671_v30 }
 0x144   : > { %v2424_v16 = vpop.permute.xlu1 %2423 }
 0x145   : > { %v2427_v43 = vsel %vm457_vm1, %v4014_v10, %v2424_v16  ;;  %v3271_v10 = vld [vmem:[%s4184_s4 + $0x88] sm:$0xff]  }
 0x146   : > { %3186 = vmatmul.mubr.msk.bf16.vlgmr.msra.gmra.mxu1 %vm621_vm0, %v3265_v34  ;;  %3195 = vmatprep.subr.bf16.mxu1 %v2427_v43 }
 0x147   : > { %3196 = vmatpush3.bf16.msra.mxu1 %v2427_v43  ;;  %3197 = vmatprep.mubr.msk.bf16.mxu1 %vm621_vm0, %v3268_v14 }
 0x14e   : > { %3198 = vmatmul.mubr.msk.bf16.vlgmr.msra.gmra.mxu1 %vm621_vm0, %v3269_v44 }
 0x151   : > { %v2915_v1 = vpop.permute.xlu1 %2914 }
 0x155   : > { %v2925_v34 = vpop.permute.xlu1 %2924 }
 0x160   : > { %v2834_v13 = vpop.permute.xlu0 %2833 }
 0x161   : > { %v2837_v39 = vsel %vm457_vm1, %v4081_v21, %v2834_v13 }
 0x162   : > { %3201 = vmatprep.subr.bf16.mxu0 %v2837_v39 }
 0x163   : > { %3202 = vmatpush3.bf16.msra.mxu0 %v2837_v39 }
 0x166   : > { %3204 = vmatmul.mubr.msk.bf16.vlgmr.msra.gmra.mxu0 %vm621_vm0, %v3271_v10 }
 0x1a9   : > { %v3157_v63 = vpop.f32.mrf.mxu0 }
 0x1aa   : > { %v3163_v17 = vpop.f32.mrf.mxu1 }
 0x1ab   : > { %v662_v32 = vpop.f32.mrf.mxu0  ;;  %v736_v51 = vadd.f32 %v3163_v17, %v3157_v63 }
 0x1ac   : > { %v727_v9 = vpop.f32.mrf.mxu1 }
 0x1ad   : > { %v3158_v62 = vpop.f32.mrf.mxu0  ;;  %v728_v11 = vadd.f32 %v727_v9, %v662_v32 }
 0x1ae   : > { %v3164_v61 = vpop.f32.mrf.mxu1 }
 0x1af   : > { %v665_v58 = vpop.f32.mrf.mxu0  ;;  %v739_v48 = vadd.f32 %v3164_v61, %v3158_v62 }
 0x1b0   : > { %v730_v7 = vpop.f32.mrf.mxu1 }
 0x1b1   : > { %v731_v38 = vadd.f32 %v730_v7, %v665_v58  ;;  %v2930_v7 = vpop.permute.xlu1 %2929 }
 0x1b2   : > { %v3175_v31 = vpop.f32.mrf.mxu1 }
 0x1b4   : > { %v1223_v42 = vpop.f32.mrf.mxu1 }
 0x1b6   : > { %v3176_v52 = vpop.f32.mrf.mxu1 }
 0x1b8   : > { %v1226_v40 = vpop.f32.mrf.mxu1 }
 0x1e6   : > { %v3169_v18 = vpop.f32.mrf.mxu0 }
 0x1e7   : > { %v1022_v2 = vadd.f32 %v3169_v18, %v736_v51 }
 0x1e8   : > { %v1005_v59 = vpop.f32.mrf.mxu0 }
 0x1e9   : > { %v1020_v33 = vadd.f32 %v1005_v59, %v728_v11  ;;  %v1240_v24 = vadd.f32 %v3175_v31, %v1022_v2  ;;  %v2920_v59 = vpop.permute.xlu0 %2919 }
 0x1ea   : > { %v3170_v21 = vpop.f32.mrf.mxu0 }
 0x1eb   : > { %v1023_v12 = vadd.f32 %v3170_v21, %v739_v48  ;;  %v1238_v8 = vadd.f32 %v1223_v42, %v1020_v33 }
 0x1ec   : > { %v1008_v26 = vpop.f32.mrf.mxu0 }
 0x1ed   : > { %v1021_v36 = vadd.f32 %v1008_v26, %v731_v38  ;;  %v1241_v28 = vadd.f32 %v3176_v52, %v1023_v12 }
 0x1ee   : > { %v3181_v35 = vpop.f32.mrf.mxu0 }
 0x1ef   : > { %v1458_v27 = vadd.f32 %v3181_v35, %v1240_v24  ;;  %v1239_v56 = vadd.f32 %v1226_v40, %v1021_v36 }
 0x1f0   : > { %v1441_v15 = vpop.f32.mrf.mxu0 }
 0x1f1   : > { %v1456_v6 = vadd.f32 %v1441_v15, %v1238_v8 }
 0x1f2   : > { %v3182_v25 = vpop.f32.mrf.mxu0 }
 0x1f3   : > { %v1459_v20 = vadd.f32 %v3182_v25, %v1241_v28 }
 0x1f4   : > { %v1444_v23 = vpop.f32.mrf.mxu0 }
 0x1f5   : > { %v1457_v19 = vadd.f32 %v1444_v23, %v1239_v56 }
 0x1f6   : > { %v3193_v60 = vpop.f32.mrf.mxu0 }
 0x1f8   : > { %v2101_v55 = vpop.f32.mrf.mxu0 }
 0x1fa   : > { %v3194_v29 = vpop.f32.mrf.mxu0 }
 0x1fc   : > { %v2104_v4 = vpop.f32.mrf.mxu0 }
 0x206   : > { %v3187_v50 = vpop.f32.mrf.mxu1 }
 0x207   : > { %v1740_v57 = vadd.f32 %v3187_v50, %v1458_v27 }
 0x208   : > { %v1723_v45 = vpop.f32.mrf.mxu1 }
 0x209   : > { %v1738_v49 = vadd.f32 %v1723_v45, %v1456_v6  ;;  %v2118_v53 = vadd.f32 %v3193_v60, %v1740_v57 }
 0x20a   : > { %v3188_v41 = vpop.f32.mrf.mxu1 }
 0x20b   : > { %v1741_v0 = vadd.f32 %v3188_v41, %v1459_v20  ;;  %v2116_v3 = vadd.f32 %v2101_v55, %v1738_v49 }
 0x20c   : > { %v1726_v54 = vpop.f32.mrf.mxu1 }
 0x20d   : > { %v1739_v46 = vadd.f32 %v1726_v54, %v1457_v19  ;;  %v2119_v30 = vadd.f32 %v3194_v29, %v1741_v0 }
 0x20e   : > { %v3199_v22 = vpop.f32.mrf.mxu1 }
 0x20f   : > { %v2496_v47 = vadd.f32 %v3199_v22, %v2118_v53  ;;  %v2117_v39 = vadd.f32 %v2104_v4, %v1739_v46 }
 0x210   : > { %v2479_v37 = vpop.f32.mrf.mxu1 }
 0x211   : > { %v2494_v16 = vadd.f32 %v2479_v37, %v2116_v3 }
 0x212   : > { %v3200_v5 = vpop.f32.mrf.mxu1 }
 0x213   : > { %v2497_v10 = vadd.f32 %v3200_v5, %v2119_v30 }
 0x214   : > { %v2482_v44 = vpop.f32.mrf.mxu1 }
 0x215   : > { %v2495_v62 = vadd.f32 %v2482_v44, %v2117_v39 }
 0x226   : > { %v3205_v14 = vpop.f32.mrf.mxu0 }
 0x227   : > { %v2906_v43 = vadd.f32 %v3205_v14, %v2496_v47 }
 0x228   : > { %v2889_v13 = vpop.f32.mrf.mxu0 }
 0x229   : > { %v2934_v63 = vadd.f32 %v2925_v34, %v2906_v43  ;;  %v2904_v32 = vadd.f32 %v2889_v13, %v2494_v16 }
 0x22a   : > { %v3206_v17 = vpop.f32.mrf.mxu0 }
 0x22b   : > { %v2938_v9 = vmax.f32 %v2934_v63, 0.0  ;;  %v2932_v58 = vadd.f32 %v2915_v1, %v2904_v32  ;;  %v2907_v61 = vadd.f32 %v3206_v17, %v2497_v10 }
 0x22c   : > { %v2892_v18 = vpop.f32.mrf.mxu0 }
 0x22d   : > { %2943 = vst.msk [vmem:[%s311_s13 + $0x10] sm:$0xff] %vm2940_vm2, %v2938_v9  ;;  %v2936_v31 = vmax.f32 %v2932_v58, 0.0  ;;  %v2935_v21 = vadd.f32 %v2930_v7, %v2907_v61  ;;  %v2905_v42 = vadd.f32 %v2892_v18, %v2495_v62 }
 0x22f   : > { %2941 = vst.msk [vmem:[%s311_s13] sm:$0xff] %vm2940_vm2, %v2936_v31  ;;  %v2939_v26 = vmax.f32 %v2935_v21, 0.0  ;;  %v2933_v52 = vadd.f32 %v2920_v59, %v2905_v42 }
 0x231   : > { %2944 = vst.msk [vmem:[%s311_s13 + $0x18] sm:$0xff] %vm2940_vm2, %v2939_v26  ;;  %v2937_v40 = vmax.f32 %v2933_v52, 0.0 }
 0x233   : > { %2942 = vst.msk [vmem:[%s311_s13 + $0x8] sm:$0xff] %vm2940_vm2, %v2937_v40 }
 0x234 PF: > { %s16_s21 = sadd.s32 1, %s3310_s21  }
 0x235   : > { %p13_p4 = scmp.ge.s32.totalorder %s16_s21, 4  }
 0x237   :  { %15 = sbr.rel (!%p13_p4) target bundleno = 1 (0x1), region = 91 }

// kernel: timm_backbone_forward.9
= control target key start
LH: loop header
LB: loop body
LE: loop exit
PB: predicated region body
PF: predicated region fallthrough
CT: control target
= control target key end

     0   :  { %s216_s6 = smov 0   ;;  %s233_s0 = inlined_call_operand.vmem [shape: f32[2,8,64], index: 0, kind: input, shape index: {}]   ;;  %s234_s1 = inlined_call_operand.vmem [shape: f32[2,8,64], index: 1, kind: output, shape index: {}]  }
   0x1 LB: > { %s179_s7 = sadd.s32 4294967295, %s204_s6   ;;  %p183_p0 = scmp.ge.s32.totalorder %s204_s6, 1  ;;  %s204_s6 = sphi %s216_s6, %s11_s6  }
   0x2   : > { %p86_p1 = scmp.lt.s32.totalorder %s204_s6, 3 }
   0x4   : > { %p87_p2 = pnand %p183_p0, %p86_p1 }
   0x5   : > { %p104_p3 = scmp.lt.s32.totalorder (!%p87_p2), %s179_s7, 1 }
   0x6   : > { %90 = sbr.rel (%p87_p2) target bundleno = 49 (0x31), region = 24 }
   0xb   : > { %s236_s7 = smov (!%p104_p3, %s179_s7), 1  ;;  %vm114_vm0 = vcmask 523264  }
   0xc   : > { %s184_s8 = sshll.u32 %s236_s7, 3 }
   0xd   : > { %s107_s11 = scalar_lea.vmem %s233_s0, %s184_s8  ;;  %s111_s14 = scalar_lea.vmem %s234_s1, %s184_s8 }
   0xe   : > { %v112_v0 = vld [vmem:[%s107_s11] sm:$0xff] }
   0xf   : > { %v113_v1 = vmul.f32 %v112_v0, %v112_v0 }
  0x11   : > { %v115_v2 = vsel %vm114_vm0, %v113_v1, 0.0 }
  0x12   : > { %v116_v3 = vrot.slane %v115_v2, 4 }
  0x14   : > { %v117_v4 = vadd.f32 %v116_v3, %v115_v2 }
  0x16   : > { %v118_v5 = vrot.slane %v117_v4, 2 }
  0x18   : > { %v119_v6 = vadd.f32 %v118_v5, %v117_v4 }
  0x1a   : > { %v120_v7 = vrot.slane %v119_v6, 1 }
  0x1c   : > { %v121_v8 = vadd.f32 %v120_v7, %v119_v6 }
  0x1e   : > { %v122_v9 = vmax.f32 %v121_v8, 1e-24 }
  0x20   : > { %196 = vrsqrt.f32 %v122_v9 }
  0x2d   : > { %v197_v10 = vpop.eup %196 }
  0x2e   : > { %v124_v11 = vmul.f32 %v197_v10, %v112_v0 }
  0x30   : > { %125 = vst.msk [vmem:[%s111_s14] sm:$0xff] %vm114_vm0, %v124_v11 }
  0x31 PF: > { %s11_s6 = sadd.s32 1, %s204_s6  }
  0x32   : > { %p8_p4 = scmp.ge.s32.totalorder %s11_s6, 4  }
  0x34   :  { %10 = sbr.rel (!%p8_p4) target bundleno = 1 (0x1), region = 54 }

</bundles_post_ra>
